<compile_context>
chip_gen: v7x
topology: tpu7x:2x2x1
jax: 0.10.0
libtpu: 0.0.40
codegen_flags: <defaults>
</compile_context>

<pallas_src>
import functools

import jax
import jax.numpy as jnp
from jax.experimental import pallas as pl
from jax.experimental.pallas import tpu as pltpu


def _conv_kernel(x_ref, w_ref, b_ref, o_ref, col_ref, *,
                 NB, H_out, W_out, C_in, KH, KW):
    # x_ref  : (NB, 4, Hh, Wh, C_in)         compute dtype; plane p = 2*(kh%2) + (kw%2)
    # w_ref  : (KH*KW*C_in, TCO)             compute dtype
    # b_ref  : (1, TCO)                      f32
    # o_ref  : (NB, H_out, W_out, TCO)       output dtype
    # col_ref: (NB*H_out*W_out, KH*KW*C_in)  compute-dtype scratch (im2col); persists
    #          across the (fast) co grid axis, so it is only built when co == 0.
    M = NB * H_out * W_out

    @pl.when(pl.program_id(1) == 0)
    def _build_im2col():
        for kh in range(KH):
            ph, dh = kh % 2, kh // 2
            for kw in range(KW):
                pw, dw = kw % 2, kw // 2
                patch = x_ref[:, 2 * ph + pw, dh:dh + H_out, dw:dw + W_out, :]
                tap = kh * KW + kw
                col_ref[:, tap * C_in:(tap + 1) * C_in] = patch.reshape(M, C_in)

    # One long-K MXU matmul with f32 accumulation; bias fused into the result.
    y = jnp.dot(col_ref[...], w_ref[...], preferred_element_type=jnp.float32)
    y = y + b_ref[...]
    o_ref[...] = y.reshape(NB, H_out, W_out, y.shape[-1]).astype(o_ref.dtype)


def _hw_params():
    """Returns (vmem_capacity_bytes, cout_granularity, multi_tensorcore)."""
    vmem_cap = 64 << 20                      # conservative default (v7x per-TC)
    try:
        info = pltpu.get_tpu_info()
        vmem_cap = int(getattr(info, "vmem_capacity_bytes", vmem_cap)) or vmem_cap
    except Exception:
        pass
    vmem_cap = min(max(vmem_cap, 32 << 20), 256 << 20)

    granularity, multi_tc = 256, False       # 256-wide MXU (v6e/v7x) by default
    try:
        kind = jax.devices()[0].device_kind.lower()
        if any(t in kind for t in ("v2", "v3", "v4", "v5 lite", "v5e", "v5lit")):
            granularity = 128                # 128-wide MXU generations
        multi_tc = "v7" in kind              # 2 TensorCores share the grid
    except Exception:
        pass
    return vmem_cap, granularity, multi_tc


def _largest_divisor_at_most(n, cap):
    cap = max(1, min(n, cap))
    for d in range(cap, 0, -1):
        if n % d == 0:
            return d
    return 1


def _choose_cout_tile(C_in, C_out, ksize, itemsize, weight_budget, granularity):
    """C_out tile: full C_out whenever the double-buffered weight fits the budget
    (weight is DMA'd exactly once); otherwise the largest divisor of C_out that is a
    multiple of the MXU width (256 on v6e/v7x, 128 on v5e) and fits the budget."""
    def w_bytes(t):
        return 2 * ksize * C_in * t * itemsize          # double-buffered weight block
    if w_bytes(C_out) <= weight_budget:
        return C_out
    for g in sorted({granularity, 128}, reverse=True):
        cands = [d for d in range(g, C_out, g)
                 if C_out % d == 0 and w_bytes(d) <= weight_budget]
        if cands:
            return max(cands)
    # Nothing fits: fall back to full C_out; the frame chooser sees the weight in its
    # fixed-bytes term and shrinks the frame block to compensate.
    return C_out


def _choose_num_frames(N, per_frame_bytes, fixed_bytes, work_budget, multi_tc):
    """Frames per grid step: as many as fit the VMEM work budget.  Only multi-TC chips
    (v7x) keep >= ~4 steps on the frame axis so both TensorCores stay busy."""
    avail = max(0, work_budget - fixed_bytes)
    nb_max = max(1, avail // max(1, per_frame_bytes))
    if multi_tc and N >= 4:
        nb_max = min(nb_max, max(1, N // 4))
    return _largest_divisor_at_most(N, nb_max)


def downsample3d_forward(x, weight, bias, *, use_conv=True, padding=1,
                         compute_dtype=jnp.bfloat16):
    """Forward of Downsample3D (use_conv=True path).

    x: (B, C_in, F, H, W); weight: (C_out, C_in, 3, 3); bias: (C_out,).
    compute_dtype: MXU operand dtype.  bf16 (default) halves HBM/VMEM traffic with f32
    accumulation; pass jnp.float32 for maximum fidelity, or an fp8 dtype
    (e.g. jnp.float8_e4m3fn) on v7x for ~2x MXU rate where the layer tolerates it.
    """
    # TODO(synk): use_conv=False branch (nn.AvgPool2d) raises on 5-D input in PyTorch, so
    # it is not a valid forward path for this module and is not implemented here.
    assert use_conv, "only the use_conv=True (InflatedConv3d) path is implemented"
    B, C_in, F, H, W = x.shape
    C_out, C_in_w, KH, KW = weight.shape
    assert C_in_w == C_in and KH == 3 and KW == 3, "kernel_size=3 (module default) supported"
    stride = 2

    if padding == 0:
        # PyTorch path: F.pad(hidden_states, (0, 1, 0, 1)) then conv with padding=0.
        H_eff, W_eff, pad_l = H + 1, W + 1, 0
    else:
        H_eff, W_eff, pad_l = H + 2 * padding, W + 2 * padding, padding
    H_out = (H_eff - KH) // stride + 1
    W_out = (W_eff - KW) // stride + 1
    Hp2, Wp2 = 2 * H_out + 2, 2 * W_out + 2
    Hh, Wh = Hp2 // 2, Wp2 // 2
    N = B * F
    K_all = KH * KW * C_in
    out_dtype = x.dtype

    # Compute-dtype MXU operands (f32 accumulation in-kernel).
    xq = x.astype(compute_dtype)
    # (C_out, C_in, KH, KW) -> (KH, KW, C_in, C_out) -> (KH*KW*C_in, C_out): row order is
    # tap-major / channel-minor, matching the in-kernel im2col column order.
    w2 = jnp.transpose(weight, (2, 3, 1, 0)).reshape(K_all, C_out).astype(compute_dtype)
    b2 = bias.reshape(1, C_out).astype(jnp.float32)

    # Zero-pad H/W, then split rows/cols by parity with one combined transpose:
    #   x_split[n, 2*ph+pw, i, j, c] = x_pad[n, c, 2i+ph, 2j+pw]
    # This turns the stride-2 3x3 conv into 9 contiguous windows.
    # TODO(synk): this is one extra HBM pass over the activations; fold it into the
    # kernel with a stride-2 gather (or allow_input_fusion) once validated on Mosaic.
    xp = jnp.pad(xq, ((0, 0), (0, 0), (0, 0),
                      (pad_l, Hp2 - H - pad_l), (pad_l, Wp2 - W - pad_l)))
    x_split = (xp.reshape(B, C_in, F, Hh, 2, Wh, 2)
                 .transpose(0, 2, 4, 6, 3, 5, 1)          # (B, F, ph, pw, Hh, Wh, C)
                 .reshape(N, 4, Hh, Wh, C_in))

    itemsize = jnp.dtype(compute_dtype).itemsize
    out_itemsize = jnp.dtype(out_dtype).itemsize

    # --- VMEM-capacity-derived tiling -------------------------------------------------
    vmem_cap, cout_gran, multi_tc = _hw_params()
    vmem_cap_limit = (vmem_cap * 4) // 5      # ~80% of physical: headroom for Mosaic scratch
    weight_budget = vmem_cap // 4             # 16 MiB on v7x, 32 MiB on v5e/v6e
    work_budget = (vmem_cap * 5) // 8         # 40 MiB on v7x, 80 MiB on v5e/v6e

    TCO = _choose_cout_tile(C_in, C_out, K_all, itemsize, weight_budget, cout_gran)
    co_blocks = C_out // TCO

    per_frame = (2 * 4 * Hh * Wh * C_in * itemsize          # double-buffered input block
                 + H_out * W_out * K_all * itemsize         # im2col scratch
                 + 2 * H_out * W_out * TCO * out_itemsize)  # double-buffered output block
    fixed = 2 * K_all * TCO * itemsize + 2 * TCO * 4        # weight + bias blocks
    NB = _choose_num_frames(N, per_frame, fixed, work_budget, multi_tc)
    M = NB * H_out * W_out
    n_blocks = N // NB
    # TODO(synk): for very large single frames (e.g. 64x64 @ 1280 channels) add a
    # row-block grid axis so the per-frame blocks can shrink further on v7x.

    # Optional 3-deep input pipelining (v7x only): with co_blocks == 1 the whole
    # NB-frame input DMA must hide under a single step's compute.
    in_block_bytes = NB * 4 * Hh * Wh * C_in * itemsize
    vmem_need = NB * per_frame + fixed
    use_triple_input = (multi_tc and co_blocks == 1 and n_blocks > 2
                        and vmem_need + in_block_bytes <= work_budget)
    if use_triple_input:
        vmem_need += in_block_bytes

    vmem_limit = int(min(vmem_cap_limit, max(32 << 20, (vmem_need * 5) // 4)))

    if use_triple_input:
        x_spec = pl.BlockSpec((NB, 4, Hh, Wh, C_in), lambda n, co: (n, 0, 0, 0, 0),
                              pipeline_mode=pl.Buffered(3))
    else:
        x_spec = pl.BlockSpec((NB, 4, Hh, Wh, C_in), lambda n, co: (n, 0, 0, 0, 0))

    kernel = functools.partial(_conv_kernel, NB=NB, H_out=H_out, W_out=W_out,
                               C_in=C_in, KH=KH, KW=KW)

    flops = 2 * N * H_out * W_out * K_all * C_out
    # Weight is re-fetched once per n-block only when C_out is tiled (co fast axis).
    weight_stream = w2.size * itemsize * (n_blocks if co_blocks > 1 else 1)
    bytes_accessed = (x_split.size * itemsize + weight_stream + b2.size * 4
                      + N * H_out * W_out * C_out * out_itemsize)

    out = pl.pallas_call(
        kernel,
        out_shape=jax.ShapeDtypeStruct((N, H_out, W_out, C_out), out_dtype),
        grid_spec=pltpu.PrefetchScalarGridSpec(
            num_scalar_prefetch=0,
            # co is the fast axis so the per-n im2col scratch (and the resident input
            # block) are reused across every C_out tile; with TCO == C_out this grid
            # degenerates to (n_blocks, 1) and the weight is DMA'd exactly once.
            grid=(n_blocks, co_blocks),
            in_specs=[
                x_spec,
                pl.BlockSpec((K_all, TCO), lambda n, co: (0, co)),
                pl.BlockSpec((1, TCO), lambda n, co: (0, co)),
            ],
            out_specs=pl.BlockSpec((NB, H_out, W_out, TCO),
                                   lambda n, co: (n, 0, 0, co)),
            scratch_shapes=[pltpu.VMEM((M, K_all), compute_dtype)],
        ),
        compiler_params=pltpu.CompilerParams(
            # The co axis reuses the per-n im2col scratch => keep it in-order on one core.
            dimension_semantics=("parallel", "arbitrary"),
            vmem_limit_bytes=vmem_limit),
        cost_estimate=pl.CostEstimate(flops=flops, transcendentals=0,
                                      bytes_accessed=bytes_accessed),
    )(x_split, w2, b2)

    # (N, Ho, Wo, C_out) -> (B, C_out, F, Ho, Wo)
    return out.reshape(B, F, H_out, W_out, C_out).transpose(0, 4, 1, 2, 3)


if __name__ == "__main__":
    key = jax.random.PRNGKey(0)
    k1, k2, k3 = jax.random.split(key, 3)

    B, C, F, H, W = 2, 4, 4, 16, 16
    C_out = C  # out_channels defaults to channels
    x = jax.random.normal(k1, (B, C, F, H, W), dtype=jnp.float32)
    weight = jax.random.normal(k2, (C_out, C, 3, 3), dtype=jnp.float32) * 0.1
    bias = jax.random.normal(k3, (C_out,), dtype=jnp.float32) * 0.1

    # Full-precision reference: f32 XLA conv applied per frame, exactly like the
    # PyTorch InflatedConv3d forward.
    x4 = jnp.transpose(x, (0, 2, 1, 3, 4)).reshape(B * F, C, H, W)
    ref4 = jax.lax.conv_general_dilated(
        x4, weight, window_strides=(2, 2), padding=[(1, 1), (1, 1)],
        dimension_numbers=("NCHW", "OIHW", "NCHW"),
        precision=jax.lax.Precision.HIGHEST) + bias.reshape(1, C_out, 1, 1)
    Ho, Wo = ref4.shape[2], ref4.shape[3]
    ref_f32 = ref4.reshape(B, F, C_out, Ho, Wo).transpose(0, 2, 1, 3, 4)

    # (1) f32 compute path vs the f32 reference (semantics / indexing check).
    out_f32 = downsample3d_forward(x, weight, bias, use_conv=True, padding=1,
                                   compute_dtype=jnp.float32)
    out_f32 = jax.block_until_ready(out_f32)
    assert out_f32.shape == ref_f32.shape, (out_f32.shape, ref_f32.shape)
    err_f32 = float(jnp.max(jnp.abs(out_f32 - ref_f32)))
    assert jnp.allclose(out_f32, ref_f32, atol=5e-2, rtol=5e-2), err_f32

    # (2) bf16 compute path (default) vs a reference with identical bf16 operand
    #     quantization + f32 accumulation (tight check of the kernel itself).
    xb, wb = x.astype(jnp.bfloat16), weight.astype(jnp.bfloat16)
    x4b = jnp.transpose(xb, (0, 2, 1, 3, 4)).reshape(B * F, C, H, W)
    refb4 = jax.lax.conv_general_dilated(
        x4b, wb, window_strides=(2, 2), padding=[(1, 1), (1, 1)],
        dimension_numbers=("NCHW", "OIHW", "NCHW"),
        preferred_element_type=jnp.float32) + bias.reshape(1, C_out, 1, 1)
    ref_bf16 = refb4.reshape(B, F, C_out, Ho, Wo).transpose(0, 2, 1, 3, 4)

    out_bf16 = downsample3d_forward(x, weight, bias, use_conv=True, padding=1)
    out_bf16 = jax.block_until_ready(out_bf16)
    assert out_bf16.shape == ref_bf16.shape, (out_bf16.shape, ref_bf16.shape)
    err_bf16 = float(jnp.max(jnp.abs(out_bf16 - ref_bf16)))
    assert jnp.allclose(out_bf16, ref_bf16, atol=1e-3, rtol=1e-3), err_bf16

    print("KERNEL_OK")
</pallas_src>

<mosaic_0001>
module attributes {stable_mosaic.version = 11 : i64} {
  func.func @_conv_kernel(%arg0: i32, %arg1: i32, %arg2: memref<8x4x9x9x4xf32, #tpu.memory_space<vmem>>, %arg3: memref<36x4xf32, #tpu.memory_space<vmem>>, %arg4: memref<1x4xf32, #tpu.memory_space<vmem>>, %arg5: memref<8x8x8x4xf32, #tpu.memory_space<vmem>>, %arg6: memref<512x36xf32, #tpu.memory_space<vmem>>) attributes {dimension_semantics = [#tpu.dimension_semantics<parallel>, #tpu.dimension_semantics<arbitrary>], iteration_bounds = array<i64: 1, 1>, scalar_prefetch = 0 : i64, scratch_operands = 1 : i64, tpu.core_type = #tpu.core_type<tc>, window_params = [{transform_indices = @transform_0, window_bounds = array<i64: 8, 4, 9, 9, 4>}, {transform_indices = @transform_1, window_bounds = array<i64: 36, 4>}, {transform_indices = @transform_2, window_bounds = array<i64: 1, 4>}, {transform_indices = @transform_3, window_bounds = array<i64: 8, 8, 8, 4>}]} {
    %c0_i32 = arith.constant 0 : i32
    %0 = arith.cmpi eq, %arg1, %c0_i32 : i32
    %1 = arith.extui %0 : i1 to i32
    %c0_i32_0 = arith.constant 0 : i32
    %2 = arith.cmpi ne, %1, %c0_i32_0 : i32
    scf.if %2 {
      %c0_10 = arith.constant 0 : index
      %c0_11 = arith.constant 0 : index
      %c0_12 = arith.constant 0 : index
      %c0_13 = arith.constant 0 : index
      %c0_14 = arith.constant 0 : index
      %11 = vector.load %arg2[%c0_10, %c0_11, %c0_12, %c0_13, %c0_14] : memref<8x4x9x9x4xf32, #tpu.memory_space<vmem>>, vector<8x1x8x8x4xf32>
      %12 = vector.shape_cast %11 : vector<8x1x8x8x4xf32> to vector<8x8x8x4xf32>
      %13 = vector.shape_cast %12 : vector<8x8x8x4xf32> to vector<512x4xf32>
      %c0_15 = arith.constant 0 : index
      %c0_16 = arith.constant 0 : index
      %14 = vector.load %arg6[%c0_15, %c0_16] : memref<512x36xf32, #tpu.memory_space<vmem>>, vector<512x4xf32>
      tpu.vector_store %arg6[%c0_15, %c0_16], %13 {strides = array<i32>} : memref<512x36xf32, #tpu.memory_space<vmem>>, vector<512x4xf32>,
      %c0_17 = arith.constant 0 : index
      %c1 = arith.constant 1 : index
      %c0_18 = arith.constant 0 : index
      %c0_19 = arith.constant 0 : index
      %c0_20 = arith.constant 0 : index
      %15 = vector.load %arg2[%c0_17, %c1, %c0_18, %c0_19, %c0_20] : memref<8x4x9x9x4xf32, #tpu.memory_space<vmem>>, vector<8x1x8x8x4xf32>
      %16 = vector.shape_cast %15 : vector<8x1x8x8x4xf32> to vector<8x8x8x4xf32>
      %17 = vector.shape_cast %16 : vector<8x8x8x4xf32> to vector<512x4xf32>
      %c0_21 = arith.constant 0 : index
      %c4 = arith.constant 4 : index
      %18 = vector.load %arg6[%c0_21, %c4] : memref<512x36xf32, #tpu.memory_space<vmem>>, vector<512x4xf32>
      tpu.vector_store %arg6[%c0_21, %c4], %17 {strides = array<i32>} : memref<512x36xf32, #tpu.memory_space<vmem>>, vector<512x4xf32>,
      %c0_22 = arith.constant 0 : index
      %c0_23 = arith.constant 0 : index
      %c0_24 = arith.constant 0 : index
      %c1_25 = arith.constant 1 : index
      %c0_26 = arith.constant 0 : index
      %19 = vector.load %arg2[%c0_22, %c0_23, %c0_24, %c1_25, %c0_26] : memref<8x4x9x9x4xf32, #tpu.memory_space<vmem>>, vector<8x1x8x8x4xf32>
      %20 = vector.shape_cast %19 : vector<8x1x8x8x4xf32> to vector<8x8x8x4xf32>
      %21 = vector.shape_cast %20 : vector<8x8x8x4xf32> to vector<512x4xf32>
      %c0_27 = arith.constant 0 : index
      %c8 = arith.constant 8 : index
      %22 = vector.load %arg6[%c0_27, %c8] : memref<512x36xf32, #tpu.memory_space<vmem>>, vector<512x4xf32>
      tpu.vector_store %arg6[%c0_27, %c8], %21 {strides = array<i32>} : memref<512x36xf32, #tpu.memory_space<vmem>>, vector<512x4xf32>,
      %c0_28 = arith.constant 0 : index
      %c2 = arith.constant 2 : index
      %c0_29 = arith.constant 0 : index
      %c0_30 = arith.constant 0 : index
      %c0_31 = arith.constant 0 : index
      %23 = vector.load %arg2[%c0_28, %c2, %c0_29, %c0_30, %c0_31] : memref<8x4x9x9x4xf32, #tpu.memory_space<vmem>>, vector<8x1x8x8x4xf32>
      %24 = vector.shape_cast %23 : vector<8x1x8x8x4xf32> to vector<8x8x8x4xf32>
      %25 = vector.shape_cast %24 : vector<8x8x8x4xf32> to vector<512x4xf32>
      %c0_32 = arith.constant 0 : index
      %c12 = arith.constant 12 : index
      %26 = vector.load %arg6[%c0_32, %c12] : memref<512x36xf32, #tpu.memory_space<vmem>>, vector<512x4xf32>
      tpu.vector_store %arg6[%c0_32, %c12], %25 {strides = array<i32>} : memref<512x36xf32, #tpu.memory_space<vmem>>, vector<512x4xf32>,
      %c0_33 = arith.constant 0 : index
      %c3 = arith.constant 3 : index
      %c0_34 = arith.constant 0 : index
      %c0_35 = arith.constant 0 : index
      %c0_36 = arith.constant 0 : index
      %27 = vector.load %arg2[%c0_33, %c3, %c0_34, %c0_35, %c0_36] : memref<8x4x9x9x4xf32, #tpu.memory_space<vmem>>, vector<8x1x8x8x4xf32>
      %28 = vector.shape_cast %27 : vector<8x1x8x8x4xf32> to vector<8x8x8x4xf32>
      %29 = vector.shape_cast %28 : vector<8x8x8x4xf32> to vector<512x4xf32>
      %c0_37 = arith.constant 0 : index
      %c16 = arith.constant 16 : index
      %30 = vector.load %arg6[%c0_37, %c16] : memref<512x36xf32, #tpu.memory_space<vmem>>, vector<512x4xf32>
      tpu.vector_store %arg6[%c0_37, %c16], %29 {strides = array<i32>} : memref<512x36xf32, #tpu.memory_space<vmem>>, vector<512x4xf32>,
      %c0_38 = arith.constant 0 : index
      %c2_39 = arith.constant 2 : index
      %c0_40 = arith.constant 0 : index
      %c1_41 = arith.constant 1 : index
      %c0_42 = arith.constant 0 : index
      %31 = vector.load %arg2[%c0_38, %c2_39, %c0_40, %c1_41, %c0_42] : memref<8x4x9x9x4xf32, #tpu.memory_space<vmem>>, vector<8x1x8x8x4xf32>
      %32 = vector.shape_cast %31 : vector<8x1x8x8x4xf32> to vector<8x8x8x4xf32>
      %33 = vector.shape_cast %32 : vector<8x8x8x4xf32> to vector<512x4xf32>
      %c0_43 = arith.constant 0 : index
      %c20 = arith.constant 20 : index
      %34 = vector.load %arg6[%c0_43, %c20] : memref<512x36xf32, #tpu.memory_space<vmem>>, vector<512x4xf32>
      tpu.vector_store %arg6[%c0_43, %c20], %33 {strides = array<i32>} : memref<512x36xf32, #tpu.memory_space<vmem>>, vector<512x4xf32>,
      %c0_44 = arith.constant 0 : index
      %c0_45 = arith.constant 0 : index
      %c1_46 = arith.constant 1 : index
      %c0_47 = arith.constant 0 : index
      %c0_48 = arith.constant 0 : index
      %35 = vector.load %arg2[%c0_44, %c0_45, %c1_46, %c0_47, %c0_48] : memref<8x4x9x9x4xf32, #tpu.memory_space<vmem>>, vector<8x1x8x8x4xf32>
      %36 = vector.shape_cast %35 : vector<8x1x8x8x4xf32> to vector<8x8x8x4xf32>
      %37 = vector.shape_cast %36 : vector<8x8x8x4xf32> to vector<512x4xf32>
      %c0_49 = arith.constant 0 : index
      %c24 = arith.constant 24 : index
      %38 = vector.load %arg6[%c0_49, %c24] : memref<512x36xf32, #tpu.memory_space<vmem>>, vector<512x4xf32>
      tpu.vector_store %arg6[%c0_49, %c24], %37 {strides = array<i32>} : memref<512x36xf32, #tpu.memory_space<vmem>>, vector<512x4xf32>,
      %c0_50 = arith.constant 0 : index
      %c1_51 = arith.constant 1 : index
      %c1_52 = arith.constant 1 : index
      %c0_53 = arith.constant 0 : index
      %c0_54 = arith.constant 0 : index
      %39 = vector.load %arg2[%c0_50, %c1_51, %c1_52, %c0_53, %c0_54] : memref<8x4x9x9x4xf32, #tpu.memory_space<vmem>>, vector<8x1x8x8x4xf32>
      %40 = vector.shape_cast %39 : vector<8x1x8x8x4xf32> to vector<8x8x8x4xf32>
      %41 = vector.shape_cast %40 : vector<8x8x8x4xf32> to vector<512x4xf32>
      %c0_55 = arith.constant 0 : index
      %c28 = arith.constant 28 : index
      %42 = vector.load %arg6[%c0_55, %c28] : memref<512x36xf32, #tpu.memory_space<vmem>>, vector<512x4xf32>
      tpu.vector_store %arg6[%c0_55, %c28], %41 {strides = array<i32>} : memref<512x36xf32, #tpu.memory_space<vmem>>, vector<512x4xf32>,
      %c0_56 = arith.constant 0 : index
      %c0_57 = arith.constant 0 : index
      %c1_58 = arith.constant 1 : index
      %c1_59 = arith.constant 1 : index
      %c0_60 = arith.constant 0 : index
      %43 = vector.load %arg2[%c0_56, %c0_57, %c1_58, %c1_59, %c0_60] : memref<8x4x9x9x4xf32, #tpu.memory_space<vmem>>, vector<8x1x8x8x4xf32>
      %44 = vector.shape_cast %43 : vector<8x1x8x8x4xf32> to vector<8x8x8x4xf32>
      %45 = vector.shape_cast %44 : vector<8x8x8x4xf32> to vector<512x4xf32>
      %c0_61 = arith.constant 0 : index
      %c32 = arith.constant 32 : index
      %46 = vector.load %arg6[%c0_61, %c32] : memref<512x36xf32, #tpu.memory_space<vmem>>, vector<512x4xf32>
      tpu.vector_store %arg6[%c0_61, %c32], %45 {strides = array<i32>} : memref<512x36xf32, #tpu.memory_space<vmem>>, vector<512x4xf32>,
    } else {
    }
    %c0 = arith.constant 0 : index
    %c0_1 = arith.constant 0 : index
    %3 = vector.load %arg6[%c0, %c0_1] : memref<512x36xf32, #tpu.memory_space<vmem>>, vector<512x36xf32>
    %c0_2 = arith.constant 0 : index
    %c0_3 = arith.constant 0 : index
    %4 = vector.load %arg3[%c0_2, %c0_3] : memref<36x4xf32, #tpu.memory_space<vmem>>, vector<36x4xf32>
    %cst = arith.constant dense<0.000000e+00> : vector<512x4xf32>
    %5 = tpu.matmul %3, %4, %cst {dimension_numbers = #tpu.dot_dimension_numbers<[1], [0], [0], [1], [0, 0, 1, 1], [], []>} : vector<512x36xf32>, vector<36x4xf32>, vector<512x4xf32> -> vector<512x4xf32>
    %c0_4 = arith.constant 0 : index
    %c0_5 = arith.constant 0 : index
    %6 = vector.load %arg4[%c0_4, %c0_5] : memref<1x4xf32, #tpu.memory_space<vmem>>, vector<1x4xf32>
    %7 = vector.broadcast %6 : vector<1x4xf32> to vector<512x4xf32>
    %8 = arith.addf %5, %7 : vector<512x4xf32>
    %9 = vector.shape_cast %8 : vector<512x4xf32> to vector<8x8x8x4xf32>
    %c0_6 = arith.constant 0 : index
    %c0_7 = arith.constant 0 : index
    %c0_8 = arith.constant 0 : index
    %c0_9 = arith.constant 0 : index
    %10 = vector.load %arg5[%c0_6, %c0_7, %c0_8, %c0_9] : memref<8x8x8x4xf32, #tpu.memory_space<vmem>>, vector<8x8x8x4xf32>
    tpu.vector_store %arg5[%c0_6, %c0_7, %c0_8, %c0_9], %9 {strides = array<i32>} : memref<8x8x8x4xf32, #tpu.memory_space<vmem>>, vector<8x8x8x4xf32>,
    return
  }
  func.func @transform_0(%arg0: i32, %arg1: i32) -> (i32, i32, i32, i32, i32) {
    %c0_i32 = arith.constant 0 : i32
    %c0_i32_0 = arith.constant 0 : i32
    %c0_i32_1 = arith.constant 0 : i32
    %c0_i32_2 = arith.constant 0 : i32
    %c0_i32_3 = arith.constant 0 : i32
    return %arg0, %c0_i32, %c0_i32_0, %c0_i32_1, %c0_i32_2 : i32, i32, i32, i32, i32
  }
  func.func @transform_1(%arg0: i32, %arg1: i32) -> (i32, i32) {
    %c0_i32 = arith.constant 0 : i32
    %c0_i32_0 = arith.constant 0 : i32
    return %c0_i32, %arg1 : i32, i32
  }
  func.func @transform_2(%arg0: i32, %arg1: i32) -> (i32, i32) {
    %c0_i32 = arith.constant 0 : i32
    %c0_i32_0 = arith.constant 0 : i32
    return %c0_i32, %arg1 : i32, i32
  }
  func.func @transform_3(%arg0: i32, %arg1: i32) -> (i32, i32, i32, i32) {
    %c0_i32 = arith.constant 0 : i32
    %c0_i32_0 = arith.constant 0 : i32
    %c0_i32_1 = arith.constant 0 : i32
    return %arg0, %c0_i32, %c0_i32_0, %arg1 : i32, i32, i32, i32
  }
}

</mosaic_0001>

<bundles_post_ra>
// kernel: tpu_custom_call.1
= control target key start
LH: loop header
LB: loop body
LE: loop exit
PB: predicated region body
PF: predicated region fallthrough
CT: control target
= control target key end

     0   :  { %s4670_s16 = smov 4   ;;  %vm82_vm0 = vcmask 31744   ;;  %vm468_vm1 = vcmask 64544   ;;  %s4671_s12 = smov 8   ;;  %vm853_vm2 = vcmask 97344   ;;  %vm1239_vm3 = vcmask 130144   ;;  %s7918_s0 = inlined_call_operand.vmem [shape: f32[8,4,9,9,4], index: 0, kind: input, shape index: {}]   ;;  %s7919_s1 = inlined_call_operand.vmem [shape: f32[36,4], index: 1, kind: input, shape index: {}]   ;;  %s7920_s2 = inlined_call_operand.vmem [shape: f32[1,4], index: 2, kind: input, shape index: {}]   ;;  %s7921_s3 = inlined_call_operand.vmem [shape: f32[8,8,8,4], index: 3, kind: output, shape index: {}]  }
   0x1   :  { %v3961_v0 = vld [vmem:[%s7918_s0 + $0xb0] sm:$0xff]  ;;  %v3962_v2 = vld [vmem:[%s7918_s0 + $0xc0] sm:$0xff]  ;;  %s4672_s10 = smov 12   ;;  %s4673_s8 = smov 16   ;;  %vm1625_vm4 = vcmask 162944   ;;  %vm2010_vm5 = vcmask 195744  }
   0x2   :  { %v3959_v1 = vld [vmem:[%s7918_s0 + $0x90] sm:$0xff]  ;;  %280 = vrot.lane.b32.xlu1 %v3961_v0, %s4670_s16  ;;  %v3960_v3 = vld [vmem:[%s7918_s0 + $0xa0] sm:$0xff]  ;;  %s4674_s6 = smov 20   ;;  %s4675_s4 = smov 24   ;;  %vm3501_vm6 = vcmask 1043456   ;;  %vm2396_vm7 = vcmask 228544  }
   0x3   :  { %276 = vrot.lane.b32.xlu0 %v3959_v1, %s4670_s16  ;;  %v3964_v4 = vld [vmem:[%s7918_s0 + $0xe0] sm:$0xff]  ;;  %v3963_v5 = vld [vmem:[%s7918_s0 + $0xd0] sm:$0xff]  ;;  %vm2782_vm8 = vcmask 261344   ;;  %vm3167_vm9 = vcmask 294144   ;;  %vm3308_vm10 = vcmask 293888  }
   0x4   :  { %v3966_v6 = vld [vmem:[%s7918_s0 + $0x100] sm:$0xff]  ;;  %v3965_v7 = vld [vmem:[%s7918_s0 + $0xf0] sm:$0xff] }
   0x5   :  { %v3968_v8 = vld [vmem:[%s7918_s0 + $0x2e0] sm:$0xff]  ;;  %v3967_v9 = vld [vmem:[%s7918_s0 + $0x2d0] sm:$0xff] }
   0x6   :  { %282 = vrot.lane.b32.xlu1 %v3962_v2, %s4670_s16  ;;  %v3970_v10 = vld [vmem:[%s7918_s0 + $0x300] sm:$0xff]  ;;  %v3969_v11 = vld [vmem:[%s7918_s0 + $0x2f0] sm:$0xff] }
   0x7   :  { %278 = vrot.lane.b32.xlu0 %v3960_v3, %s4670_s16  ;;  %v20_v12 = vld [vmem:[%s7918_s0 + $0x20] sm:$0xff]  ;;  %v3971_v15 = vld [vmem:[%s7918_s0 + $0x310] sm:$0xff] }
   0x8   :  { %v18_v13 = vld [vmem:[%s7918_s0] sm:$0xff]  ;;  %85 = vst.msk [vmem:[#allocation2 + $0x10] sm:$0xff] %vm82_vm0, %v20_v12  ;;  %v21_v16 = vld [vmem:[%s7918_s0 + $0x30] sm:$0xff] }
   0x9   :  { %v3972_v14 = vld [vmem:[%s7918_s0 + $0x320] sm:$0xff]  ;;  %83 = vst.msk [vmem:[#allocation2] sm:$0xff] %vm82_vm0, %v18_v13  ;;  %86 = vst.msk [vmem:[#allocation2 + $0x18] sm:$0xff] %vm82_vm0, %v21_v16  ;;  %v19_v17 = vld [vmem:[%s7918_s0 + $0x10] sm:$0xff] }
   0xa   :  { %286 = vrot.lane.b32.xlu1 %v3964_v4, %s4670_s16  ;;  %84 = vst.msk [vmem:[#allocation2 + $0x8] sm:$0xff] %vm82_vm0, %v19_v17  ;;  %v23_v18 = vld [vmem:[%s7918_s0 + $0x50] sm:$0xff]  ;;  %v22_v19 = vld [vmem:[%s7918_s0 + $0x40] sm:$0xff] }
   0xb   :  { %284 = vrot.lane.b32.xlu0 %v3963_v5, %s4670_s16  ;;  %88 = vst.msk [vmem:[#allocation2 + $0x28] sm:$0xff] %vm82_vm0, %v23_v18  ;;  %87 = vst.msk [vmem:[#allocation2 + $0x20] sm:$0xff] %vm82_vm0, %v22_v19  ;;  %v25_v20 = vld [vmem:[%s7918_s0 + $0x70] sm:$0xff]  ;;  %v3974_v21 = vld [vmem:[%s7918_s0 + $0x340] sm:$0xff] }
   0xc   :  { %v3973_v22 = vld [vmem:[%s7918_s0 + $0x330] sm:$0xff]  ;;  %90 = vst.msk [vmem:[#allocation2 + $0x38] sm:$0xff] %vm82_vm0, %v25_v20  ;;  %v24_v23 = vld [vmem:[%s7918_s0 + $0x60] sm:$0xff] }
   0xd   :  { %89 = vst.msk [vmem:[#allocation2 + $0x30] sm:$0xff] %vm82_vm0, %v24_v23  ;;  %v27_v24 = vld [vmem:[%s7918_s0 + $0x250] sm:$0xff]  ;;  %v26_v25 = vld [vmem:[%s7918_s0 + $0x240] sm:$0xff] }
   0xe   :  { %290 = vrot.lane.b32.xlu1 %v3966_v6, %s4670_s16  ;;  %92 = vst.msk [vmem:[#allocation2 + $0x48] sm:$0xff] %vm82_vm0, %v27_v24  ;;  %91 = vst.msk [vmem:[#allocation2 + $0x40] sm:$0xff] %vm82_vm0, %v26_v25  ;;  %v29_v26 = vld [vmem:[%s7918_s0 + $0x270] sm:$0xff]  ;;  %v28_v27 = vld [vmem:[%s7918_s0 + $0x260] sm:$0xff] }
   0xf   :  { %288 = vrot.lane.b32.xlu0 %v3965_v7, %s4670_s16  ;;  %v3976_v28 = vld [vmem:[%s7918_s0 + $0x520] sm:$0xff]  ;;  %94 = vst.msk [vmem:[#allocation2 + $0x58] sm:$0xff] %vm82_vm0, %v29_v26  ;;  %93 = vst.msk [vmem:[#allocation2 + $0x50] sm:$0xff] %vm82_vm0, %v28_v27  ;;  %v3975_v29 = vld [vmem:[%s7918_s0 + $0x510] sm:$0xff] }
  0x10   :  { %v31_v30 = vld [vmem:[%s7918_s0 + $0x290] sm:$0xff]  ;;  %v30_v31 = vld [vmem:[%s7918_s0 + $0x280] sm:$0xff] }
  0x11   :  { %96 = vst.msk [vmem:[#allocation2 + $0x68] sm:$0xff] %vm82_vm0, %v31_v30  ;;  %95 = vst.msk [vmem:[#allocation2 + $0x60] sm:$0xff] %vm82_vm0, %v30_v31  ;;  %v33_v32 = vld [vmem:[%s7918_s0 + $0x2b0] sm:$0xff]  ;;  %v32_v33 = vld [vmem:[%s7918_s0 + $0x2a0] sm:$0xff] }
  0x12   :  { %294 = vrot.lane.b32.xlu1 %v3968_v8, %s4670_s16  ;;  %98 = vst.msk [vmem:[#allocation2 + $0x78] sm:$0xff] %vm82_vm0, %v33_v32  ;;  %97 = vst.msk [vmem:[#allocation2 + $0x70] sm:$0xff] %vm82_vm0, %v32_v33  ;;  %v35_v34 = vld [vmem:[%s7918_s0 + $0x490] sm:$0xff]  ;;  %v3978_v35 = vld [vmem:[%s7918_s0 + $0x540] sm:$0xff] }
  0x13   :  { %292 = vrot.lane.b32.xlu0 %v3967_v9, %s4670_s16  ;;  %100 = vst.msk [vmem:[#allocation2 + $0x88] sm:$0xff] %vm82_vm0, %v35_v34  ;;  %v34_v36 = vld [vmem:[%s7918_s0 + $0x480] sm:$0xff]  ;;  %v3977_v37 = vld [vmem:[%s7918_s0 + $0x530] sm:$0xff] }
  0x14   :  { %99 = vst.msk [vmem:[#allocation2 + $0x80] sm:$0xff] %vm82_vm0, %v34_v36  ;;  %v37_v38 = vld [vmem:[%s7918_s0 + $0x4b0] sm:$0xff]  ;;  %v36_v39 = vld [vmem:[%s7918_s0 + $0x4a0] sm:$0xff] }
  0x15   :  { %102 = vst.msk [vmem:[#allocation2 + $0x98] sm:$0xff] %vm82_vm0, %v37_v38  ;;  %101 = vst.msk [vmem:[#allocation2 + $0x90] sm:$0xff] %vm82_vm0, %v36_v39  ;;  %v39_v40 = vld [vmem:[%s7918_s0 + $0x4d0] sm:$0xff]  ;;  %v38_v41 = vld [vmem:[%s7918_s0 + $0x4c0] sm:$0xff] }
  0x16   :  { %298 = vrot.lane.b32.xlu1 %v3970_v10, %s4670_s16  ;;  %104 = vst.msk [vmem:[#allocation2 + $0xa8] sm:$0xff] %vm82_vm0, %v39_v40  ;;  %103 = vst.msk [vmem:[#allocation2 + $0xa0] sm:$0xff] %vm82_vm0, %v38_v41  ;;  %v41_v42 = vld [vmem:[%s7918_s0 + $0x4f0] sm:$0xff]  ;;  %v40_v43 = vld [vmem:[%s7918_s0 + $0x4e0] sm:$0xff] }
  0x17   :  { %296 = vrot.lane.b32.xlu0 %v3969_v11, %s4670_s16  ;;  %v3980_v44 = vld [vmem:[%s7918_s0 + $0x560] sm:$0xff]  ;;  %v3979_v45 = vld [vmem:[%s7918_s0 + $0x550] sm:$0xff]  ;;  %106 = vst.msk [vmem:[#allocation2 + $0xb8] sm:$0xff] %vm82_vm0, %v41_v42  ;;  %105 = vst.msk [vmem:[#allocation2 + $0xb0] sm:$0xff] %vm82_vm0, %v40_v43 }
  0x18   :  { %v43_v46 = vld [vmem:[%s7918_s0 + $0x6d0] sm:$0xff]  ;;  %v42_v47 = vld [vmem:[%s7918_s0 + $0x6c0] sm:$0xff] }
  0x19   :  { %108 = vst.msk [vmem:[#allocation2 + $0xc8] sm:$0xff] %vm82_vm0, %v43_v46  ;;  %107 = vst.msk [vmem:[#allocation2 + $0xc0] sm:$0xff] %vm82_vm0, %v42_v47  ;;  %v45_v48 = vld [vmem:[%s7918_s0 + $0x6f0] sm:$0xff]  ;;  %v44_v49 = vld [vmem:[%s7918_s0 + $0x6e0] sm:$0xff] }
  0x1a   :  { %302 = vrot.lane.b32.xlu1 %v3972_v14, %s4670_s16  ;;  %v3982_v50 = vld [vmem:[%s7918_s0 + $0x580] sm:$0xff]  ;;  %110 = vst.msk [vmem:[#allocation2 + $0xd8] sm:$0xff] %vm82_vm0, %v45_v48  ;;  %109 = vst.msk [vmem:[#allocation2 + $0xd0] sm:$0xff] %vm82_vm0, %v44_v49  ;;  %v3981_v51 = vld [vmem:[%s7918_s0 + $0x570] sm:$0xff] }
  0x1b   :  { %300 = vrot.lane.b32.xlu0 %v3971_v15, %s4670_s16  ;;  %v47_v52 = vld [vmem:[%s7918_s0 + $0x710] sm:$0xff]  ;;  %v46_v53 = vld [vmem:[%s7918_s0 + $0x700] sm:$0xff] }
  0x1c   :  { %112 = vst.msk [vmem:[#allocation2 + $0xe8] sm:$0xff] %vm82_vm0, %v47_v52  ;;  %111 = vst.msk [vmem:[#allocation2 + $0xe0] sm:$0xff] %vm82_vm0, %v46_v53  ;;  %v3984_v54 = vld [vmem:[%s7918_s0 + $0x760] sm:$0xff]  ;;  %v3983_v55 = vld [vmem:[%s7918_s0 + $0x750] sm:$0xff] }
  0x1d   :  { %v49_v56 = vld [vmem:[%s7918_s0 + $0x730] sm:$0xff]  ;;  %v48_v57 = vld [vmem:[%s7918_s0 + $0x720] sm:$0xff] }
  0x1e   :  { %306 = vrot.lane.b32.xlu1 %v3974_v21, %s4670_s16  ;;  %114 = vst.msk [vmem:[#allocation2 + $0xf8] sm:$0xff] %vm82_vm0, %v49_v56  ;;  %113 = vst.msk [vmem:[#allocation2 + $0xf0] sm:$0xff] %vm82_vm0, %v48_v57  ;;  %v3986_v58 = vld [vmem:[%s7918_s0 + $0x780] sm:$0xff]  ;;  %v3985_v59 = vld [vmem:[%s7918_s0 + $0x770] sm:$0xff] }
  0x1f   :  { %304 = vrot.lane.b32.xlu0 %v3973_v22, %s4670_s16  ;;  %v51_v60 = vld [vmem:[%s7918_s0 + $0x910] sm:$0xff]  ;;  %v50_v61 = vld [vmem:[%s7918_s0 + $0x900] sm:$0xff] }
  0x20   :  { %116 = vst.msk [vmem:[#allocation2 + $0x108] sm:$0xff] %vm82_vm0, %v51_v60  ;;  %115 = vst.msk [vmem:[#allocation2 + $0x100] sm:$0xff] %vm82_vm0, %v50_v61  ;;  %v3988_v62 = vld [vmem:[%s7918_s0 + $0x7a0] sm:$0xff]  ;;  %v3987_v63 = vld [vmem:[%s7918_s0 + $0x790] sm:$0xff] }
  0x21   :  { %v53_v0 = vld [vmem:[%s7918_s0 + $0x930] sm:$0xff]  ;;  %v52_v1 = vld [vmem:[%s7918_s0 + $0x920] sm:$0xff] }
  0x22   :  { %310 = vrot.lane.b32.xlu1 %v3976_v28, %s4670_s16  ;;  %118 = vst.msk [vmem:[#allocation2 + $0x118] sm:$0xff] %vm82_vm0, %v53_v0  ;;  %117 = vst.msk [vmem:[#allocation2 + $0x110] sm:$0xff] %vm82_vm0, %v52_v1  ;;  %v3990_v2 = vld [vmem:[%s7918_s0 + $0x7c0] sm:$0xff]  ;;  %v3989_v3 = vld [vmem:[%s7918_s0 + $0x7b0] sm:$0xff] }
  0x23   :  { %308 = vrot.lane.b32.xlu0 %v3975_v29, %s4670_s16  ;;  %v55_v4 = vld [vmem:[%s7918_s0 + $0x950] sm:$0xff]  ;;  %v54_v5 = vld [vmem:[%s7918_s0 + $0x940] sm:$0xff] }
  0x24   :  { %120 = vst.msk [vmem:[#allocation2 + $0x128] sm:$0xff] %vm82_vm0, %v55_v4  ;;  %119 = vst.msk [vmem:[#allocation2 + $0x120] sm:$0xff] %vm82_vm0, %v54_v5  ;;  %v3992_v6 = vld [vmem:[%s7918_s0 + $0x9a0] sm:$0xff]  ;;  %v3991_v7 = vld [vmem:[%s7918_s0 + $0x990] sm:$0xff] }
  0x25   :  { %v57_v8 = vld [vmem:[%s7918_s0 + $0x970] sm:$0xff]  ;;  %v56_v9 = vld [vmem:[%s7918_s0 + $0x960] sm:$0xff] }
  0x26   :  { %314 = vrot.lane.b32.xlu1 %v3978_v35, %s4670_s16  ;;  %122 = vst.msk [vmem:[#allocation2 + $0x138] sm:$0xff] %vm82_vm0, %v57_v8  ;;  %121 = vst.msk [vmem:[#allocation2 + $0x130] sm:$0xff] %vm82_vm0, %v56_v9  ;;  %v3994_v10 = vld [vmem:[%s7918_s0 + $0x9c0] sm:$0xff]  ;;  %v3993_v11 = vld [vmem:[%s7918_s0 + $0x9b0] sm:$0xff] }
  0x27   :  { %312 = vrot.lane.b32.xlu0 %v3977_v37, %s4670_s16  ;;  %v59_v12 = vld [vmem:[%s7918_s0 + $0xb50] sm:$0xff]  ;;  %v58_v13 = vld [vmem:[%s7918_s0 + $0xb40] sm:$0xff] }
  0x28   :  { %124 = vst.msk [vmem:[#allocation2 + $0x148] sm:$0xff] %vm82_vm0, %v59_v12  ;;  %123 = vst.msk [vmem:[#allocation2 + $0x140] sm:$0xff] %vm82_vm0, %v58_v13  ;;  %v3996_v14 = vld [vmem:[%s7918_s0 + $0x9e0] sm:$0xff]  ;;  %v3995_v15 = vld [vmem:[%s7918_s0 + $0x9d0] sm:$0xff] }
  0x29   :  { %v61_v16 = vld [vmem:[%s7918_s0 + $0xb70] sm:$0xff]  ;;  %v60_v17 = vld [vmem:[%s7918_s0 + $0xb60] sm:$0xff] }
  0x2a   :  { %318 = vrot.lane.b32.xlu1 %v3980_v44, %s4670_s16  ;;  %126 = vst.msk [vmem:[#allocation2 + $0x158] sm:$0xff] %vm82_vm0, %v61_v16  ;;  %125 = vst.msk [vmem:[#allocation2 + $0x150] sm:$0xff] %vm82_vm0, %v60_v17  ;;  %v3998_v18 = vld [vmem:[%s7918_s0 + $0xa00] sm:$0xff]  ;;  %v3997_v19 = vld [vmem:[%s7918_s0 + $0x9f0] sm:$0xff] }
  0x2b   :  { %316 = vrot.lane.b32.xlu0 %v3979_v45, %s4670_s16  ;;  %v63_v20 = vld [vmem:[%s7918_s0 + $0xb90] sm:$0xff]  ;;  %v62_v21 = vld [vmem:[%s7918_s0 + $0xb80] sm:$0xff] }
  0x2c   :  { %128 = vst.msk [vmem:[#allocation2 + $0x168] sm:$0xff] %vm82_vm0, %v63_v20  ;;  %127 = vst.msk [vmem:[#allocation2 + $0x160] sm:$0xff] %vm82_vm0, %v62_v21  ;;  %v4000_v22 = vld [vmem:[%s7918_s0 + $0xbe0] sm:$0xff]  ;;  %v3999_v23 = vld [vmem:[%s7918_s0 + $0xbd0] sm:$0xff] }
  0x2d   :  { %v65_v24 = vld [vmem:[%s7918_s0 + $0xbb0] sm:$0xff]  ;;  %v64_v25 = vld [vmem:[%s7918_s0 + $0xba0] sm:$0xff] }
  0x2e   :  { %322 = vrot.lane.b32.xlu1 %v3982_v50, %s4670_s16  ;;  %130 = vst.msk [vmem:[#allocation2 + $0x178] sm:$0xff] %vm82_vm0, %v65_v24  ;;  %129 = vst.msk [vmem:[#allocation2 + $0x170] sm:$0xff] %vm82_vm0, %v64_v25  ;;  %v4002_v26 = vld [vmem:[%s7918_s0 + $0xc00] sm:$0xff]  ;;  %v4001_v27 = vld [vmem:[%s7918_s0 + $0xbf0] sm:$0xff] }
  0x2f   :  { %320 = vrot.lane.b32.xlu0 %v3981_v51, %s4670_s16  ;;  %v67_v28 = vld [vmem:[%s7918_s0 + $0xd90] sm:$0xff]  ;;  %v66_v29 = vld [vmem:[%s7918_s0 + $0xd80] sm:$0xff] }
  0x30   :  { %132 = vst.msk [vmem:[#allocation2 + $0x188] sm:$0xff] %vm82_vm0, %v67_v28  ;;  %131 = vst.msk [vmem:[#allocation2 + $0x180] sm:$0xff] %vm82_vm0, %v66_v29  ;;  %v4004_v30 = vld [vmem:[%s7918_s0 + $0xc20] sm:$0xff]  ;;  %v4003_v31 = vld [vmem:[%s7918_s0 + $0xc10] sm:$0xff] }
  0x31   :  { %v69_v32 = vld [vmem:[%s7918_s0 + $0xdb0] sm:$0xff]  ;;  %v68_v33 = vld [vmem:[%s7918_s0 + $0xda0] sm:$0xff] }
  0x32   :  { %326 = vrot.lane.b32.xlu1 %v3984_v54, %s4670_s16  ;;  %134 = vst.msk [vmem:[#allocation2 + $0x198] sm:$0xff] %vm82_vm0, %v69_v32  ;;  %133 = vst.msk [vmem:[#allocation2 + $0x190] sm:$0xff] %vm82_vm0, %v68_v33  ;;  %v4006_v34 = vld [vmem:[%s7918_s0 + $0xc40] sm:$0xff]  ;;  %v4005_v35 = vld [vmem:[%s7918_s0 + $0xc30] sm:$0xff] }
  0x33   :  { %324 = vrot.lane.b32.xlu0 %v3983_v55, %s4670_s16  ;;  %v71_v36 = vld [vmem:[%s7918_s0 + $0xdd0] sm:$0xff]  ;;  %v70_v37 = vld [vmem:[%s7918_s0 + $0xdc0] sm:$0xff] }
  0x34   :  { %136 = vst.msk [vmem:[#allocation2 + $0x1a8] sm:$0xff] %vm82_vm0, %v71_v36  ;;  %135 = vst.msk [vmem:[#allocation2 + $0x1a0] sm:$0xff] %vm82_vm0, %v70_v37  ;;  %v4008_v38 = vld [vmem:[%s7918_s0 + $0xe20] sm:$0xff]  ;;  %v4007_v39 = vld [vmem:[%s7918_s0 + $0xe10] sm:$0xff] }
  0x35   :  { %v73_v40 = vld [vmem:[%s7918_s0 + $0xdf0] sm:$0xff]  ;;  %v72_v41 = vld [vmem:[%s7918_s0 + $0xde0] sm:$0xff] }
  0x36   :  { %330 = vrot.lane.b32.xlu1 %v3986_v58, %s4670_s16  ;;  %138 = vst.msk [vmem:[#allocation2 + $0x1b8] sm:$0xff] %vm82_vm0, %v73_v40  ;;  %137 = vst.msk [vmem:[#allocation2 + $0x1b0] sm:$0xff] %vm82_vm0, %v72_v41  ;;  %v4010_v42 = vld [vmem:[%s7918_s0 + $0xe40] sm:$0xff]  ;;  %v4009_v43 = vld [vmem:[%s7918_s0 + $0xe30] sm:$0xff] }
  0x37   :  { %328 = vrot.lane.b32.xlu0 %v3985_v59, %s4670_s16  ;;  %v75_v44 = vld [vmem:[%s7918_s0 + $0xfd0] sm:$0xff]  ;;  %v74_v45 = vld [vmem:[%s7918_s0 + $0xfc0] sm:$0xff] }
  0x38   :  { %140 = vst.msk [vmem:[#allocation2 + $0x1c8] sm:$0xff] %vm82_vm0, %v75_v44  ;;  %139 = vst.msk [vmem:[#allocation2 + $0x1c0] sm:$0xff] %vm82_vm0, %v74_v45  ;;  %v4012_v46 = vld [vmem:[%s7918_s0 + $0xe60] sm:$0xff]  ;;  %v4011_v47 = vld [vmem:[%s7918_s0 + $0xe50] sm:$0xff] }
  0x39   :  { %v77_v48 = vld [vmem:[%s7918_s0 + $0xff0] sm:$0xff]  ;;  %v76_v49 = vld [vmem:[%s7918_s0 + $0xfe0] sm:$0xff] }
  0x3a   :  { %334 = vrot.lane.b32.xlu1 %v3988_v62, %s4670_s16  ;;  %142 = vst.msk [vmem:[#allocation2 + $0x1d8] sm:$0xff] %vm82_vm0, %v77_v48  ;;  %141 = vst.msk [vmem:[#allocation2 + $0x1d0] sm:$0xff] %vm82_vm0, %v76_v49  ;;  %v4014_v50 = vld [vmem:[%s7918_s0 + $0xe80] sm:$0xff]  ;;  %v4013_v51 = vld [vmem:[%s7918_s0 + $0xe70] sm:$0xff] }
  0x3b   :  { %332 = vrot.lane.b32.xlu0 %v3987_v63, %s4670_s16  ;;  %v79_v52 = vld [vmem:[%s7918_s0 + $0x1010] sm:$0xff]  ;;  %v78_v53 = vld [vmem:[%s7918_s0 + $0x1000] sm:$0xff] }
  0x3c   :  { %144 = vst.msk [vmem:[#allocation2 + $0x1e8] sm:$0xff] %vm82_vm0, %v79_v52  ;;  %143 = vst.msk [vmem:[#allocation2 + $0x1e0] sm:$0xff] %vm82_vm0, %v78_v53  ;;  %v4016_v54 = vld [vmem:[%s7918_s0 + $0x1060] sm:$0xff]  ;;  %v4015_v55 = vld [vmem:[%s7918_s0 + $0x1050] sm:$0xff] }
  0x3d   :  { %v81_v56 = vld [vmem:[%s7918_s0 + $0x1030] sm:$0xff]  ;;  %v80_v57 = vld [vmem:[%s7918_s0 + $0x1020] sm:$0xff] }
  0x3e   :  { %338 = vrot.lane.b32.xlu1 %v3990_v2, %s4670_s16  ;;  %146 = vst.msk [vmem:[#allocation2 + $0x1f8] sm:$0xff] %vm82_vm0, %v81_v56  ;;  %145 = vst.msk [vmem:[#allocation2 + $0x1f0] sm:$0xff] %vm82_vm0, %v80_v57  ;;  %v4018_v58 = vld [vmem:[%s7918_s0 + $0x1080] sm:$0xff]  ;;  %v4017_v59 = vld [vmem:[%s7918_s0 + $0x1070] sm:$0xff] }
  0x3f   :  { %336 = vrot.lane.b32.xlu0 %v3989_v3, %s4670_s16  ;;  %v4020_v62 = vld [vmem:[%s7918_s0 + $0x10a0] sm:$0xff]  ;;  %v4019_v63 = vld [vmem:[%s7918_s0 + $0x1090] sm:$0xff] }
  0x40   :  { %v4022_v2 = vld [vmem:[%s7918_s0 + $0x10c0] sm:$0xff]  ;;  %v4021_v3 = vld [vmem:[%s7918_s0 + $0x10b0] sm:$0xff] }
  0x42   :  { %342 = vrot.lane.b32.xlu1 %v3992_v6, %s4670_s16  ;;  %v534_v6 = vld [vmem:[%s7918_s0 + $0x11] sm:$0xff] }
  0x43   :  { %340 = vrot.lane.b32.xlu0 %v3991_v7, %s4670_s16  ;;  %v533_v7 = vld [vmem:[%s7918_s0 + $0x1] sm:$0xff] }
  0x46   :  { %346 = vrot.lane.b32.xlu1 %v3994_v10, %s4670_s16  ;;  %v536_v10 = vld [vmem:[%s7918_s0 + $0x31] sm:$0xff] }
  0x47   :  { %344 = vrot.lane.b32.xlu0 %v3993_v11, %s4670_s16  ;;  %v535_v11 = vld [vmem:[%s7918_s0 + $0x21] sm:$0xff] }
  0x4a   :  { %350 = vrot.lane.b32.xlu1 %v3996_v14, %s4670_s16  ;;  %v538_v14 = vld [vmem:[%s7918_s0 + $0x51] sm:$0xff] }
  0x4b   :  { %348 = vrot.lane.b32.xlu0 %v3995_v15, %s4670_s16  ;;  %v537_v15 = vld [vmem:[%s7918_s0 + $0x41] sm:$0xff] }
  0x4e   :  { %354 = vrot.lane.b32.xlu1 %v3998_v18, %s4670_s16  ;;  %v540_v18 = vld [vmem:[%s7918_s0 + $0x71] sm:$0xff] }
  0x4f   :  { %352 = vrot.lane.b32.xlu0 %v3997_v19, %s4670_s16  ;;  %v539_v19 = vld [vmem:[%s7918_s0 + $0x61] sm:$0xff] }
  0x52   :  { %358 = vrot.lane.b32.xlu1 %v4000_v22, %s4670_s16  ;;  %v542_v22 = vld [vmem:[%s7918_s0 + $0x251] sm:$0xff] }
  0x53   :  { %356 = vrot.lane.b32.xlu0 %v3999_v23, %s4670_s16  ;;  %v541_v23 = vld [vmem:[%s7918_s0 + $0x241] sm:$0xff] }
  0x56   :  { %362 = vrot.lane.b32.xlu1 %v4002_v26, %s4670_s16  ;;  %v544_v26 = vld [vmem:[%s7918_s0 + $0x271] sm:$0xff] }
  0x57   :  { %360 = vrot.lane.b32.xlu0 %v4001_v27, %s4670_s16  ;;  %v543_v27 = vld [vmem:[%s7918_s0 + $0x261] sm:$0xff] }
  0x5a   :  { %366 = vrot.lane.b32.xlu1 %v4004_v30, %s4670_s16  ;;  %v546_v30 = vld [vmem:[%s7918_s0 + $0x291] sm:$0xff] }
  0x5b   :  { %364 = vrot.lane.b32.xlu0 %v4003_v31, %s4670_s16  ;;  %v545_v31 = vld [vmem:[%s7918_s0 + $0x281] sm:$0xff] }
  0x5e   :  { %370 = vrot.lane.b32.xlu1 %v4006_v34, %s4670_s16  ;;  %v548_v34 = vld [vmem:[%s7918_s0 + $0x2b1] sm:$0xff] }
  0x5f   :  { %368 = vrot.lane.b32.xlu0 %v4005_v35, %s4670_s16  ;;  %v547_v35 = vld [vmem:[%s7918_s0 + $0x2a1] sm:$0xff] }
  0x62   :  { %374 = vrot.lane.b32.xlu1 %v4008_v38, %s4670_s16  ;;  %v550_v38 = vld [vmem:[%s7918_s0 + $0x491] sm:$0xff] }
  0x63   :  { %372 = vrot.lane.b32.xlu0 %v4007_v39, %s4670_s16  ;;  %v549_v39 = vld [vmem:[%s7918_s0 + $0x481] sm:$0xff] }
  0x66   :  { %378 = vrot.lane.b32.xlu1 %v4010_v42, %s4670_s16  ;;  %v552_v42 = vld [vmem:[%s7918_s0 + $0x4b1] sm:$0xff] }
  0x67   :  { %376 = vrot.lane.b32.xlu0 %v4009_v43, %s4670_s16  ;;  %v551_v43 = vld [vmem:[%s7918_s0 + $0x4a1] sm:$0xff] }
  0x6a   :  { %382 = vrot.lane.b32.xlu1 %v4012_v46, %s4670_s16  ;;  %v554_v46 = vld [vmem:[%s7918_s0 + $0x4d1] sm:$0xff] }
  0x6b   :  { %380 = vrot.lane.b32.xlu0 %v4011_v47, %s4670_s16  ;;  %v553_v47 = vld [vmem:[%s7918_s0 + $0x4c1] sm:$0xff] }
  0x6e   :  { %386 = vrot.lane.b32.xlu1 %v4014_v50, %s4670_s16  ;;  %v556_v50 = vld [vmem:[%s7918_s0 + $0x4f1] sm:$0xff] }
  0x6f   :  { %384 = vrot.lane.b32.xlu0 %v4013_v51, %s4670_s16  ;;  %v555_v51 = vld [vmem:[%s7918_s0 + $0x4e1] sm:$0xff] }
  0x72   :  { %390 = vrot.lane.b32.xlu1 %v4016_v54, %s4670_s16  ;;  %v558_v54 = vld [vmem:[%s7918_s0 + $0x6d1] sm:$0xff] }
  0x73   :  { %388 = vrot.lane.b32.xlu0 %v4015_v55, %s4670_s16  ;;  %v557_v55 = vld [vmem:[%s7918_s0 + $0x6c1] sm:$0xff] }
  0x74   :  { %v281_v60 = vpop.permute.xlu1 %280 }
  0x75   :  { %v277_v61 = vpop.permute.xlu0 %276  ;;  %471 = vst.msk [vmem:[#allocation2 + $0x10] sm:$0xff] %vm468_vm1, %v281_v60 }
  0x76   :  { %469 = vst.msk [vmem:[#allocation2] sm:$0xff] %vm468_vm1, %v277_v61  ;;  %394 = vrot.lane.b32.xlu1 %v4018_v58, %s4670_s16  ;;  %v560_v58 = vld [vmem:[%s7918_s0 + $0x6f1] sm:$0xff] }
  0x77   :  { %392 = vrot.lane.b32.xlu0 %v4017_v59, %s4670_s16  ;;  %v559_v59 = vld [vmem:[%s7918_s0 + $0x6e1] sm:$0xff] }
  0x78   :  { %v283_v0 = vpop.permute.xlu1 %282 }
  0x79   :  { %v279_v1 = vpop.permute.xlu0 %278  ;;  %472 = vst.msk [vmem:[#allocation2 + $0x18] sm:$0xff] %vm468_vm1, %v283_v0 }
  0x7a   :  { %470 = vst.msk [vmem:[#allocation2 + $0x8] sm:$0xff] %vm468_vm1, %v279_v1  ;;  %398 = vrot.lane.b32.xlu1 %v4020_v62, %s4670_s16  ;;  %v562_v62 = vld [vmem:[%s7918_s0 + $0x711] sm:$0xff] }
  0x7b   :  { %396 = vrot.lane.b32.xlu0 %v4019_v63, %s4670_s16  ;;  %v561_v63 = vld [vmem:[%s7918_s0 + $0x701] sm:$0xff] }
  0x7c   :  { %v287_v4 = vpop.permute.xlu1 %286 }
  0x7d   :  { %v285_v5 = vpop.permute.xlu0 %284  ;;  %474 = vst.msk [vmem:[#allocation2 + $0x28] sm:$0xff] %vm468_vm1, %v287_v4 }
  0x7e   :  { %473 = vst.msk [vmem:[#allocation2 + $0x20] sm:$0xff] %vm468_vm1, %v285_v5  ;;  %402 = vrot.lane.b32.xlu1 %v4022_v2, %s4670_s16  ;;  %v564_v2 = vld [vmem:[%s7918_s0 + $0x731] sm:$0xff] }
  0x7f   :  { %400 = vrot.lane.b32.xlu0 %v4021_v3, %s4670_s16  ;;  %v563_v3 = vld [vmem:[%s7918_s0 + $0x721] sm:$0xff] }
  0x80   :  { %v291_v8 = vpop.permute.xlu1 %290 }
  0x81   :  { %v289_v9 = vpop.permute.xlu0 %288  ;;  %476 = vst.msk [vmem:[#allocation2 + $0x38] sm:$0xff] %vm468_vm1, %v291_v8 }
  0x82   :  { %475 = vst.msk [vmem:[#allocation2 + $0x30] sm:$0xff] %vm468_vm1, %v289_v9  ;;  %663 = vrot.lane.b32.xlu1 %v534_v6, %s4671_s12  ;;  %v566_v6 = vld [vmem:[%s7918_s0 + $0x911] sm:$0xff] }
  0x83   :  { %661 = vrot.lane.b32.xlu0 %v533_v7, %s4671_s12  ;;  %v565_v7 = vld [vmem:[%s7918_s0 + $0x901] sm:$0xff] }
  0x84   :  { %v295_v12 = vpop.permute.xlu1 %294 }
  0x85   :  { %v293_v13 = vpop.permute.xlu0 %292  ;;  %478 = vst.msk [vmem:[#allocation2 + $0x48] sm:$0xff] %vm468_vm1, %v295_v12 }
  0x86   :  { %477 = vst.msk [vmem:[#allocation2 + $0x40] sm:$0xff] %vm468_vm1, %v293_v13  ;;  %667 = vrot.lane.b32.xlu1 %v536_v10, %s4671_s12  ;;  %v568_v10 = vld [vmem:[%s7918_s0 + $0x931] sm:$0xff] }
  0x87   :  { %665 = vrot.lane.b32.xlu0 %v535_v11, %s4671_s12  ;;  %v567_v11 = vld [vmem:[%s7918_s0 + $0x921] sm:$0xff] }
  0x88   :  { %v299_v16 = vpop.permute.xlu1 %298 }
  0x89   :  { %v297_v17 = vpop.permute.xlu0 %296  ;;  %480 = vst.msk [vmem:[#allocation2 + $0x58] sm:$0xff] %vm468_vm1, %v299_v16 }
  0x8a   :  { %479 = vst.msk [vmem:[#allocation2 + $0x50] sm:$0xff] %vm468_vm1, %v297_v17  ;;  %671 = vrot.lane.b32.xlu1 %v538_v14, %s4671_s12  ;;  %v570_v14 = vld [vmem:[%s7918_s0 + $0x951] sm:$0xff] }
  0x8b   :  { %669 = vrot.lane.b32.xlu0 %v537_v15, %s4671_s12  ;;  %v569_v15 = vld [vmem:[%s7918_s0 + $0x941] sm:$0xff] }
  0x8c   :  { %v303_v20 = vpop.permute.xlu1 %302 }
  0x8d   :  { %v301_v21 = vpop.permute.xlu0 %300  ;;  %482 = vst.msk [vmem:[#allocation2 + $0x68] sm:$0xff] %vm468_vm1, %v303_v20 }
  0x8e   :  { %481 = vst.msk [vmem:[#allocation2 + $0x60] sm:$0xff] %vm468_vm1, %v301_v21  ;;  %675 = vrot.lane.b32.xlu1 %v540_v18, %s4671_s12  ;;  %v572_v18 = vld [vmem:[%s7918_s0 + $0x971] sm:$0xff] }
  0x8f   :  { %673 = vrot.lane.b32.xlu0 %v539_v19, %s4671_s12  ;;  %v571_v19 = vld [vmem:[%s7918_s0 + $0x961] sm:$0xff] }
  0x90   :  { %v307_v24 = vpop.permute.xlu1 %306 }
  0x91   :  { %v305_v25 = vpop.permute.xlu0 %304  ;;  %484 = vst.msk [vmem:[#allocation2 + $0x78] sm:$0xff] %vm468_vm1, %v307_v24 }
  0x92   :  { %483 = vst.msk [vmem:[#allocation2 + $0x70] sm:$0xff] %vm468_vm1, %v305_v25  ;;  %679 = vrot.lane.b32.xlu1 %v542_v22, %s4671_s12  ;;  %v574_v22 = vld [vmem:[%s7918_s0 + $0xb51] sm:$0xff] }
  0x93   :  { %677 = vrot.lane.b32.xlu0 %v541_v23, %s4671_s12  ;;  %v573_v23 = vld [vmem:[%s7918_s0 + $0xb41] sm:$0xff] }
  0x94   :  { %v311_v28 = vpop.permute.xlu1 %310 }
  0x95   :  { %v309_v29 = vpop.permute.xlu0 %308  ;;  %486 = vst.msk [vmem:[#allocation2 + $0x88] sm:$0xff] %vm468_vm1, %v311_v28 }
  0x96   :  { %485 = vst.msk [vmem:[#allocation2 + $0x80] sm:$0xff] %vm468_vm1, %v309_v29  ;;  %683 = vrot.lane.b32.xlu1 %v544_v26, %s4671_s12  ;;  %v576_v26 = vld [vmem:[%s7918_s0 + $0xb71] sm:$0xff] }
  0x97   :  { %681 = vrot.lane.b32.xlu0 %v543_v27, %s4671_s12  ;;  %v575_v27 = vld [vmem:[%s7918_s0 + $0xb61] sm:$0xff] }
  0x98   :  { %v315_v32 = vpop.permute.xlu1 %314 }
  0x99   :  { %v313_v33 = vpop.permute.xlu0 %312  ;;  %488 = vst.msk [vmem:[#allocation2 + $0x98] sm:$0xff] %vm468_vm1, %v315_v32 }
  0x9a   :  { %487 = vst.msk [vmem:[#allocation2 + $0x90] sm:$0xff] %vm468_vm1, %v313_v33  ;;  %687 = vrot.lane.b32.xlu1 %v546_v30, %s4671_s12  ;;  %v578_v30 = vld [vmem:[%s7918_s0 + $0xb91] sm:$0xff] }
  0x9b   :  { %685 = vrot.lane.b32.xlu0 %v545_v31, %s4671_s12  ;;  %v577_v31 = vld [vmem:[%s7918_s0 + $0xb81] sm:$0xff] }
  0x9c   :  { %v319_v36 = vpop.permute.xlu1 %318 }
  0x9d   :  { %v317_v37 = vpop.permute.xlu0 %316  ;;  %490 = vst.msk [vmem:[#allocation2 + $0xa8] sm:$0xff] %vm468_vm1, %v319_v36 }
  0x9e   :  { %489 = vst.msk [vmem:[#allocation2 + $0xa0] sm:$0xff] %vm468_vm1, %v317_v37  ;;  %691 = vrot.lane.b32.xlu1 %v548_v34, %s4671_s12  ;;  %v580_v34 = vld [vmem:[%s7918_s0 + $0xbb1] sm:$0xff] }
  0x9f   :  { %689 = vrot.lane.b32.xlu0 %v547_v35, %s4671_s12  ;;  %v579_v35 = vld [vmem:[%s7918_s0 + $0xba1] sm:$0xff] }
  0xa0   :  { %v323_v40 = vpop.permute.xlu1 %322 }
  0xa1   :  { %v321_v41 = vpop.permute.xlu0 %320  ;;  %492 = vst.msk [vmem:[#allocation2 + $0xb8] sm:$0xff] %vm468_vm1, %v323_v40 }
  0xa2   :  { %491 = vst.msk [vmem:[#allocation2 + $0xb0] sm:$0xff] %vm468_vm1, %v321_v41  ;;  %695 = vrot.lane.b32.xlu1 %v550_v38, %s4671_s12  ;;  %v582_v38 = vld [vmem:[%s7918_s0 + $0xd91] sm:$0xff] }
  0xa3   :  { %693 = vrot.lane.b32.xlu0 %v549_v39, %s4671_s12  ;;  %v581_v39 = vld [vmem:[%s7918_s0 + $0xd81] sm:$0xff] }
  0xa4   :  { %v327_v44 = vpop.permute.xlu1 %326 }
  0xa5   :  { %v325_v45 = vpop.permute.xlu0 %324  ;;  %494 = vst.msk [vmem:[#allocation2 + $0xc8] sm:$0xff] %vm468_vm1, %v327_v44 }
  0xa6   :  { %493 = vst.msk [vmem:[#allocation2 + $0xc0] sm:$0xff] %vm468_vm1, %v325_v45  ;;  %699 = vrot.lane.b32.xlu1 %v552_v42, %s4671_s12  ;;  %v584_v42 = vld [vmem:[%s7918_s0 + $0xdb1] sm:$0xff] }
  0xa7   :  { %697 = vrot.lane.b32.xlu0 %v551_v43, %s4671_s12  ;;  %v583_v43 = vld [vmem:[%s7918_s0 + $0xda1] sm:$0xff] }
  0xa8   :  { %v331_v48 = vpop.permute.xlu1 %330 }
  0xa9   :  { %v329_v49 = vpop.permute.xlu0 %328  ;;  %496 = vst.msk [vmem:[#allocation2 + $0xd8] sm:$0xff] %vm468_vm1, %v331_v48 }
  0xaa   :  { %495 = vst.msk [vmem:[#allocation2 + $0xd0] sm:$0xff] %vm468_vm1, %v329_v49  ;;  %703 = vrot.lane.b32.xlu1 %v554_v46, %s4671_s12  ;;  %v586_v46 = vld [vmem:[%s7918_s0 + $0xdd1] sm:$0xff] }
  0xab   :  { %701 = vrot.lane.b32.xlu0 %v553_v47, %s4671_s12  ;;  %v585_v47 = vld [vmem:[%s7918_s0 + $0xdc1] sm:$0xff] }
  0xac   :  { %v335_v52 = vpop.permute.xlu1 %334 }
  0xad   :  { %v333_v53 = vpop.permute.xlu0 %332  ;;  %498 = vst.msk [vmem:[#allocation2 + $0xe8] sm:$0xff] %vm468_vm1, %v335_v52 }
  0xae   :  { %497 = vst.msk [vmem:[#allocation2 + $0xe0] sm:$0xff] %vm468_vm1, %v333_v53  ;;  %707 = vrot.lane.b32.xlu1 %v556_v50, %s4671_s12  ;;  %v588_v50 = vld [vmem:[%s7918_s0 + $0xdf1] sm:$0xff] }
  0xaf   :  { %705 = vrot.lane.b32.xlu0 %v555_v51, %s4671_s12  ;;  %v587_v51 = vld [vmem:[%s7918_s0 + $0xde1] sm:$0xff] }
  0xb0   :  { %v339_v56 = vpop.permute.xlu1 %338 }
  0xb1   :  { %v337_v57 = vpop.permute.xlu0 %336  ;;  %500 = vst.msk [vmem:[#allocation2 + $0xf8] sm:$0xff] %vm468_vm1, %v339_v56 }
  0xb2   :  { %499 = vst.msk [vmem:[#allocation2 + $0xf0] sm:$0xff] %vm468_vm1, %v337_v57  ;;  %711 = vrot.lane.b32.xlu1 %v558_v54, %s4671_s12  ;;  %v590_v54 = vld [vmem:[%s7918_s0 + $0xfd1] sm:$0xff] }
  0xb3   :  { %709 = vrot.lane.b32.xlu0 %v557_v55, %s4671_s12  ;;  %v589_v55 = vld [vmem:[%s7918_s0 + $0xfc1] sm:$0xff] }
  0xb4   :  { %v343_v60 = vpop.permute.xlu1 %342 }
  0xb5   :  { %v341_v61 = vpop.permute.xlu0 %340  ;;  %502 = vst.msk [vmem:[#allocation2 + $0x108] sm:$0xff] %vm468_vm1, %v343_v60 }
  0xb6   :  { %501 = vst.msk [vmem:[#allocation2 + $0x100] sm:$0xff] %vm468_vm1, %v341_v61  ;;  %715 = vrot.lane.b32.xlu1 %v560_v58, %s4671_s12  ;;  %v592_v58 = vld [vmem:[%s7918_s0 + $0xff1] sm:$0xff] }
  0xb7   :  { %713 = vrot.lane.b32.xlu0 %v559_v59, %s4671_s12  ;;  %v591_v59 = vld [vmem:[%s7918_s0 + $0xfe1] sm:$0xff] }
  0xb8   :  { %v347_v0 = vpop.permute.xlu1 %346 }
  0xb9   :  { %v345_v1 = vpop.permute.xlu0 %344  ;;  %504 = vst.msk [vmem:[#allocation2 + $0x118] sm:$0xff] %vm468_vm1, %v347_v0 }
  0xba   :  { %503 = vst.msk [vmem:[#allocation2 + $0x110] sm:$0xff] %vm468_vm1, %v345_v1  ;;  %719 = vrot.lane.b32.xlu1 %v562_v62, %s4671_s12  ;;  %v594_v62 = vld [vmem:[%s7918_s0 + $0x1011] sm:$0xff] }
  0xbb   :  { %717 = vrot.lane.b32.xlu0 %v561_v63, %s4671_s12  ;;  %v593_v63 = vld [vmem:[%s7918_s0 + $0x1001] sm:$0xff] }
  0xbc   :  { %v351_v4 = vpop.permute.xlu1 %350 }
  0xbd   :  { %v349_v5 = vpop.permute.xlu0 %348  ;;  %506 = vst.msk [vmem:[#allocation2 + $0x128] sm:$0xff] %vm468_vm1, %v351_v4 }
  0xbe   :  { %505 = vst.msk [vmem:[#allocation2 + $0x120] sm:$0xff] %vm468_vm1, %v349_v5  ;;  %723 = vrot.lane.b32.xlu1 %v564_v2, %s4671_s12  ;;  %v596_v2 = vld [vmem:[%s7918_s0 + $0x1031] sm:$0xff] }
  0xbf   :  { %721 = vrot.lane.b32.xlu0 %v563_v3, %s4671_s12  ;;  %v595_v3 = vld [vmem:[%s7918_s0 + $0x1021] sm:$0xff] }
  0xc0   :  { %v355_v8 = vpop.permute.xlu1 %354 }
  0xc1   :  { %v353_v9 = vpop.permute.xlu0 %352  ;;  %508 = vst.msk [vmem:[#allocation2 + $0x138] sm:$0xff] %vm468_vm1, %v355_v8 }
  0xc2   :  { %507 = vst.msk [vmem:[#allocation2 + $0x130] sm:$0xff] %vm468_vm1, %v353_v9  ;;  %727 = vrot.lane.b32.xlu1 %v566_v6, %s4671_s12  ;;  %v4024_v6 = vld [vmem:[%s7918_s0 + $0x130] sm:$0xff] }
  0xc3   :  { %725 = vrot.lane.b32.xlu0 %v565_v7, %s4671_s12  ;;  %v4023_v7 = vld [vmem:[%s7918_s0 + $0x120] sm:$0xff] }
  0xc4   :  { %v359_v12 = vpop.permute.xlu1 %358 }
  0xc5   :  { %v357_v13 = vpop.permute.xlu0 %356  ;;  %510 = vst.msk [vmem:[#allocation2 + $0x148] sm:$0xff] %vm468_vm1, %v359_v12 }
  0xc6   :  { %509 = vst.msk [vmem:[#allocation2 + $0x140] sm:$0xff] %vm468_vm1, %v357_v13  ;;  %731 = vrot.lane.b32.xlu1 %v568_v10, %s4671_s12  ;;  %v4026_v10 = vld [vmem:[%s7918_s0 + $0x150] sm:$0xff] }
  0xc7   :  { %729 = vrot.lane.b32.xlu0 %v567_v11, %s4671_s12  ;;  %v4025_v11 = vld [vmem:[%s7918_s0 + $0x140] sm:$0xff] }
  0xc8   :  { %v363_v16 = vpop.permute.xlu1 %362 }
  0xc9   :  { %v361_v17 = vpop.permute.xlu0 %360  ;;  %512 = vst.msk [vmem:[#allocation2 + $0x158] sm:$0xff] %vm468_vm1, %v363_v16 }
  0xca   :  { %511 = vst.msk [vmem:[#allocation2 + $0x150] sm:$0xff] %vm468_vm1, %v361_v17  ;;  %735 = vrot.lane.b32.xlu1 %v570_v14, %s4671_s12  ;;  %v4028_v14 = vld [vmem:[%s7918_s0 + $0x170] sm:$0xff] }
  0xcb   :  { %733 = vrot.lane.b32.xlu0 %v569_v15, %s4671_s12  ;;  %v4027_v15 = vld [vmem:[%s7918_s0 + $0x160] sm:$0xff] }
  0xcc   :  { %v367_v20 = vpop.permute.xlu1 %366 }
  0xcd   :  { %v365_v21 = vpop.permute.xlu0 %364  ;;  %514 = vst.msk [vmem:[#allocation2 + $0x168] sm:$0xff] %vm468_vm1, %v367_v20 }
  0xce   :  { %513 = vst.msk [vmem:[#allocation2 + $0x160] sm:$0xff] %vm468_vm1, %v365_v21  ;;  %739 = vrot.lane.b32.xlu1 %v572_v18, %s4671_s12  ;;  %v4030_v18 = vld [vmem:[%s7918_s0 + $0x190] sm:$0xff] }
  0xcf   :  { %737 = vrot.lane.b32.xlu0 %v571_v19, %s4671_s12  ;;  %v4029_v19 = vld [vmem:[%s7918_s0 + $0x180] sm:$0xff] }
  0xd0   :  { %v371_v24 = vpop.permute.xlu1 %370 }
  0xd1   :  { %v369_v25 = vpop.permute.xlu0 %368  ;;  %516 = vst.msk [vmem:[#allocation2 + $0x178] sm:$0xff] %vm468_vm1, %v371_v24 }
  0xd2   :  { %515 = vst.msk [vmem:[#allocation2 + $0x170] sm:$0xff] %vm468_vm1, %v369_v25  ;;  %743 = vrot.lane.b32.xlu1 %v574_v22, %s4671_s12  ;;  %v4032_v22 = vld [vmem:[%s7918_s0 + $0x370] sm:$0xff] }
  0xd3   :  { %741 = vrot.lane.b32.xlu0 %v573_v23, %s4671_s12  ;;  %v4031_v23 = vld [vmem:[%s7918_s0 + $0x360] sm:$0xff] }
  0xd4   :  { %v375_v28 = vpop.permute.xlu1 %374 }
  0xd5   :  { %v373_v29 = vpop.permute.xlu0 %372  ;;  %518 = vst.msk [vmem:[#allocation2 + $0x188] sm:$0xff] %vm468_vm1, %v375_v28 }
  0xd6   :  { %517 = vst.msk [vmem:[#allocation2 + $0x180] sm:$0xff] %vm468_vm1, %v373_v29  ;;  %747 = vrot.lane.b32.xlu1 %v576_v26, %s4671_s12  ;;  %v4034_v26 = vld [vmem:[%s7918_s0 + $0x390] sm:$0xff] }
  0xd7   :  { %745 = vrot.lane.b32.xlu0 %v575_v27, %s4671_s12  ;;  %v4033_v27 = vld [vmem:[%s7918_s0 + $0x380] sm:$0xff] }
  0xd8   :  { %v379_v32 = vpop.permute.xlu1 %378 }
  0xd9   :  { %v377_v33 = vpop.permute.xlu0 %376  ;;  %520 = vst.msk [vmem:[#allocation2 + $0x198] sm:$0xff] %vm468_vm1, %v379_v32 }
  0xda   :  { %519 = vst.msk [vmem:[#allocation2 + $0x190] sm:$0xff] %vm468_vm1, %v377_v33  ;;  %751 = vrot.lane.b32.xlu1 %v578_v30, %s4671_s12  ;;  %v4036_v30 = vld [vmem:[%s7918_s0 + $0x3b0] sm:$0xff] }
  0xdb   :  { %749 = vrot.lane.b32.xlu0 %v577_v31, %s4671_s12  ;;  %v4035_v31 = vld [vmem:[%s7918_s0 + $0x3a0] sm:$0xff] }
  0xdc   :  { %v383_v36 = vpop.permute.xlu1 %382 }
  0xdd   :  { %v381_v37 = vpop.permute.xlu0 %380  ;;  %522 = vst.msk [vmem:[#allocation2 + $0x1a8] sm:$0xff] %vm468_vm1, %v383_v36 }
  0xde   :  { %521 = vst.msk [vmem:[#allocation2 + $0x1a0] sm:$0xff] %vm468_vm1, %v381_v37  ;;  %755 = vrot.lane.b32.xlu1 %v580_v34, %s4671_s12  ;;  %v4038_v34 = vld [vmem:[%s7918_s0 + $0x3d0] sm:$0xff] }
  0xdf   :  { %753 = vrot.lane.b32.xlu0 %v579_v35, %s4671_s12  ;;  %v4037_v35 = vld [vmem:[%s7918_s0 + $0x3c0] sm:$0xff] }
  0xe0   :  { %v387_v40 = vpop.permute.xlu1 %386 }
  0xe1   :  { %v385_v41 = vpop.permute.xlu0 %384  ;;  %524 = vst.msk [vmem:[#allocation2 + $0x1b8] sm:$0xff] %vm468_vm1, %v387_v40 }
  0xe2   :  { %523 = vst.msk [vmem:[#allocation2 + $0x1b0] sm:$0xff] %vm468_vm1, %v385_v41  ;;  %759 = vrot.lane.b32.xlu1 %v582_v38, %s4671_s12  ;;  %v4040_v38 = vld [vmem:[%s7918_s0 + $0x5b0] sm:$0xff] }
  0xe3   :  { %757 = vrot.lane.b32.xlu0 %v581_v39, %s4671_s12  ;;  %v4039_v39 = vld [vmem:[%s7918_s0 + $0x5a0] sm:$0xff] }
  0xe4   :  { %v391_v44 = vpop.permute.xlu1 %390 }
  0xe5   :  { %v389_v45 = vpop.permute.xlu0 %388  ;;  %526 = vst.msk [vmem:[#allocation2 + $0x1c8] sm:$0xff] %vm468_vm1, %v391_v44 }
  0xe6   :  { %525 = vst.msk [vmem:[#allocation2 + $0x1c0] sm:$0xff] %vm468_vm1, %v389_v45  ;;  %763 = vrot.lane.b32.xlu1 %v584_v42, %s4671_s12  ;;  %v4042_v42 = vld [vmem:[%s7918_s0 + $0x5d0] sm:$0xff] }
  0xe7   :  { %761 = vrot.lane.b32.xlu0 %v583_v43, %s4671_s12  ;;  %v4041_v43 = vld [vmem:[%s7918_s0 + $0x5c0] sm:$0xff] }
  0xe8   :  { %v395_v48 = vpop.permute.xlu1 %394 }
  0xe9   :  { %v393_v49 = vpop.permute.xlu0 %392  ;;  %528 = vst.msk [vmem:[#allocation2 + $0x1d8] sm:$0xff] %vm468_vm1, %v395_v48 }
  0xea   :  { %527 = vst.msk [vmem:[#allocation2 + $0x1d0] sm:$0xff] %vm468_vm1, %v393_v49  ;;  %767 = vrot.lane.b32.xlu1 %v586_v46, %s4671_s12  ;;  %v4044_v46 = vld [vmem:[%s7918_s0 + $0x5f0] sm:$0xff] }
  0xeb   :  { %765 = vrot.lane.b32.xlu0 %v585_v47, %s4671_s12  ;;  %v4043_v47 = vld [vmem:[%s7918_s0 + $0x5e0] sm:$0xff] }
  0xec   :  { %v399_v52 = vpop.permute.xlu1 %398 }
  0xed   :  { %v397_v53 = vpop.permute.xlu0 %396  ;;  %530 = vst.msk [vmem:[#allocation2 + $0x1e8] sm:$0xff] %vm468_vm1, %v399_v52 }
  0xee   :  { %529 = vst.msk [vmem:[#allocation2 + $0x1e0] sm:$0xff] %vm468_vm1, %v397_v53  ;;  %771 = vrot.lane.b32.xlu1 %v588_v50, %s4671_s12  ;;  %v4046_v50 = vld [vmem:[%s7918_s0 + $0x610] sm:$0xff] }
  0xef   :  { %769 = vrot.lane.b32.xlu0 %v587_v51, %s4671_s12  ;;  %v4045_v51 = vld [vmem:[%s7918_s0 + $0x600] sm:$0xff] }
  0xf0   :  { %v403_v56 = vpop.permute.xlu1 %402 }
  0xf1   :  { %v401_v57 = vpop.permute.xlu0 %400  ;;  %532 = vst.msk [vmem:[#allocation2 + $0x1f8] sm:$0xff] %vm468_vm1, %v403_v56 }
  0xf2   :  { %531 = vst.msk [vmem:[#allocation2 + $0x1f0] sm:$0xff] %vm468_vm1, %v401_v57  ;;  %775 = vrot.lane.b32.xlu1 %v590_v54, %s4671_s12  ;;  %v4048_v54 = vld [vmem:[%s7918_s0 + $0x7f0] sm:$0xff] }
  0xf3   :  { %773 = vrot.lane.b32.xlu0 %v589_v55, %s4671_s12  ;;  %v4047_v55 = vld [vmem:[%s7918_s0 + $0x7e0] sm:$0xff] }
  0xf4   :  { %v664_v60 = vpop.permute.xlu1 %663 }
  0xf5   :  { %v662_v61 = vpop.permute.xlu0 %661  ;;  %855 = vst.msk [vmem:[#allocation2 + $0x8] sm:$0xff] %vm853_vm2, %v664_v60 }
  0xf6   :  { %854 = vst.msk [vmem:[#allocation2] sm:$0xff] %vm853_vm2, %v662_v61  ;;  %779 = vrot.lane.b32.xlu1 %v592_v58, %s4671_s12  ;;  %v4050_v58 = vld [vmem:[%s7918_s0 + $0x810] sm:$0xff] }
  0xf7   :  { %777 = vrot.lane.b32.xlu0 %v591_v59, %s4671_s12  ;;  %v4049_v59 = vld [vmem:[%s7918_s0 + $0x800] sm:$0xff] }
  0xf8   :  { %v668_v0 = vpop.permute.xlu1 %667 }
  0xf9   :  { %v666_v1 = vpop.permute.xlu0 %665  ;;  %857 = vst.msk [vmem:[#allocation2 + $0x18] sm:$0xff] %vm853_vm2, %v668_v0 }
  0xfa   :  { %856 = vst.msk [vmem:[#allocation2 + $0x10] sm:$0xff] %vm853_vm2, %v666_v1  ;;  %783 = vrot.lane.b32.xlu1 %v594_v62, %s4671_s12  ;;  %v4052_v62 = vld [vmem:[%s7918_s0 + $0x830] sm:$0xff] }
  0xfb   :  { %781 = vrot.lane.b32.xlu0 %v593_v63, %s4671_s12  ;;  %v4051_v63 = vld [vmem:[%s7918_s0 + $0x820] sm:$0xff] }
  0xfc   :  { %v672_v4 = vpop.permute.xlu1 %671 }
  0xfd   :  { %v670_v5 = vpop.permute.xlu0 %669  ;;  %859 = vst.msk [vmem:[#allocation2 + $0x28] sm:$0xff] %vm853_vm2, %v672_v4 }
  0xfe   :  { %858 = vst.msk [vmem:[#allocation2 + $0x20] sm:$0xff] %vm853_vm2, %v670_v5  ;;  %787 = vrot.lane.b32.xlu1 %v596_v2, %s4671_s12  ;;  %v4054_v2 = vld [vmem:[%s7918_s0 + $0x850] sm:$0xff] }
  0xff   :  { %785 = vrot.lane.b32.xlu0 %v595_v3, %s4671_s12  ;;  %v4053_v3 = vld [vmem:[%s7918_s0 + $0x840] sm:$0xff] }
 0x100   :  { %v676_v8 = vpop.permute.xlu1 %675 }
 0x101   :  { %v674_v9 = vpop.permute.xlu0 %673  ;;  %861 = vst.msk [vmem:[#allocation2 + $0x38] sm:$0xff] %vm853_vm2, %v676_v8 }
 0x102   :  { %860 = vst.msk [vmem:[#allocation2 + $0x30] sm:$0xff] %vm853_vm2, %v674_v9  ;;  %1049 = vrot.lane.b32.xlu1 %v4024_v6, %s4672_s10  ;;  %v4056_v6 = vld [vmem:[%s7918_s0 + $0xa30] sm:$0xff] }
 0x103   :  { %1047 = vrot.lane.b32.xlu0 %v4023_v7, %s4672_s10  ;;  %v4055_v7 = vld [vmem:[%s7918_s0 + $0xa20] sm:$0xff] }
 0x104   :  { %v680_v12 = vpop.permute.xlu1 %679 }
 0x105   :  { %v678_v13 = vpop.permute.xlu0 %677  ;;  %863 = vst.msk [vmem:[#allocation2 + $0x48] sm:$0xff] %vm853_vm2, %v680_v12 }
 0x106   :  { %862 = vst.msk [vmem:[#allocation2 + $0x40] sm:$0xff] %vm853_vm2, %v678_v13  ;;  %1053 = vrot.lane.b32.xlu1 %v4026_v10, %s4672_s10  ;;  %v4058_v10 = vld [vmem:[%s7918_s0 + $0xa50] sm:$0xff] }
 0x107   :  { %1051 = vrot.lane.b32.xlu0 %v4025_v11, %s4672_s10  ;;  %v4057_v11 = vld [vmem:[%s7918_s0 + $0xa40] sm:$0xff] }
 0x108   :  { %v684_v16 = vpop.permute.xlu1 %683 }
 0x109   :  { %v682_v17 = vpop.permute.xlu0 %681  ;;  %865 = vst.msk [vmem:[#allocation2 + $0x58] sm:$0xff] %vm853_vm2, %v684_v16 }
 0x10a   :  { %864 = vst.msk [vmem:[#allocation2 + $0x50] sm:$0xff] %vm853_vm2, %v682_v17  ;;  %1057 = vrot.lane.b32.xlu1 %v4028_v14, %s4672_s10  ;;  %v4060_v14 = vld [vmem:[%s7918_s0 + $0xa70] sm:$0xff] }
 0x10b   :  { %1055 = vrot.lane.b32.xlu0 %v4027_v15, %s4672_s10  ;;  %v4059_v15 = vld [vmem:[%s7918_s0 + $0xa60] sm:$0xff] }
 0x10c   :  { %v688_v20 = vpop.permute.xlu1 %687 }
 0x10d   :  { %v686_v21 = vpop.permute.xlu0 %685  ;;  %867 = vst.msk [vmem:[#allocation2 + $0x68] sm:$0xff] %vm853_vm2, %v688_v20 }
 0x10e   :  { %866 = vst.msk [vmem:[#allocation2 + $0x60] sm:$0xff] %vm853_vm2, %v686_v21  ;;  %1061 = vrot.lane.b32.xlu1 %v4030_v18, %s4672_s10  ;;  %v4062_v18 = vld [vmem:[%s7918_s0 + $0xa90] sm:$0xff] }
 0x10f   :  { %1059 = vrot.lane.b32.xlu0 %v4029_v19, %s4672_s10  ;;  %v4061_v19 = vld [vmem:[%s7918_s0 + $0xa80] sm:$0xff] }
 0x110   :  { %v692_v24 = vpop.permute.xlu1 %691 }
 0x111   :  { %v690_v25 = vpop.permute.xlu0 %689  ;;  %869 = vst.msk [vmem:[#allocation2 + $0x78] sm:$0xff] %vm853_vm2, %v692_v24 }
 0x112   :  { %868 = vst.msk [vmem:[#allocation2 + $0x70] sm:$0xff] %vm853_vm2, %v690_v25  ;;  %1065 = vrot.lane.b32.xlu1 %v4032_v22, %s4672_s10  ;;  %v4064_v22 = vld [vmem:[%s7918_s0 + $0xc70] sm:$0xff] }
 0x113   :  { %1063 = vrot.lane.b32.xlu0 %v4031_v23, %s4672_s10  ;;  %v4063_v23 = vld [vmem:[%s7918_s0 + $0xc60] sm:$0xff] }
 0x114   :  { %v696_v28 = vpop.permute.xlu1 %695 }
 0x115   :  { %v694_v29 = vpop.permute.xlu0 %693  ;;  %871 = vst.msk [vmem:[#allocation2 + $0x88] sm:$0xff] %vm853_vm2, %v696_v28 }
 0x116   :  { %870 = vst.msk [vmem:[#allocation2 + $0x80] sm:$0xff] %vm853_vm2, %v694_v29  ;;  %1069 = vrot.lane.b32.xlu1 %v4034_v26, %s4672_s10  ;;  %v4066_v26 = vld [vmem:[%s7918_s0 + $0xc90] sm:$0xff] }
 0x117   :  { %1067 = vrot.lane.b32.xlu0 %v4033_v27, %s4672_s10  ;;  %v4065_v27 = vld [vmem:[%s7918_s0 + $0xc80] sm:$0xff] }
 0x118   :  { %v700_v32 = vpop.permute.xlu1 %699 }
 0x119   :  { %v698_v33 = vpop.permute.xlu0 %697  ;;  %873 = vst.msk [vmem:[#allocation2 + $0x98] sm:$0xff] %vm853_vm2, %v700_v32 }
 0x11a   :  { %872 = vst.msk [vmem:[#allocation2 + $0x90] sm:$0xff] %vm853_vm2, %v698_v33  ;;  %1073 = vrot.lane.b32.xlu1 %v4036_v30, %s4672_s10  ;;  %v4068_v30 = vld [vmem:[%s7918_s0 + $0xcb0] sm:$0xff] }
 0x11b   :  { %1071 = vrot.lane.b32.xlu0 %v4035_v31, %s4672_s10  ;;  %v4067_v31 = vld [vmem:[%s7918_s0 + $0xca0] sm:$0xff] }
 0x11c   :  { %v704_v36 = vpop.permute.xlu1 %703 }
 0x11d   :  { %v702_v37 = vpop.permute.xlu0 %701  ;;  %875 = vst.msk [vmem:[#allocation2 + $0xa8] sm:$0xff] %vm853_vm2, %v704_v36 }
 0x11e   :  { %874 = vst.msk [vmem:[#allocation2 + $0xa0] sm:$0xff] %vm853_vm2, %v702_v37  ;;  %1077 = vrot.lane.b32.xlu1 %v4038_v34, %s4672_s10  ;;  %v4070_v34 = vld [vmem:[%s7918_s0 + $0xcd0] sm:$0xff] }
 0x11f   :  { %1075 = vrot.lane.b32.xlu0 %v4037_v35, %s4672_s10  ;;  %v4069_v35 = vld [vmem:[%s7918_s0 + $0xcc0] sm:$0xff] }
 0x120   :  { %v708_v40 = vpop.permute.xlu1 %707 }
 0x121   :  { %v706_v41 = vpop.permute.xlu0 %705  ;;  %877 = vst.msk [vmem:[#allocation2 + $0xb8] sm:$0xff] %vm853_vm2, %v708_v40 }
 0x122   :  { %876 = vst.msk [vmem:[#allocation2 + $0xb0] sm:$0xff] %vm853_vm2, %v706_v41  ;;  %1081 = vrot.lane.b32.xlu1 %v4040_v38, %s4672_s10  ;;  %v4072_v38 = vld [vmem:[%s7918_s0 + $0xeb0] sm:$0xff] }
 0x123   :  { %1079 = vrot.lane.b32.xlu0 %v4039_v39, %s4672_s10  ;;  %v4071_v39 = vld [vmem:[%s7918_s0 + $0xea0] sm:$0xff] }
 0x124   :  { %v712_v44 = vpop.permute.xlu1 %711 }
 0x125   :  { %v710_v45 = vpop.permute.xlu0 %709  ;;  %879 = vst.msk [vmem:[#allocation2 + $0xc8] sm:$0xff] %vm853_vm2, %v712_v44 }
 0x126   :  { %878 = vst.msk [vmem:[#allocation2 + $0xc0] sm:$0xff] %vm853_vm2, %v710_v45  ;;  %1085 = vrot.lane.b32.xlu1 %v4042_v42, %s4672_s10  ;;  %v4074_v42 = vld [vmem:[%s7918_s0 + $0xed0] sm:$0xff] }
 0x127   :  { %1083 = vrot.lane.b32.xlu0 %v4041_v43, %s4672_s10  ;;  %v4073_v43 = vld [vmem:[%s7918_s0 + $0xec0] sm:$0xff] }
 0x128   :  { %v716_v48 = vpop.permute.xlu1 %715 }
 0x129   :  { %v714_v49 = vpop.permute.xlu0 %713  ;;  %881 = vst.msk [vmem:[#allocation2 + $0xd8] sm:$0xff] %vm853_vm2, %v716_v48 }
 0x12a   :  { %880 = vst.msk [vmem:[#allocation2 + $0xd0] sm:$0xff] %vm853_vm2, %v714_v49  ;;  %1089 = vrot.lane.b32.xlu1 %v4044_v46, %s4672_s10  ;;  %v4076_v46 = vld [vmem:[%s7918_s0 + $0xef0] sm:$0xff] }
 0x12b   :  { %1087 = vrot.lane.b32.xlu0 %v4043_v47, %s4672_s10  ;;  %v4075_v47 = vld [vmem:[%s7918_s0 + $0xee0] sm:$0xff] }
 0x12c   :  { %v720_v52 = vpop.permute.xlu1 %719 }
 0x12d   :  { %v718_v53 = vpop.permute.xlu0 %717  ;;  %883 = vst.msk [vmem:[#allocation2 + $0xe8] sm:$0xff] %vm853_vm2, %v720_v52 }
 0x12e   :  { %882 = vst.msk [vmem:[#allocation2 + $0xe0] sm:$0xff] %vm853_vm2, %v718_v53  ;;  %1093 = vrot.lane.b32.xlu1 %v4046_v50, %s4672_s10  ;;  %v4078_v50 = vld [vmem:[%s7918_s0 + $0xf10] sm:$0xff] }
 0x12f   :  { %1091 = vrot.lane.b32.xlu0 %v4045_v51, %s4672_s10  ;;  %v4077_v51 = vld [vmem:[%s7918_s0 + $0xf00] sm:$0xff] }
 0x130   :  { %v724_v56 = vpop.permute.xlu1 %723 }
 0x131   :  { %v722_v57 = vpop.permute.xlu0 %721  ;;  %885 = vst.msk [vmem:[#allocation2 + $0xf8] sm:$0xff] %vm853_vm2, %v724_v56 }
 0x132   :  { %884 = vst.msk [vmem:[#allocation2 + $0xf0] sm:$0xff] %vm853_vm2, %v722_v57  ;;  %1097 = vrot.lane.b32.xlu1 %v4048_v54, %s4672_s10  ;;  %v4080_v54 = vld [vmem:[%s7918_s0 + $0x10f0] sm:$0xff] }
 0x133   :  { %1095 = vrot.lane.b32.xlu0 %v4047_v55, %s4672_s10  ;;  %v4079_v55 = vld [vmem:[%s7918_s0 + $0x10e0] sm:$0xff] }
 0x134   :  { %v728_v60 = vpop.permute.xlu1 %727 }
 0x135   :  { %v726_v61 = vpop.permute.xlu0 %725  ;;  %887 = vst.msk [vmem:[#allocation2 + $0x108] sm:$0xff] %vm853_vm2, %v728_v60 }
 0x136   :  { %886 = vst.msk [vmem:[#allocation2 + $0x100] sm:$0xff] %vm853_vm2, %v726_v61  ;;  %1101 = vrot.lane.b32.xlu1 %v4050_v58, %s4672_s10  ;;  %v4082_v58 = vld [vmem:[%s7918_s0 + $0x1110] sm:$0xff] }
 0x137   :  { %1099 = vrot.lane.b32.xlu0 %v4049_v59, %s4672_s10  ;;  %v4081_v59 = vld [vmem:[%s7918_s0 + $0x1100] sm:$0xff] }
 0x138   :  { %v732_v0 = vpop.permute.xlu1 %731 }
 0x139   :  { %v730_v1 = vpop.permute.xlu0 %729  ;;  %889 = vst.msk [vmem:[#allocation2 + $0x118] sm:$0xff] %vm853_vm2, %v732_v0 }
 0x13a   :  { %888 = vst.msk [vmem:[#allocation2 + $0x110] sm:$0xff] %vm853_vm2, %v730_v1  ;;  %1105 = vrot.lane.b32.xlu1 %v4052_v62, %s4672_s10  ;;  %v4084_v62 = vld [vmem:[%s7918_s0 + $0x1130] sm:$0xff] }
 0x13b   :  { %1103 = vrot.lane.b32.xlu0 %v4051_v63, %s4672_s10  ;;  %v4083_v63 = vld [vmem:[%s7918_s0 + $0x1120] sm:$0xff] }
 0x13c   :  { %v736_v4 = vpop.permute.xlu1 %735 }
 0x13d   :  { %v734_v5 = vpop.permute.xlu0 %733  ;;  %891 = vst.msk [vmem:[#allocation2 + $0x128] sm:$0xff] %vm853_vm2, %v736_v4 }
 0x13e   :  { %890 = vst.msk [vmem:[#allocation2 + $0x120] sm:$0xff] %vm853_vm2, %v734_v5  ;;  %1109 = vrot.lane.b32.xlu1 %v4054_v2, %s4672_s10  ;;  %v4086_v2 = vld [vmem:[%s7918_s0 + $0x1150] sm:$0xff] }
 0x13f   :  { %1107 = vrot.lane.b32.xlu0 %v4053_v3, %s4672_s10  ;;  %v4085_v3 = vld [vmem:[%s7918_s0 + $0x1140] sm:$0xff] }
 0x140   :  { %v740_v8 = vpop.permute.xlu1 %739 }
 0x141   :  { %v738_v9 = vpop.permute.xlu0 %737  ;;  %893 = vst.msk [vmem:[#allocation2 + $0x138] sm:$0xff] %vm853_vm2, %v740_v8 }
 0x142   :  { %892 = vst.msk [vmem:[#allocation2 + $0x130] sm:$0xff] %vm853_vm2, %v738_v9  ;;  %1113 = vrot.lane.b32.xlu1 %v4056_v6, %s4672_s10  ;;  %v4088_v6 = vld [vmem:[%s7918_s0 + $0x1c0] sm:$0xff] }
 0x143   :  { %1111 = vrot.lane.b32.xlu0 %v4055_v7, %s4672_s10  ;;  %v4087_v7 = vld [vmem:[%s7918_s0 + $0x1b0] sm:$0xff] }
 0x144   :  { %v744_v12 = vpop.permute.xlu1 %743 }
 0x145   :  { %v742_v13 = vpop.permute.xlu0 %741  ;;  %895 = vst.msk [vmem:[#allocation2 + $0x148] sm:$0xff] %vm853_vm2, %v744_v12 }
 0x146   :  { %894 = vst.msk [vmem:[#allocation2 + $0x140] sm:$0xff] %vm853_vm2, %v742_v13  ;;  %1117 = vrot.lane.b32.xlu1 %v4058_v10, %s4672_s10  ;;  %v4090_v10 = vld [vmem:[%s7918_s0 + $0x1e0] sm:$0xff] }
 0x147   :  { %1115 = vrot.lane.b32.xlu0 %v4057_v11, %s4672_s10  ;;  %v4089_v11 = vld [vmem:[%s7918_s0 + $0x1d0] sm:$0xff] }
 0x148   :  { %v748_v16 = vpop.permute.xlu1 %747 }
 0x149   :  { %v746_v17 = vpop.permute.xlu0 %745  ;;  %897 = vst.msk [vmem:[#allocation2 + $0x158] sm:$0xff] %vm853_vm2, %v748_v16 }
 0x14a   :  { %896 = vst.msk [vmem:[#allocation2 + $0x150] sm:$0xff] %vm853_vm2, %v746_v17  ;;  %1121 = vrot.lane.b32.xlu1 %v4060_v14, %s4672_s10  ;;  %v4092_v14 = vld [vmem:[%s7918_s0 + $0x200] sm:$0xff] }
 0x14b   :  { %1119 = vrot.lane.b32.xlu0 %v4059_v15, %s4672_s10  ;;  %v4091_v15 = vld [vmem:[%s7918_s0 + $0x1f0] sm:$0xff] }
 0x14c   :  { %v752_v20 = vpop.permute.xlu1 %751 }
 0x14d   :  { %v750_v21 = vpop.permute.xlu0 %749  ;;  %899 = vst.msk [vmem:[#allocation2 + $0x168] sm:$0xff] %vm853_vm2, %v752_v20 }
 0x14e   :  { %898 = vst.msk [vmem:[#allocation2 + $0x160] sm:$0xff] %vm853_vm2, %v750_v21  ;;  %1125 = vrot.lane.b32.xlu1 %v4062_v18, %s4672_s10  ;;  %v4094_v18 = vld [vmem:[%s7918_s0 + $0x220] sm:$0xff] }
 0x14f   :  { %1123 = vrot.lane.b32.xlu0 %v4061_v19, %s4672_s10  ;;  %v4093_v19 = vld [vmem:[%s7918_s0 + $0x210] sm:$0xff] }
 0x150   :  { %v756_v24 = vpop.permute.xlu1 %755 }
 0x151   :  { %v754_v25 = vpop.permute.xlu0 %753  ;;  %901 = vst.msk [vmem:[#allocation2 + $0x178] sm:$0xff] %vm853_vm2, %v756_v24 }
 0x152   :  { %900 = vst.msk [vmem:[#allocation2 + $0x170] sm:$0xff] %vm853_vm2, %v754_v25  ;;  %1129 = vrot.lane.b32.xlu1 %v4064_v22, %s4672_s10  ;;  %v4096_v22 = vld [vmem:[%s7918_s0 + $0x400] sm:$0xff] }
 0x153   :  { %1127 = vrot.lane.b32.xlu0 %v4063_v23, %s4672_s10  ;;  %v4095_v23 = vld [vmem:[%s7918_s0 + $0x3f0] sm:$0xff] }
 0x154   :  { %v760_v28 = vpop.permute.xlu1 %759 }
 0x155   :  { %v758_v29 = vpop.permute.xlu0 %757  ;;  %903 = vst.msk [vmem:[#allocation2 + $0x188] sm:$0xff] %vm853_vm2, %v760_v28 }
 0x156   :  { %902 = vst.msk [vmem:[#allocation2 + $0x180] sm:$0xff] %vm853_vm2, %v758_v29  ;;  %1133 = vrot.lane.b32.xlu1 %v4066_v26, %s4672_s10  ;;  %v4098_v26 = vld [vmem:[%s7918_s0 + $0x420] sm:$0xff] }
 0x157   :  { %1131 = vrot.lane.b32.xlu0 %v4065_v27, %s4672_s10  ;;  %v4097_v27 = vld [vmem:[%s7918_s0 + $0x410] sm:$0xff] }
 0x158   :  { %v764_v32 = vpop.permute.xlu1 %763 }
 0x159   :  { %v762_v33 = vpop.permute.xlu0 %761  ;;  %905 = vst.msk [vmem:[#allocation2 + $0x198] sm:$0xff] %vm853_vm2, %v764_v32 }
 0x15a   :  { %904 = vst.msk [vmem:[#allocation2 + $0x190] sm:$0xff] %vm853_vm2, %v762_v33  ;;  %1137 = vrot.lane.b32.xlu1 %v4068_v30, %s4672_s10  ;;  %v4100_v30 = vld [vmem:[%s7918_s0 + $0x440] sm:$0xff] }
 0x15b   :  { %1135 = vrot.lane.b32.xlu0 %v4067_v31, %s4672_s10  ;;  %v4099_v31 = vld [vmem:[%s7918_s0 + $0x430] sm:$0xff] }
 0x15c   :  { %v768_v36 = vpop.permute.xlu1 %767 }
 0x15d   :  { %v766_v37 = vpop.permute.xlu0 %765  ;;  %907 = vst.msk [vmem:[#allocation2 + $0x1a8] sm:$0xff] %vm853_vm2, %v768_v36 }
 0x15e   :  { %906 = vst.msk [vmem:[#allocation2 + $0x1a0] sm:$0xff] %vm853_vm2, %v766_v37  ;;  %1141 = vrot.lane.b32.xlu1 %v4070_v34, %s4672_s10  ;;  %v4102_v34 = vld [vmem:[%s7918_s0 + $0x460] sm:$0xff] }
 0x15f   :  { %1139 = vrot.lane.b32.xlu0 %v4069_v35, %s4672_s10  ;;  %v4101_v35 = vld [vmem:[%s7918_s0 + $0x450] sm:$0xff] }
 0x160   :  { %v772_v40 = vpop.permute.xlu1 %771 }
 0x161   :  { %v770_v41 = vpop.permute.xlu0 %769  ;;  %909 = vst.msk [vmem:[#allocation2 + $0x1b8] sm:$0xff] %vm853_vm2, %v772_v40 }
 0x162   :  { %908 = vst.msk [vmem:[#allocation2 + $0x1b0] sm:$0xff] %vm853_vm2, %v770_v41  ;;  %1145 = vrot.lane.b32.xlu1 %v4072_v38, %s4672_s10  ;;  %v4104_v38 = vld [vmem:[%s7918_s0 + $0x640] sm:$0xff] }
 0x163   :  { %1143 = vrot.lane.b32.xlu0 %v4071_v39, %s4672_s10  ;;  %v4103_v39 = vld [vmem:[%s7918_s0 + $0x630] sm:$0xff] }
 0x164   :  { %v776_v44 = vpop.permute.xlu1 %775 }
 0x165   :  { %v774_v45 = vpop.permute.xlu0 %773  ;;  %911 = vst.msk [vmem:[#allocation2 + $0x1c8] sm:$0xff] %vm853_vm2, %v776_v44 }
 0x166   :  { %910 = vst.msk [vmem:[#allocation2 + $0x1c0] sm:$0xff] %vm853_vm2, %v774_v45  ;;  %1149 = vrot.lane.b32.xlu1 %v4074_v42, %s4672_s10  ;;  %v4106_v42 = vld [vmem:[%s7918_s0 + $0x660] sm:$0xff] }
 0x167   :  { %1147 = vrot.lane.b32.xlu0 %v4073_v43, %s4672_s10  ;;  %v4105_v43 = vld [vmem:[%s7918_s0 + $0x650] sm:$0xff] }
 0x168   :  { %v780_v48 = vpop.permute.xlu1 %779 }
 0x169   :  { %v778_v49 = vpop.permute.xlu0 %777  ;;  %913 = vst.msk [vmem:[#allocation2 + $0x1d8] sm:$0xff] %vm853_vm2, %v780_v48 }
 0x16a   :  { %912 = vst.msk [vmem:[#allocation2 + $0x1d0] sm:$0xff] %vm853_vm2, %v778_v49  ;;  %1153 = vrot.lane.b32.xlu1 %v4076_v46, %s4672_s10  ;;  %v4108_v46 = vld [vmem:[%s7918_s0 + $0x680] sm:$0xff] }
 0x16b   :  { %1151 = vrot.lane.b32.xlu0 %v4075_v47, %s4672_s10  ;;  %v4107_v47 = vld [vmem:[%s7918_s0 + $0x670] sm:$0xff] }
 0x16c   :  { %v784_v52 = vpop.permute.xlu1 %783 }
 0x16d   :  { %v782_v53 = vpop.permute.xlu0 %781  ;;  %915 = vst.msk [vmem:[#allocation2 + $0x1e8] sm:$0xff] %vm853_vm2, %v784_v52 }
 0x16e   :  { %914 = vst.msk [vmem:[#allocation2 + $0x1e0] sm:$0xff] %vm853_vm2, %v782_v53  ;;  %1157 = vrot.lane.b32.xlu1 %v4078_v50, %s4672_s10  ;;  %v4110_v50 = vld [vmem:[%s7918_s0 + $0x6a0] sm:$0xff] }
 0x16f   :  { %1155 = vrot.lane.b32.xlu0 %v4077_v51, %s4672_s10  ;;  %v4109_v51 = vld [vmem:[%s7918_s0 + $0x690] sm:$0xff] }
 0x170   :  { %v788_v56 = vpop.permute.xlu1 %787 }
 0x171   :  { %v786_v57 = vpop.permute.xlu0 %785  ;;  %917 = vst.msk [vmem:[#allocation2 + $0x1f8] sm:$0xff] %vm853_vm2, %v788_v56 }
 0x172   :  { %916 = vst.msk [vmem:[#allocation2 + $0x1f0] sm:$0xff] %vm853_vm2, %v786_v57  ;;  %1161 = vrot.lane.b32.xlu1 %v4080_v54, %s4672_s10  ;;  %v4112_v54 = vld [vmem:[%s7918_s0 + $0x880] sm:$0xff] }
 0x173   :  { %1159 = vrot.lane.b32.xlu0 %v4079_v55, %s4672_s10  ;;  %v4111_v55 = vld [vmem:[%s7918_s0 + $0x870] sm:$0xff] }
 0x174   :  { %v1050_v60 = vpop.permute.xlu1 %1049 }
 0x175   :  { %v1048_v61 = vpop.permute.xlu0 %1047  ;;  %1241 = vst.msk [vmem:[#allocation2 + $0x8] sm:$0xff] %vm1239_vm3, %v1050_v60 }
 0x176   :  { %1240 = vst.msk [vmem:[#allocation2] sm:$0xff] %vm1239_vm3, %v1048_v61  ;;  %1165 = vrot.lane.b32.xlu1 %v4082_v58, %s4672_s10  ;;  %v4114_v58 = vld [vmem:[%s7918_s0 + $0x8a0] sm:$0xff] }
 0x177   :  { %1163 = vrot.lane.b32.xlu0 %v4081_v59, %s4672_s10  ;;  %v4113_v59 = vld [vmem:[%s7918_s0 + $0x890] sm:$0xff] }
 0x178   :  { %v1054_v0 = vpop.permute.xlu1 %1053 }
 0x179   :  { %v1052_v1 = vpop.permute.xlu0 %1051  ;;  %1243 = vst.msk [vmem:[#allocation2 + $0x18] sm:$0xff] %vm1239_vm3, %v1054_v0 }
 0x17a   :  { %1242 = vst.msk [vmem:[#allocation2 + $0x10] sm:$0xff] %vm1239_vm3, %v1052_v1  ;;  %1169 = vrot.lane.b32.xlu1 %v4084_v62, %s4672_s10  ;;  %v4116_v62 = vld [vmem:[%s7918_s0 + $0x8c0] sm:$0xff] }
 0x17b   :  { %1167 = vrot.lane.b32.xlu0 %v4083_v63, %s4672_s10  ;;  %v4115_v63 = vld [vmem:[%s7918_s0 + $0x8b0] sm:$0xff] }
 0x17c   :  { %v1058_v4 = vpop.permute.xlu1 %1057 }
 0x17d   :  { %v1056_v5 = vpop.permute.xlu0 %1055  ;;  %1245 = vst.msk [vmem:[#allocation2 + $0x28] sm:$0xff] %vm1239_vm3, %v1058_v4 }
 0x17e   :  { %1244 = vst.msk [vmem:[#allocation2 + $0x20] sm:$0xff] %vm1239_vm3, %v1056_v5  ;;  %1173 = vrot.lane.b32.xlu1 %v4086_v2, %s4672_s10  ;;  %v4118_v2 = vld [vmem:[%s7918_s0 + $0x8e0] sm:$0xff] }
 0x17f   :  { %1171 = vrot.lane.b32.xlu0 %v4085_v3, %s4672_s10  ;;  %v4117_v3 = vld [vmem:[%s7918_s0 + $0x8d0] sm:$0xff] }
 0x180   :  { %v1062_v8 = vpop.permute.xlu1 %1061 }
 0x181   :  { %v1060_v9 = vpop.permute.xlu0 %1059  ;;  %1247 = vst.msk [vmem:[#allocation2 + $0x38] sm:$0xff] %vm1239_vm3, %v1062_v8 }
 0x182   :  { %1246 = vst.msk [vmem:[#allocation2 + $0x30] sm:$0xff] %vm1239_vm3, %v1060_v9  ;;  %1435 = vrot.lane.b32.xlu1 %v4088_v6, %s4673_s8  ;;  %v4120_v6 = vld [vmem:[%s7918_s0 + $0xac0] sm:$0xff] }
 0x183   :  { %1433 = vrot.lane.b32.xlu0 %v4087_v7, %s4673_s8  ;;  %v4119_v7 = vld [vmem:[%s7918_s0 + $0xab0] sm:$0xff] }
 0x184   :  { %v1066_v12 = vpop.permute.xlu1 %1065 }
 0x185   :  { %v1064_v13 = vpop.permute.xlu0 %1063  ;;  %1249 = vst.msk [vmem:[#allocation2 + $0x48] sm:$0xff] %vm1239_vm3, %v1066_v12 }
 0x186   :  { %1248 = vst.msk [vmem:[#allocation2 + $0x40] sm:$0xff] %vm1239_vm3, %v1064_v13  ;;  %1439 = vrot.lane.b32.xlu1 %v4090_v10, %s4673_s8  ;;  %v4122_v10 = vld [vmem:[%s7918_s0 + $0xae0] sm:$0xff] }
 0x187   :  { %1437 = vrot.lane.b32.xlu0 %v4089_v11, %s4673_s8  ;;  %v4121_v11 = vld [vmem:[%s7918_s0 + $0xad0] sm:$0xff] }
 0x188   :  { %v1070_v16 = vpop.permute.xlu1 %1069 }
 0x189   :  { %v1068_v17 = vpop.permute.xlu0 %1067  ;;  %1251 = vst.msk [vmem:[#allocation2 + $0x58] sm:$0xff] %vm1239_vm3, %v1070_v16 }
 0x18a   :  { %1250 = vst.msk [vmem:[#allocation2 + $0x50] sm:$0xff] %vm1239_vm3, %v1068_v17  ;;  %1443 = vrot.lane.b32.xlu1 %v4092_v14, %s4673_s8  ;;  %v4124_v14 = vld [vmem:[%s7918_s0 + $0xb00] sm:$0xff] }
 0x18b   :  { %1441 = vrot.lane.b32.xlu0 %v4091_v15, %s4673_s8  ;;  %v4123_v15 = vld [vmem:[%s7918_s0 + $0xaf0] sm:$0xff] }
 0x18c   :  { %v1074_v20 = vpop.permute.xlu1 %1073 }
 0x18d   :  { %v1072_v21 = vpop.permute.xlu0 %1071  ;;  %1253 = vst.msk [vmem:[#allocation2 + $0x68] sm:$0xff] %vm1239_vm3, %v1074_v20 }
 0x18e   :  { %1252 = vst.msk [vmem:[#allocation2 + $0x60] sm:$0xff] %vm1239_vm3, %v1072_v21  ;;  %1447 = vrot.lane.b32.xlu1 %v4094_v18, %s4673_s8  ;;  %v4126_v18 = vld [vmem:[%s7918_s0 + $0xb20] sm:$0xff] }
 0x18f   :  { %1445 = vrot.lane.b32.xlu0 %v4093_v19, %s4673_s8  ;;  %v4125_v19 = vld [vmem:[%s7918_s0 + $0xb10] sm:$0xff] }
 0x190   :  { %v1078_v24 = vpop.permute.xlu1 %1077 }
 0x191   :  { %v1076_v25 = vpop.permute.xlu0 %1075  ;;  %1255 = vst.msk [vmem:[#allocation2 + $0x78] sm:$0xff] %vm1239_vm3, %v1078_v24 }
 0x192   :  { %1254 = vst.msk [vmem:[#allocation2 + $0x70] sm:$0xff] %vm1239_vm3, %v1076_v25  ;;  %1451 = vrot.lane.b32.xlu1 %v4096_v22, %s4673_s8  ;;  %v4128_v22 = vld [vmem:[%s7918_s0 + $0xd00] sm:$0xff] }
 0x193   :  { %1449 = vrot.lane.b32.xlu0 %v4095_v23, %s4673_s8  ;;  %v4127_v23 = vld [vmem:[%s7918_s0 + $0xcf0] sm:$0xff] }
 0x194   :  { %v1082_v28 = vpop.permute.xlu1 %1081 }
 0x195   :  { %v1080_v29 = vpop.permute.xlu0 %1079  ;;  %1257 = vst.msk [vmem:[#allocation2 + $0x88] sm:$0xff] %vm1239_vm3, %v1082_v28 }
 0x196   :  { %1256 = vst.msk [vmem:[#allocation2 + $0x80] sm:$0xff] %vm1239_vm3, %v1080_v29  ;;  %1455 = vrot.lane.b32.xlu1 %v4098_v26, %s4673_s8  ;;  %v4130_v26 = vld [vmem:[%s7918_s0 + $0xd20] sm:$0xff] }
 0x197   :  { %1453 = vrot.lane.b32.xlu0 %v4097_v27, %s4673_s8  ;;  %v4129_v27 = vld [vmem:[%s7918_s0 + $0xd10] sm:$0xff] }
 0x198   :  { %v1086_v32 = vpop.permute.xlu1 %1085 }
 0x199   :  { %v1084_v33 = vpop.permute.xlu0 %1083  ;;  %1259 = vst.msk [vmem:[#allocation2 + $0x98] sm:$0xff] %vm1239_vm3, %v1086_v32 }
 0x19a   :  { %1258 = vst.msk [vmem:[#allocation2 + $0x90] sm:$0xff] %vm1239_vm3, %v1084_v33  ;;  %1459 = vrot.lane.b32.xlu1 %v4100_v30, %s4673_s8  ;;  %v4132_v30 = vld [vmem:[%s7918_s0 + $0xd40] sm:$0xff] }
 0x19b   :  { %1457 = vrot.lane.b32.xlu0 %v4099_v31, %s4673_s8  ;;  %v4131_v31 = vld [vmem:[%s7918_s0 + $0xd30] sm:$0xff] }
 0x19c   :  { %v1090_v36 = vpop.permute.xlu1 %1089 }
 0x19d   :  { %v1088_v37 = vpop.permute.xlu0 %1087  ;;  %1261 = vst.msk [vmem:[#allocation2 + $0xa8] sm:$0xff] %vm1239_vm3, %v1090_v36 }
 0x19e   :  { %1260 = vst.msk [vmem:[#allocation2 + $0xa0] sm:$0xff] %vm1239_vm3, %v1088_v37  ;;  %1463 = vrot.lane.b32.xlu1 %v4102_v34, %s4673_s8  ;;  %v4134_v34 = vld [vmem:[%s7918_s0 + $0xd60] sm:$0xff] }
 0x19f   :  { %1461 = vrot.lane.b32.xlu0 %v4101_v35, %s4673_s8  ;;  %v4133_v35 = vld [vmem:[%s7918_s0 + $0xd50] sm:$0xff] }
 0x1a0   :  { %v1094_v40 = vpop.permute.xlu1 %1093 }
 0x1a1   :  { %v1092_v41 = vpop.permute.xlu0 %1091  ;;  %1263 = vst.msk [vmem:[#allocation2 + $0xb8] sm:$0xff] %vm1239_vm3, %v1094_v40 }
 0x1a2   :  { %1262 = vst.msk [vmem:[#allocation2 + $0xb0] sm:$0xff] %vm1239_vm3, %v1092_v41  ;;  %1467 = vrot.lane.b32.xlu1 %v4104_v38, %s4673_s8  ;;  %v4136_v38 = vld [vmem:[%s7918_s0 + $0xf40] sm:$0xff] }
 0x1a3   :  { %1465 = vrot.lane.b32.xlu0 %v4103_v39, %s4673_s8  ;;  %v4135_v39 = vld [vmem:[%s7918_s0 + $0xf30] sm:$0xff] }
 0x1a4   :  { %v1098_v44 = vpop.permute.xlu1 %1097 }
 0x1a5   :  { %v1096_v45 = vpop.permute.xlu0 %1095  ;;  %1265 = vst.msk [vmem:[#allocation2 + $0xc8] sm:$0xff] %vm1239_vm3, %v1098_v44 }
 0x1a6   :  { %1264 = vst.msk [vmem:[#allocation2 + $0xc0] sm:$0xff] %vm1239_vm3, %v1096_v45  ;;  %1471 = vrot.lane.b32.xlu1 %v4106_v42, %s4673_s8  ;;  %v4138_v42 = vld [vmem:[%s7918_s0 + $0xf60] sm:$0xff] }
 0x1a7   :  { %1469 = vrot.lane.b32.xlu0 %v4105_v43, %s4673_s8  ;;  %v4137_v43 = vld [vmem:[%s7918_s0 + $0xf50] sm:$0xff] }
 0x1a8   :  { %v1102_v48 = vpop.permute.xlu1 %1101 }
 0x1a9   :  { %v1100_v49 = vpop.permute.xlu0 %1099  ;;  %1267 = vst.msk [vmem:[#allocation2 + $0xd8] sm:$0xff] %vm1239_vm3, %v1102_v48 }
 0x1aa   :  { %1266 = vst.msk [vmem:[#allocation2 + $0xd0] sm:$0xff] %vm1239_vm3, %v1100_v49  ;;  %1475 = vrot.lane.b32.xlu1 %v4108_v46, %s4673_s8  ;;  %v4140_v46 = vld [vmem:[%s7918_s0 + $0xf80] sm:$0xff] }
 0x1ab   :  { %1473 = vrot.lane.b32.xlu0 %v4107_v47, %s4673_s8  ;;  %v4139_v47 = vld [vmem:[%s7918_s0 + $0xf70] sm:$0xff] }
 0x1ac   :  { %v1106_v52 = vpop.permute.xlu1 %1105 }
 0x1ad   :  { %v1104_v53 = vpop.permute.xlu0 %1103  ;;  %1269 = vst.msk [vmem:[#allocation2 + $0xe8] sm:$0xff] %vm1239_vm3, %v1106_v52 }
 0x1ae   :  { %1268 = vst.msk [vmem:[#allocation2 + $0xe0] sm:$0xff] %vm1239_vm3, %v1104_v53  ;;  %1479 = vrot.lane.b32.xlu1 %v4110_v50, %s4673_s8  ;;  %v4142_v50 = vld [vmem:[%s7918_s0 + $0xfa0] sm:$0xff] }
 0x1af   :  { %1477 = vrot.lane.b32.xlu0 %v4109_v51, %s4673_s8  ;;  %v4141_v51 = vld [vmem:[%s7918_s0 + $0xf90] sm:$0xff] }
 0x1b0   :  { %v1110_v56 = vpop.permute.xlu1 %1109 }
 0x1b1   :  { %v1108_v57 = vpop.permute.xlu0 %1107  ;;  %1271 = vst.msk [vmem:[#allocation2 + $0xf8] sm:$0xff] %vm1239_vm3, %v1110_v56 }
 0x1b2   :  { %1270 = vst.msk [vmem:[#allocation2 + $0xf0] sm:$0xff] %vm1239_vm3, %v1108_v57  ;;  %1483 = vrot.lane.b32.xlu1 %v4112_v54, %s4673_s8  ;;  %v4144_v54 = vld [vmem:[%s7918_s0 + $0x1180] sm:$0xff] }
 0x1b3   :  { %1481 = vrot.lane.b32.xlu0 %v4111_v55, %s4673_s8  ;;  %v4143_v55 = vld [vmem:[%s7918_s0 + $0x1170] sm:$0xff] }
 0x1b4   :  { %v1114_v60 = vpop.permute.xlu1 %1113 }
 0x1b5   :  { %v1112_v61 = vpop.permute.xlu0 %1111  ;;  %1273 = vst.msk [vmem:[#allocation2 + $0x108] sm:$0xff] %vm1239_vm3, %v1114_v60 }
 0x1b6   :  { %1272 = vst.msk [vmem:[#allocation2 + $0x100] sm:$0xff] %vm1239_vm3, %v1112_v61  ;;  %1487 = vrot.lane.b32.xlu1 %v4114_v58, %s4673_s8  ;;  %v4146_v58 = vld [vmem:[%s7918_s0 + $0x11a0] sm:$0xff] }
 0x1b7   :  { %1485 = vrot.lane.b32.xlu0 %v4113_v59, %s4673_s8  ;;  %v4145_v59 = vld [vmem:[%s7918_s0 + $0x1190] sm:$0xff] }
 0x1b8   :  { %v1118_v0 = vpop.permute.xlu1 %1117 }
 0x1b9   :  { %v1116_v1 = vpop.permute.xlu0 %1115  ;;  %1275 = vst.msk [vmem:[#allocation2 + $0x118] sm:$0xff] %vm1239_vm3, %v1118_v0 }
 0x1ba   :  { %1274 = vst.msk [vmem:[#allocation2 + $0x110] sm:$0xff] %vm1239_vm3, %v1116_v1  ;;  %1491 = vrot.lane.b32.xlu1 %v4116_v62, %s4673_s8  ;;  %v4148_v62 = vld [vmem:[%s7918_s0 + $0x11c0] sm:$0xff] }
 0x1bb   :  { %1489 = vrot.lane.b32.xlu0 %v4115_v63, %s4673_s8  ;;  %v4147_v63 = vld [vmem:[%s7918_s0 + $0x11b0] sm:$0xff] }
 0x1bc   :  { %v1122_v4 = vpop.permute.xlu1 %1121 }
 0x1bd   :  { %v1120_v5 = vpop.permute.xlu0 %1119  ;;  %1277 = vst.msk [vmem:[#allocation2 + $0x128] sm:$0xff] %vm1239_vm3, %v1122_v4 }
 0x1be   :  { %1276 = vst.msk [vmem:[#allocation2 + $0x120] sm:$0xff] %vm1239_vm3, %v1120_v5  ;;  %1495 = vrot.lane.b32.xlu1 %v4118_v2, %s4673_s8  ;;  %v4150_v2 = vld [vmem:[%s7918_s0 + $0x11e0] sm:$0xff] }
 0x1bf   :  { %1493 = vrot.lane.b32.xlu0 %v4117_v3, %s4673_s8  ;;  %v4149_v3 = vld [vmem:[%s7918_s0 + $0x11d0] sm:$0xff] }
 0x1c0   :  { %v1126_v8 = vpop.permute.xlu1 %1125 }
 0x1c1   :  { %v1124_v9 = vpop.permute.xlu0 %1123  ;;  %1279 = vst.msk [vmem:[#allocation2 + $0x138] sm:$0xff] %vm1239_vm3, %v1126_v8 }
 0x1c2   :  { %1278 = vst.msk [vmem:[#allocation2 + $0x130] sm:$0xff] %vm1239_vm3, %v1124_v9  ;;  %1499 = vrot.lane.b32.xlu1 %v4120_v6, %s4673_s8  ;;  %v4152_v6 = vld [vmem:[%s7918_s0 + $0x131] sm:$0xff] }
 0x1c3   :  { %1497 = vrot.lane.b32.xlu0 %v4119_v7, %s4673_s8  ;;  %v4151_v7 = vld [vmem:[%s7918_s0 + $0x121] sm:$0xff] }
 0x1c4   :  { %v1130_v12 = vpop.permute.xlu1 %1129 }
 0x1c5   :  { %v1128_v13 = vpop.permute.xlu0 %1127  ;;  %1281 = vst.msk [vmem:[#allocation2 + $0x148] sm:$0xff] %vm1239_vm3, %v1130_v12 }
 0x1c6   :  { %1280 = vst.msk [vmem:[#allocation2 + $0x140] sm:$0xff] %vm1239_vm3, %v1128_v13  ;;  %1503 = vrot.lane.b32.xlu1 %v4122_v10, %s4673_s8  ;;  %v4154_v10 = vld [vmem:[%s7918_s0 + $0x151] sm:$0xff] }
 0x1c7   :  { %1501 = vrot.lane.b32.xlu0 %v4121_v11, %s4673_s8  ;;  %v4153_v11 = vld [vmem:[%s7918_s0 + $0x141] sm:$0xff] }
 0x1c8   :  { %v1134_v16 = vpop.permute.xlu1 %1133 }
 0x1c9   :  { %v1132_v17 = vpop.permute.xlu0 %1131  ;;  %1283 = vst.msk [vmem:[#allocation2 + $0x158] sm:$0xff] %vm1239_vm3, %v1134_v16 }
 0x1ca   :  { %1282 = vst.msk [vmem:[#allocation2 + $0x150] sm:$0xff] %vm1239_vm3, %v1132_v17  ;;  %1507 = vrot.lane.b32.xlu1 %v4124_v14, %s4673_s8  ;;  %v4156_v14 = vld [vmem:[%s7918_s0 + $0x171] sm:$0xff] }
 0x1cb   :  { %1505 = vrot.lane.b32.xlu0 %v4123_v15, %s4673_s8  ;;  %v4155_v15 = vld [vmem:[%s7918_s0 + $0x161] sm:$0xff] }
 0x1cc   :  { %v1138_v20 = vpop.permute.xlu1 %1137 }
 0x1cd   :  { %v1136_v21 = vpop.permute.xlu0 %1135  ;;  %1285 = vst.msk [vmem:[#allocation2 + $0x168] sm:$0xff] %vm1239_vm3, %v1138_v20 }
 0x1ce   :  { %1284 = vst.msk [vmem:[#allocation2 + $0x160] sm:$0xff] %vm1239_vm3, %v1136_v21  ;;  %1511 = vrot.lane.b32.xlu1 %v4126_v18, %s4673_s8  ;;  %v4158_v18 = vld [vmem:[%s7918_s0 + $0x191] sm:$0xff] }
 0x1cf   :  { %1509 = vrot.lane.b32.xlu0 %v4125_v19, %s4673_s8  ;;  %v4157_v19 = vld [vmem:[%s7918_s0 + $0x181] sm:$0xff] }
 0x1d0   :  { %v1142_v24 = vpop.permute.xlu1 %1141 }
 0x1d1   :  { %v1140_v25 = vpop.permute.xlu0 %1139  ;;  %1287 = vst.msk [vmem:[#allocation2 + $0x178] sm:$0xff] %vm1239_vm3, %v1142_v24 }
 0x1d2   :  { %1286 = vst.msk [vmem:[#allocation2 + $0x170] sm:$0xff] %vm1239_vm3, %v1140_v25  ;;  %1515 = vrot.lane.b32.xlu1 %v4128_v22, %s4673_s8  ;;  %v4160_v22 = vld [vmem:[%s7918_s0 + $0x371] sm:$0xff] }
 0x1d3   :  { %1513 = vrot.lane.b32.xlu0 %v4127_v23, %s4673_s8  ;;  %v4159_v23 = vld [vmem:[%s7918_s0 + $0x361] sm:$0xff] }
 0x1d4   :  { %v1146_v28 = vpop.permute.xlu1 %1145 }
 0x1d5   :  { %v1144_v29 = vpop.permute.xlu0 %1143  ;;  %1289 = vst.msk [vmem:[#allocation2 + $0x188] sm:$0xff] %vm1239_vm3, %v1146_v28 }
 0x1d6   :  { %1288 = vst.msk [vmem:[#allocation2 + $0x180] sm:$0xff] %vm1239_vm3, %v1144_v29  ;;  %1519 = vrot.lane.b32.xlu1 %v4130_v26, %s4673_s8  ;;  %v4162_v26 = vld [vmem:[%s7918_s0 + $0x391] sm:$0xff] }
 0x1d7   :  { %1517 = vrot.lane.b32.xlu0 %v4129_v27, %s4673_s8  ;;  %v4161_v27 = vld [vmem:[%s7918_s0 + $0x381] sm:$0xff] }
 0x1d8   :  { %v1150_v32 = vpop.permute.xlu1 %1149 }
 0x1d9   :  { %v1148_v33 = vpop.permute.xlu0 %1147  ;;  %1291 = vst.msk [vmem:[#allocation2 + $0x198] sm:$0xff] %vm1239_vm3, %v1150_v32 }
 0x1da   :  { %1290 = vst.msk [vmem:[#allocation2 + $0x190] sm:$0xff] %vm1239_vm3, %v1148_v33  ;;  %1523 = vrot.lane.b32.xlu1 %v4132_v30, %s4673_s8  ;;  %v4164_v30 = vld [vmem:[%s7918_s0 + $0x3b1] sm:$0xff] }
 0x1db   :  { %1521 = vrot.lane.b32.xlu0 %v4131_v31, %s4673_s8  ;;  %v4163_v31 = vld [vmem:[%s7918_s0 + $0x3a1] sm:$0xff] }
 0x1dc   :  { %v1154_v36 = vpop.permute.xlu1 %1153 }
 0x1dd   :  { %v1152_v37 = vpop.permute.xlu0 %1151  ;;  %1293 = vst.msk [vmem:[#allocation2 + $0x1a8] sm:$0xff] %vm1239_vm3, %v1154_v36 }
 0x1de   :  { %1292 = vst.msk [vmem:[#allocation2 + $0x1a0] sm:$0xff] %vm1239_vm3, %v1152_v37  ;;  %1527 = vrot.lane.b32.xlu1 %v4134_v34, %s4673_s8  ;;  %v4166_v34 = vld [vmem:[%s7918_s0 + $0x3d1] sm:$0xff] }
 0x1df   :  { %1525 = vrot.lane.b32.xlu0 %v4133_v35, %s4673_s8  ;;  %v4165_v35 = vld [vmem:[%s7918_s0 + $0x3c1] sm:$0xff] }
 0x1e0   :  { %v1158_v40 = vpop.permute.xlu1 %1157 }
 0x1e1   :  { %v1156_v41 = vpop.permute.xlu0 %1155  ;;  %1295 = vst.msk [vmem:[#allocation2 + $0x1b8] sm:$0xff] %vm1239_vm3, %v1158_v40 }
 0x1e2   :  { %1294 = vst.msk [vmem:[#allocation2 + $0x1b0] sm:$0xff] %vm1239_vm3, %v1156_v41  ;;  %1531 = vrot.lane.b32.xlu1 %v4136_v38, %s4673_s8  ;;  %v4168_v38 = vld [vmem:[%s7918_s0 + $0x5b1] sm:$0xff] }
 0x1e3   :  { %1529 = vrot.lane.b32.xlu0 %v4135_v39, %s4673_s8  ;;  %v4167_v39 = vld [vmem:[%s7918_s0 + $0x5a1] sm:$0xff] }
 0x1e4   :  { %v1162_v44 = vpop.permute.xlu1 %1161 }
 0x1e5   :  { %v1160_v45 = vpop.permute.xlu0 %1159  ;;  %1297 = vst.msk [vmem:[#allocation2 + $0x1c8] sm:$0xff] %vm1239_vm3, %v1162_v44 }
 0x1e6   :  { %1296 = vst.msk [vmem:[#allocation2 + $0x1c0] sm:$0xff] %vm1239_vm3, %v1160_v45  ;;  %1535 = vrot.lane.b32.xlu1 %v4138_v42, %s4673_s8  ;;  %v4170_v42 = vld [vmem:[%s7918_s0 + $0x5d1] sm:$0xff] }
 0x1e7   :  { %1533 = vrot.lane.b32.xlu0 %v4137_v43, %s4673_s8  ;;  %v4169_v43 = vld [vmem:[%s7918_s0 + $0x5c1] sm:$0xff] }
 0x1e8   :  { %v1166_v48 = vpop.permute.xlu1 %1165 }
 0x1e9   :  { %v1164_v49 = vpop.permute.xlu0 %1163  ;;  %1299 = vst.msk [vmem:[#allocation2 + $0x1d8] sm:$0xff] %vm1239_vm3, %v1166_v48 }
 0x1ea   :  { %1298 = vst.msk [vmem:[#allocation2 + $0x1d0] sm:$0xff] %vm1239_vm3, %v1164_v49  ;;  %1539 = vrot.lane.b32.xlu1 %v4140_v46, %s4673_s8  ;;  %v4172_v46 = vld [vmem:[%s7918_s0 + $0x5f1] sm:$0xff] }
 0x1eb   :  { %1537 = vrot.lane.b32.xlu0 %v4139_v47, %s4673_s8  ;;  %v4171_v47 = vld [vmem:[%s7918_s0 + $0x5e1] sm:$0xff] }
 0x1ec   :  { %v1170_v52 = vpop.permute.xlu1 %1169 }
 0x1ed   :  { %v1168_v53 = vpop.permute.xlu0 %1167  ;;  %1301 = vst.msk [vmem:[#allocation2 + $0x1e8] sm:$0xff] %vm1239_vm3, %v1170_v52 }
 0x1ee   :  { %1300 = vst.msk [vmem:[#allocation2 + $0x1e0] sm:$0xff] %vm1239_vm3, %v1168_v53  ;;  %1543 = vrot.lane.b32.xlu1 %v4142_v50, %s4673_s8  ;;  %v4174_v50 = vld [vmem:[%s7918_s0 + $0x611] sm:$0xff] }
 0x1ef   :  { %1541 = vrot.lane.b32.xlu0 %v4141_v51, %s4673_s8  ;;  %v4173_v51 = vld [vmem:[%s7918_s0 + $0x601] sm:$0xff] }
 0x1f0   :  { %v1174_v56 = vpop.permute.xlu1 %1173 }
 0x1f1   :  { %v1172_v57 = vpop.permute.xlu0 %1171  ;;  %1303 = vst.msk [vmem:[#allocation2 + $0x1f8] sm:$0xff] %vm1239_vm3, %v1174_v56 }
 0x1f2   :  { %1302 = vst.msk [vmem:[#allocation2 + $0x1f0] sm:$0xff] %vm1239_vm3, %v1172_v57  ;;  %1547 = vrot.lane.b32.xlu1 %v4144_v54, %s4673_s8  ;;  %v4176_v54 = vld [vmem:[%s7918_s0 + $0x7f1] sm:$0xff] }
 0x1f3   :  { %1545 = vrot.lane.b32.xlu0 %v4143_v55, %s4673_s8  ;;  %v4175_v55 = vld [vmem:[%s7918_s0 + $0x7e1] sm:$0xff] }
 0x1f4   :  { %v1436_v60 = vpop.permute.xlu1 %1435 }
 0x1f5   :  { %v1434_v61 = vpop.permute.xlu0 %1433  ;;  %1627 = vst.msk [vmem:[#allocation2 + $0x8] sm:$0xff] %vm1625_vm4, %v1436_v60 }
 0x1f6   :  { %1626 = vst.msk [vmem:[#allocation2] sm:$0xff] %vm1625_vm4, %v1434_v61  ;;  %1551 = vrot.lane.b32.xlu1 %v4146_v58, %s4673_s8  ;;  %v4178_v58 = vld [vmem:[%s7918_s0 + $0x811] sm:$0xff] }
 0x1f7   :  { %1549 = vrot.lane.b32.xlu0 %v4145_v59, %s4673_s8  ;;  %v4177_v59 = vld [vmem:[%s7918_s0 + $0x801] sm:$0xff] }
 0x1f8   :  { %v1440_v0 = vpop.permute.xlu1 %1439 }
 0x1f9   :  { %v1438_v1 = vpop.permute.xlu0 %1437  ;;  %1629 = vst.msk [vmem:[#allocation2 + $0x18] sm:$0xff] %vm1625_vm4, %v1440_v0 }
 0x1fa   :  { %1628 = vst.msk [vmem:[#allocation2 + $0x10] sm:$0xff] %vm1625_vm4, %v1438_v1  ;;  %1555 = vrot.lane.b32.xlu1 %v4148_v62, %s4673_s8  ;;  %v4180_v62 = vld [vmem:[%s7918_s0 + $0x831] sm:$0xff] }
 0x1fb   :  { %1553 = vrot.lane.b32.xlu0 %v4147_v63, %s4673_s8  ;;  %v4179_v63 = vld [vmem:[%s7918_s0 + $0x821] sm:$0xff] }
 0x1fc   :  { %v1444_v4 = vpop.permute.xlu1 %1443 }
 0x1fd   :  { %v1442_v5 = vpop.permute.xlu0 %1441  ;;  %1631 = vst.msk [vmem:[#allocation2 + $0x28] sm:$0xff] %vm1625_vm4, %v1444_v4 }
 0x1fe   :  { %1630 = vst.msk [vmem:[#allocation2 + $0x20] sm:$0xff] %vm1625_vm4, %v1442_v5  ;;  %1559 = vrot.lane.b32.xlu1 %v4150_v2, %s4673_s8  ;;  %v4182_v2 = vld [vmem:[%s7918_s0 + $0x851] sm:$0xff] }
 0x1ff   :  { %1557 = vrot.lane.b32.xlu0 %v4149_v3, %s4673_s8  ;;  %v4181_v3 = vld [vmem:[%s7918_s0 + $0x841] sm:$0xff] }
 0x200   :  { %v1448_v8 = vpop.permute.xlu1 %1447 }
 0x201   :  { %v1446_v9 = vpop.permute.xlu0 %1445  ;;  %1633 = vst.msk [vmem:[#allocation2 + $0x38] sm:$0xff] %vm1625_vm4, %v1448_v8 }
 0x202   :  { %1632 = vst.msk [vmem:[#allocation2 + $0x30] sm:$0xff] %vm1625_vm4, %v1446_v9  ;;  %1820 = vrot.lane.b32.xlu1 %v4152_v6, %s4674_s6  ;;  %v4184_v6 = vld [vmem:[%s7918_s0 + $0xa31] sm:$0xff] }
 0x203   :  { %1818 = vrot.lane.b32.xlu0 %v4151_v7, %s4674_s6  ;;  %v4183_v7 = vld [vmem:[%s7918_s0 + $0xa21] sm:$0xff] }
 0x204   :  { %v1452_v12 = vpop.permute.xlu1 %1451 }
 0x205   :  { %v1450_v13 = vpop.permute.xlu0 %1449  ;;  %1635 = vst.msk [vmem:[#allocation2 + $0x48] sm:$0xff] %vm1625_vm4, %v1452_v12 }
 0x206   :  { %1634 = vst.msk [vmem:[#allocation2 + $0x40] sm:$0xff] %vm1625_vm4, %v1450_v13  ;;  %1824 = vrot.lane.b32.xlu1 %v4154_v10, %s4674_s6  ;;  %v4186_v10 = vld [vmem:[%s7918_s0 + $0xa51] sm:$0xff] }
 0x207   :  { %1822 = vrot.lane.b32.xlu0 %v4153_v11, %s4674_s6  ;;  %v4185_v11 = vld [vmem:[%s7918_s0 + $0xa41] sm:$0xff] }
 0x208   :  { %v1456_v16 = vpop.permute.xlu1 %1455 }
 0x209   :  { %v1454_v17 = vpop.permute.xlu0 %1453  ;;  %1637 = vst.msk [vmem:[#allocation2 + $0x58] sm:$0xff] %vm1625_vm4, %v1456_v16 }
 0x20a   :  { %1636 = vst.msk [vmem:[#allocation2 + $0x50] sm:$0xff] %vm1625_vm4, %v1454_v17  ;;  %1828 = vrot.lane.b32.xlu1 %v4156_v14, %s4674_s6  ;;  %v4188_v14 = vld [vmem:[%s7918_s0 + $0xa71] sm:$0xff] }
 0x20b   :  { %1826 = vrot.lane.b32.xlu0 %v4155_v15, %s4674_s6  ;;  %v4187_v15 = vld [vmem:[%s7918_s0 + $0xa61] sm:$0xff] }
 0x20c   :  { %v1460_v20 = vpop.permute.xlu1 %1459 }
 0x20d   :  { %v1458_v21 = vpop.permute.xlu0 %1457  ;;  %1639 = vst.msk [vmem:[#allocation2 + $0x68] sm:$0xff] %vm1625_vm4, %v1460_v20 }
 0x20e   :  { %1638 = vst.msk [vmem:[#allocation2 + $0x60] sm:$0xff] %vm1625_vm4, %v1458_v21  ;;  %1832 = vrot.lane.b32.xlu1 %v4158_v18, %s4674_s6  ;;  %v4190_v18 = vld [vmem:[%s7918_s0 + $0xa91] sm:$0xff] }
 0x20f   :  { %1830 = vrot.lane.b32.xlu0 %v4157_v19, %s4674_s6  ;;  %v4189_v19 = vld [vmem:[%s7918_s0 + $0xa81] sm:$0xff] }
 0x210   :  { %v1464_v24 = vpop.permute.xlu1 %1463 }
 0x211   :  { %v1462_v25 = vpop.permute.xlu0 %1461  ;;  %1641 = vst.msk [vmem:[#allocation2 + $0x78] sm:$0xff] %vm1625_vm4, %v1464_v24 }
 0x212   :  { %1640 = vst.msk [vmem:[#allocation2 + $0x70] sm:$0xff] %vm1625_vm4, %v1462_v25  ;;  %1836 = vrot.lane.b32.xlu1 %v4160_v22, %s4674_s6  ;;  %v4192_v22 = vld [vmem:[%s7918_s0 + $0xc71] sm:$0xff] }
 0x213   :  { %1834 = vrot.lane.b32.xlu0 %v4159_v23, %s4674_s6  ;;  %v4191_v23 = vld [vmem:[%s7918_s0 + $0xc61] sm:$0xff] }
 0x214   :  { %v1468_v28 = vpop.permute.xlu1 %1467 }
 0x215   :  { %v1466_v29 = vpop.permute.xlu0 %1465  ;;  %1643 = vst.msk [vmem:[#allocation2 + $0x88] sm:$0xff] %vm1625_vm4, %v1468_v28 }
 0x216   :  { %1642 = vst.msk [vmem:[#allocation2 + $0x80] sm:$0xff] %vm1625_vm4, %v1466_v29  ;;  %1840 = vrot.lane.b32.xlu1 %v4162_v26, %s4674_s6  ;;  %v4194_v26 = vld [vmem:[%s7918_s0 + $0xc91] sm:$0xff] }
 0x217   :  { %1838 = vrot.lane.b32.xlu0 %v4161_v27, %s4674_s6  ;;  %v4193_v27 = vld [vmem:[%s7918_s0 + $0xc81] sm:$0xff] }
 0x218   :  { %v1472_v32 = vpop.permute.xlu1 %1471 }
 0x219   :  { %v1470_v33 = vpop.permute.xlu0 %1469  ;;  %1645 = vst.msk [vmem:[#allocation2 + $0x98] sm:$0xff] %vm1625_vm4, %v1472_v32 }
 0x21a   :  { %1644 = vst.msk [vmem:[#allocation2 + $0x90] sm:$0xff] %vm1625_vm4, %v1470_v33  ;;  %1844 = vrot.lane.b32.xlu1 %v4164_v30, %s4674_s6  ;;  %v4196_v30 = vld [vmem:[%s7918_s0 + $0xcb1] sm:$0xff] }
 0x21b   :  { %1842 = vrot.lane.b32.xlu0 %v4163_v31, %s4674_s6  ;;  %v4195_v31 = vld [vmem:[%s7918_s0 + $0xca1] sm:$0xff] }
 0x21c   :  { %v1476_v36 = vpop.permute.xlu1 %1475 }
 0x21d   :  { %v1474_v37 = vpop.permute.xlu0 %1473  ;;  %1647 = vst.msk [vmem:[#allocation2 + $0xa8] sm:$0xff] %vm1625_vm4, %v1476_v36 }
 0x21e   :  { %1646 = vst.msk [vmem:[#allocation2 + $0xa0] sm:$0xff] %vm1625_vm4, %v1474_v37  ;;  %1848 = vrot.lane.b32.xlu1 %v4166_v34, %s4674_s6  ;;  %v4198_v34 = vld [vmem:[%s7918_s0 + $0xcd1] sm:$0xff] }
 0x21f   :  { %1846 = vrot.lane.b32.xlu0 %v4165_v35, %s4674_s6  ;;  %v4197_v35 = vld [vmem:[%s7918_s0 + $0xcc1] sm:$0xff] }
 0x220   :  { %v1480_v40 = vpop.permute.xlu1 %1479 }
 0x221   :  { %v1478_v41 = vpop.permute.xlu0 %1477  ;;  %1649 = vst.msk [vmem:[#allocation2 + $0xb8] sm:$0xff] %vm1625_vm4, %v1480_v40 }
 0x222   :  { %1648 = vst.msk [vmem:[#allocation2 + $0xb0] sm:$0xff] %vm1625_vm4, %v1478_v41  ;;  %1852 = vrot.lane.b32.xlu1 %v4168_v38, %s4674_s6  ;;  %v4200_v38 = vld [vmem:[%s7918_s0 + $0xeb1] sm:$0xff] }
 0x223   :  { %1850 = vrot.lane.b32.xlu0 %v4167_v39, %s4674_s6  ;;  %v4199_v39 = vld [vmem:[%s7918_s0 + $0xea1] sm:$0xff] }
 0x224   :  { %v1484_v44 = vpop.permute.xlu1 %1483 }
 0x225   :  { %v1482_v45 = vpop.permute.xlu0 %1481  ;;  %1651 = vst.msk [vmem:[#allocation2 + $0xc8] sm:$0xff] %vm1625_vm4, %v1484_v44 }
 0x226   :  { %1650 = vst.msk [vmem:[#allocation2 + $0xc0] sm:$0xff] %vm1625_vm4, %v1482_v45  ;;  %1856 = vrot.lane.b32.xlu1 %v4170_v42, %s4674_s6  ;;  %v4202_v42 = vld [vmem:[%s7918_s0 + $0xed1] sm:$0xff] }
 0x227   :  { %1854 = vrot.lane.b32.xlu0 %v4169_v43, %s4674_s6  ;;  %v4201_v43 = vld [vmem:[%s7918_s0 + $0xec1] sm:$0xff] }
 0x228   :  { %v1488_v48 = vpop.permute.xlu1 %1487 }
 0x229   :  { %v1486_v49 = vpop.permute.xlu0 %1485  ;;  %1653 = vst.msk [vmem:[#allocation2 + $0xd8] sm:$0xff] %vm1625_vm4, %v1488_v48 }
 0x22a   :  { %1652 = vst.msk [vmem:[#allocation2 + $0xd0] sm:$0xff] %vm1625_vm4, %v1486_v49  ;;  %1860 = vrot.lane.b32.xlu1 %v4172_v46, %s4674_s6  ;;  %v4204_v46 = vld [vmem:[%s7918_s0 + $0xef1] sm:$0xff] }
 0x22b   :  { %1858 = vrot.lane.b32.xlu0 %v4171_v47, %s4674_s6  ;;  %v4203_v47 = vld [vmem:[%s7918_s0 + $0xee1] sm:$0xff] }
 0x22c   :  { %v1492_v52 = vpop.permute.xlu1 %1491 }
 0x22d   :  { %v1490_v53 = vpop.permute.xlu0 %1489  ;;  %1655 = vst.msk [vmem:[#allocation2 + $0xe8] sm:$0xff] %vm1625_vm4, %v1492_v52 }
 0x22e   :  { %1654 = vst.msk [vmem:[#allocation2 + $0xe0] sm:$0xff] %vm1625_vm4, %v1490_v53  ;;  %1864 = vrot.lane.b32.xlu1 %v4174_v50, %s4674_s6  ;;  %v4206_v50 = vld [vmem:[%s7918_s0 + $0xf11] sm:$0xff] }
 0x22f   :  { %1862 = vrot.lane.b32.xlu0 %v4173_v51, %s4674_s6  ;;  %v4205_v51 = vld [vmem:[%s7918_s0 + $0xf01] sm:$0xff] }
 0x230   :  { %v1496_v56 = vpop.permute.xlu1 %1495 }
 0x231   :  { %v1494_v57 = vpop.permute.xlu0 %1493  ;;  %1657 = vst.msk [vmem:[#allocation2 + $0xf8] sm:$0xff] %vm1625_vm4, %v1496_v56 }
 0x232   :  { %1656 = vst.msk [vmem:[#allocation2 + $0xf0] sm:$0xff] %vm1625_vm4, %v1494_v57  ;;  %1868 = vrot.lane.b32.xlu1 %v4176_v54, %s4674_s6  ;;  %v4208_v54 = vld [vmem:[%s7918_s0 + $0x10f1] sm:$0xff] }
 0x233   :  { %1866 = vrot.lane.b32.xlu0 %v4175_v55, %s4674_s6  ;;  %v4207_v55 = vld [vmem:[%s7918_s0 + $0x10e1] sm:$0xff] }
 0x234   :  { %v1500_v60 = vpop.permute.xlu1 %1499 }
 0x235   :  { %v1498_v61 = vpop.permute.xlu0 %1497  ;;  %1659 = vst.msk [vmem:[#allocation2 + $0x108] sm:$0xff] %vm1625_vm4, %v1500_v60 }
 0x236   :  { %1658 = vst.msk [vmem:[#allocation2 + $0x100] sm:$0xff] %vm1625_vm4, %v1498_v61  ;;  %1872 = vrot.lane.b32.xlu1 %v4178_v58, %s4674_s6  ;;  %v4210_v58 = vld [vmem:[%s7918_s0 + $0x1111] sm:$0xff] }
 0x237   :  { %1870 = vrot.lane.b32.xlu0 %v4177_v59, %s4674_s6  ;;  %v4209_v59 = vld [vmem:[%s7918_s0 + $0x1101] sm:$0xff] }
 0x238   :  { %v1504_v0 = vpop.permute.xlu1 %1503 }
 0x239   :  { %v1502_v1 = vpop.permute.xlu0 %1501  ;;  %1661 = vst.msk [vmem:[#allocation2 + $0x118] sm:$0xff] %vm1625_vm4, %v1504_v0 }
 0x23a   :  { %1660 = vst.msk [vmem:[#allocation2 + $0x110] sm:$0xff] %vm1625_vm4, %v1502_v1  ;;  %1876 = vrot.lane.b32.xlu1 %v4180_v62, %s4674_s6  ;;  %v4212_v62 = vld [vmem:[%s7918_s0 + $0x1131] sm:$0xff] }
 0x23b   :  { %1874 = vrot.lane.b32.xlu0 %v4179_v63, %s4674_s6  ;;  %v4211_v63 = vld [vmem:[%s7918_s0 + $0x1121] sm:$0xff] }
 0x23c   :  { %v1508_v4 = vpop.permute.xlu1 %1507 }
 0x23d   :  { %v1506_v5 = vpop.permute.xlu0 %1505  ;;  %1663 = vst.msk [vmem:[#allocation2 + $0x128] sm:$0xff] %vm1625_vm4, %v1508_v4 }
 0x23e   :  { %1662 = vst.msk [vmem:[#allocation2 + $0x120] sm:$0xff] %vm1625_vm4, %v1506_v5  ;;  %1880 = vrot.lane.b32.xlu1 %v4182_v2, %s4674_s6  ;;  %v4214_v2 = vld [vmem:[%s7918_s0 + $0x1151] sm:$0xff] }
 0x23f   :  { %1878 = vrot.lane.b32.xlu0 %v4181_v3, %s4674_s6  ;;  %v4213_v3 = vld [vmem:[%s7918_s0 + $0x1141] sm:$0xff] }
 0x240   :  { %v1512_v8 = vpop.permute.xlu1 %1511 }
 0x241   :  { %v1510_v9 = vpop.permute.xlu0 %1509  ;;  %1665 = vst.msk [vmem:[#allocation2 + $0x138] sm:$0xff] %vm1625_vm4, %v1512_v8 }
 0x242   :  { %1664 = vst.msk [vmem:[#allocation2 + $0x130] sm:$0xff] %vm1625_vm4, %v1510_v9  ;;  %1884 = vrot.lane.b32.xlu1 %v4184_v6, %s4674_s6  ;;  %v4216_v6 = vld [vmem:[%s7918_s0 + $0x20] sm:$0xff] }
 0x243   :  { %1882 = vrot.lane.b32.xlu0 %v4183_v7, %s4674_s6  ;;  %v4215_v7 = vld [vmem:[%s7918_s0 + $0x10] sm:$0xff] }
 0x244   :  { %v1516_v12 = vpop.permute.xlu1 %1515 }
 0x245   :  { %v1514_v13 = vpop.permute.xlu0 %1513  ;;  %1667 = vst.msk [vmem:[#allocation2 + $0x148] sm:$0xff] %vm1625_vm4, %v1516_v12 }
 0x246   :  { %1666 = vst.msk [vmem:[#allocation2 + $0x140] sm:$0xff] %vm1625_vm4, %v1514_v13  ;;  %1888 = vrot.lane.b32.xlu1 %v4186_v10, %s4674_s6  ;;  %v4218_v10 = vld [vmem:[%s7918_s0 + $0x40] sm:$0xff] }
 0x247   :  { %1886 = vrot.lane.b32.xlu0 %v4185_v11, %s4674_s6  ;;  %v4217_v11 = vld [vmem:[%s7918_s0 + $0x30] sm:$0xff] }
 0x248   :  { %v1520_v16 = vpop.permute.xlu1 %1519 }
 0x249   :  { %v1518_v17 = vpop.permute.xlu0 %1517  ;;  %1669 = vst.msk [vmem:[#allocation2 + $0x158] sm:$0xff] %vm1625_vm4, %v1520_v16 }
 0x24a   :  { %1668 = vst.msk [vmem:[#allocation2 + $0x150] sm:$0xff] %vm1625_vm4, %v1518_v17  ;;  %1892 = vrot.lane.b32.xlu1 %v4188_v14, %s4674_s6  ;;  %v4220_v14 = vld [vmem:[%s7918_s0 + $0x60] sm:$0xff] }
 0x24b   :  { %1890 = vrot.lane.b32.xlu0 %v4187_v15, %s4674_s6  ;;  %v4219_v15 = vld [vmem:[%s7918_s0 + $0x50] sm:$0xff] }
 0x24c   :  { %v1524_v20 = vpop.permute.xlu1 %1523 }
 0x24d   :  { %v1522_v21 = vpop.permute.xlu0 %1521  ;;  %1671 = vst.msk [vmem:[#allocation2 + $0x168] sm:$0xff] %vm1625_vm4, %v1524_v20 }
 0x24e   :  { %1670 = vst.msk [vmem:[#allocation2 + $0x160] sm:$0xff] %vm1625_vm4, %v1522_v21  ;;  %1896 = vrot.lane.b32.xlu1 %v4190_v18, %s4674_s6  ;;  %v4222_v18 = vld [vmem:[%s7918_s0 + $0x80] sm:$0xff] }
 0x24f   :  { %1894 = vrot.lane.b32.xlu0 %v4189_v19, %s4674_s6  ;;  %v4221_v19 = vld [vmem:[%s7918_s0 + $0x70] sm:$0xff] }
 0x250   :  { %v1528_v24 = vpop.permute.xlu1 %1527 }
 0x251   :  { %v1526_v25 = vpop.permute.xlu0 %1525  ;;  %1673 = vst.msk [vmem:[#allocation2 + $0x178] sm:$0xff] %vm1625_vm4, %v1528_v24 }
 0x252   :  { %1672 = vst.msk [vmem:[#allocation2 + $0x170] sm:$0xff] %vm1625_vm4, %v1526_v25  ;;  %1900 = vrot.lane.b32.xlu1 %v4192_v22, %s4674_s6  ;;  %v4224_v22 = vld [vmem:[%s7918_s0 + $0x260] sm:$0xff] }
 0x253   :  { %1898 = vrot.lane.b32.xlu0 %v4191_v23, %s4674_s6  ;;  %v4223_v23 = vld [vmem:[%s7918_s0 + $0x250] sm:$0xff] }
 0x254   :  { %v1532_v28 = vpop.permute.xlu1 %1531 }
 0x255   :  { %v1530_v29 = vpop.permute.xlu0 %1529  ;;  %1675 = vst.msk [vmem:[#allocation2 + $0x188] sm:$0xff] %vm1625_vm4, %v1532_v28 }
 0x256   :  { %1674 = vst.msk [vmem:[#allocation2 + $0x180] sm:$0xff] %vm1625_vm4, %v1530_v29  ;;  %1904 = vrot.lane.b32.xlu1 %v4194_v26, %s4674_s6  ;;  %v4226_v26 = vld [vmem:[%s7918_s0 + $0x280] sm:$0xff] }
 0x257   :  { %1902 = vrot.lane.b32.xlu0 %v4193_v27, %s4674_s6  ;;  %v4225_v27 = vld [vmem:[%s7918_s0 + $0x270] sm:$0xff] }
 0x258   :  { %v1536_v32 = vpop.permute.xlu1 %1535 }
 0x259   :  { %v1534_v33 = vpop.permute.xlu0 %1533  ;;  %1677 = vst.msk [vmem:[#allocation2 + $0x198] sm:$0xff] %vm1625_vm4, %v1536_v32 }
 0x25a   :  { %1676 = vst.msk [vmem:[#allocation2 + $0x190] sm:$0xff] %vm1625_vm4, %v1534_v33  ;;  %1908 = vrot.lane.b32.xlu1 %v4196_v30, %s4674_s6  ;;  %v4228_v30 = vld [vmem:[%s7918_s0 + $0x2a0] sm:$0xff] }
 0x25b   :  { %1906 = vrot.lane.b32.xlu0 %v4195_v31, %s4674_s6  ;;  %v4227_v31 = vld [vmem:[%s7918_s0 + $0x290] sm:$0xff] }
 0x25c   :  { %v1540_v36 = vpop.permute.xlu1 %1539 }
 0x25d   :  { %v1538_v37 = vpop.permute.xlu0 %1537  ;;  %1679 = vst.msk [vmem:[#allocation2 + $0x1a8] sm:$0xff] %vm1625_vm4, %v1540_v36 }
 0x25e   :  { %1678 = vst.msk [vmem:[#allocation2 + $0x1a0] sm:$0xff] %vm1625_vm4, %v1538_v37  ;;  %1912 = vrot.lane.b32.xlu1 %v4198_v34, %s4674_s6  ;;  %v4230_v34 = vld [vmem:[%s7918_s0 + $0x2c0] sm:$0xff] }
 0x25f   :  { %1910 = vrot.lane.b32.xlu0 %v4197_v35, %s4674_s6  ;;  %v4229_v35 = vld [vmem:[%s7918_s0 + $0x2b0] sm:$0xff] }
 0x260   :  { %v1544_v40 = vpop.permute.xlu1 %1543 }
 0x261   :  { %v1542_v41 = vpop.permute.xlu0 %1541  ;;  %1681 = vst.msk [vmem:[#allocation2 + $0x1b8] sm:$0xff] %vm1625_vm4, %v1544_v40 }
 0x262   :  { %1680 = vst.msk [vmem:[#allocation2 + $0x1b0] sm:$0xff] %vm1625_vm4, %v1542_v41  ;;  %1916 = vrot.lane.b32.xlu1 %v4200_v38, %s4674_s6  ;;  %v4232_v38 = vld [vmem:[%s7918_s0 + $0x4a0] sm:$0xff] }
 0x263   :  { %1914 = vrot.lane.b32.xlu0 %v4199_v39, %s4674_s6  ;;  %v4231_v39 = vld [vmem:[%s7918_s0 + $0x490] sm:$0xff] }
 0x264   :  { %v1548_v44 = vpop.permute.xlu1 %1547 }
 0x265   :  { %v1546_v45 = vpop.permute.xlu0 %1545  ;;  %1683 = vst.msk [vmem:[#allocation2 + $0x1c8] sm:$0xff] %vm1625_vm4, %v1548_v44 }
 0x266   :  { %1682 = vst.msk [vmem:[#allocation2 + $0x1c0] sm:$0xff] %vm1625_vm4, %v1546_v45  ;;  %1920 = vrot.lane.b32.xlu1 %v4202_v42, %s4674_s6  ;;  %v4234_v42 = vld [vmem:[%s7918_s0 + $0x4c0] sm:$0xff] }
 0x267   :  { %1918 = vrot.lane.b32.xlu0 %v4201_v43, %s4674_s6  ;;  %v4233_v43 = vld [vmem:[%s7918_s0 + $0x4b0] sm:$0xff] }
 0x268   :  { %v1552_v48 = vpop.permute.xlu1 %1551 }
 0x269   :  { %v1550_v49 = vpop.permute.xlu0 %1549  ;;  %1685 = vst.msk [vmem:[#allocation2 + $0x1d8] sm:$0xff] %vm1625_vm4, %v1552_v48 }
 0x26a   :  { %1684 = vst.msk [vmem:[#allocation2 + $0x1d0] sm:$0xff] %vm1625_vm4, %v1550_v49  ;;  %1924 = vrot.lane.b32.xlu1 %v4204_v46, %s4674_s6  ;;  %v4248_v46 = vld [vmem:[%s7918_s0 + $0x920] sm:$0xff] }
 0x26b   :  { %1922 = vrot.lane.b32.xlu0 %v4203_v47, %s4674_s6  ;;  %v4247_v47 = vld [vmem:[%s7918_s0 + $0x910] sm:$0xff] }
 0x26c   :  { %v1556_v52 = vpop.permute.xlu1 %1555 }
 0x26d   :  { %v1554_v53 = vpop.permute.xlu0 %1553  ;;  %1687 = vst.msk [vmem:[#allocation2 + $0x1e8] sm:$0xff] %vm1625_vm4, %v1556_v52 }
 0x26e   :  { %1686 = vst.msk [vmem:[#allocation2 + $0x1e0] sm:$0xff] %vm1625_vm4, %v1554_v53  ;;  %1928 = vrot.lane.b32.xlu1 %v4206_v50, %s4674_s6  ;;  %v3296_v50 = vld [vmem:[%s7919_s1] sm:$0xff] }
 0x26f   :  { %1926 = vrot.lane.b32.xlu0 %v4205_v51, %s4674_s6  ;;  %v3297_v51 = vld [vmem:[%s7919_s1 + $0x8] sm:$0xff]  ;;  %v4311_v53 = vld [vmem:[%s7918_s0 + $0x9a0] sm:$0xff] }
 0x270   :  { %v1560_v56 = vpop.permute.xlu1 %1559  ;;  %v4648_v52 = vpack.c.bf16 %v3297_v51, %v3296_v50  ;;  %v4253_v50 = vld [vmem:[%s7918_s0 + $0x970] sm:$0xff] }
 0x271   :  { %v1558_v57 = vpop.permute.xlu0 %1557  ;;  %1689 = vst.msk [vmem:[#allocation2 + $0x1f8] sm:$0xff] %vm1625_vm4, %v1560_v56 }
 0x272   :  { %1688 = vst.msk [vmem:[#allocation2 + $0x1f0] sm:$0xff] %vm1625_vm4, %v1558_v57  ;;  %1932 = vrot.lane.b32.xlu1 %v4208_v54, %s4674_s6  ;;  %v4279_v54 = vld [vmem:[%s7918_s0 + $0xa0] sm:$0xff]  ;;  %4649 = vmatprep.subr.bf16.mxu0 %v4648_v52  ;;  %v3298_v57 = vld [vmem:[%s7919_s1 + $0x10] sm:$0xff] }
 0x273   :  { %1930 = vrot.lane.b32.xlu0 %v4207_v55, %s4674_s6  ;;  %4656 = vmatprep.subr.bf16.mxu1 %v4648_v52 }
 0x274   :  { %v1821_v60 = vpop.permute.xlu1 %1820  ;;  %4651 = vmatpush3.bf16.msra.mxu0 %v4648_v52  ;;  %4659 = vmatpush3.bf16.msra.mxu1 %v4648_v52 }
 0x275   :  { %v1819_v61 = vpop.permute.xlu0 %1818  ;;  %2012 = vst.msk [vmem:[#allocation2 + $0x8] sm:$0xff] %vm2010_vm5, %v1821_v60  ;;  %v4312_v60 = vld [vmem:[%s7918_s0 + $0x9b0] sm:$0xff] }
 0x276   :  { %2011 = vst.msk [vmem:[#allocation2] sm:$0xff] %vm2010_vm5, %v1819_v61  ;;  %1936 = vrot.lane.b32.xlu1 %v4210_v58, %s4674_s6  ;;  %v3299_v58 = vld [vmem:[%s7919_s1 + $0x18] sm:$0xff]  ;;  %v4280_v61 = vld [vmem:[%s7918_s0 + $0xb0] sm:$0xff] }
 0x277   :  { %1934 = vrot.lane.b32.xlu0 %v4209_v59, %s4674_s6  ;;  %v4652_v59 = vpack.c.bf16 %v3299_v58, %v3298_v57  ;;  %v4318_v57 = vld [vmem:[%s7918_s0 + $0xa10] sm:$0xff] }
 0x278   :  { %v1825_v0 = vpop.permute.xlu1 %1824  ;;  %v4286_v58 = vld [vmem:[%s7918_s0 + $0x110] sm:$0xff] }
 0x279   :  { %v1823_v1 = vpop.permute.xlu0 %1822  ;;  %2014 = vst.msk [vmem:[#allocation2 + $0x18] sm:$0xff] %vm2010_vm5, %v1825_v0  ;;  %4653 = vmatprep.subr.bf16.mxu0 %v4652_v59  ;;  %4657 = vmatprep.subr.bf16.mxu1 %v4652_v59  ;;  %v3300_v0 = vld [vmem:[%s7919_s1 + $0x20] sm:$0xf]  ;;  %s4677_s1 = smov 32  }
 0x27a   :  { %2013 = vst.msk [vmem:[#allocation2 + $0x10] sm:$0xff] %vm2010_vm5, %v1823_v1  ;;  %1940 = vrot.lane.b32.xlu1 %v4212_v62, %s4674_s6  ;;  %4655 = vmatpush3.bf16.msra.mxu0 %v4652_v59  ;;  %v4375_v1 = vld [vmem:[%s7918_s0 + $0x911] sm:$0xff] }
 0x27b   :  { %1938 = vrot.lane.b32.xlu0 %v4211_v63, %s4674_s6  ;;  %4660 = vmatpush3.bf16.msra.mxu1 %v4652_v59 }
 0x27c   :  { %v1829_v4 = vpop.permute.xlu1 %1828  ;;  %4550 = vmatprep.subr.msk.mxu0 %vm3501_vm6, %v3300_v0  ;;  %4658 = vmatprep.subr.msk.mxu1 %vm3501_vm6, %v3300_v0 }
 0x27d   :  { %v1827_v5 = vpop.permute.xlu0 %1826  ;;  %2016 = vst.msk [vmem:[#allocation2 + $0x28] sm:$0xff] %vm2010_vm5, %v1829_v4 }
 0x27e   :  { %2015 = vst.msk [vmem:[#allocation2 + $0x20] sm:$0xff] %vm2010_vm5, %v1827_v5  ;;  %1944 = vrot.lane.b32.xlu1 %v4214_v2, %s4674_s6  ;;  %v4343_v2 = vld [vmem:[%s7918_s0 + $0x11] sm:$0xff]  ;;  %4551 = vmatpush3.msk.msra.mxu0 %vm3501_vm6, %v3300_v0  ;;  %v4376_v5 = vld [vmem:[%s7918_s0 + $0x921] sm:$0xff] }
 0x27f   :  { %1942 = vrot.lane.b32.xlu0 %v4213_v3, %s4674_s6  ;;  %s4676_s6 = smov 28   ;;  %4661 = vmatpush3.msk.msra.mxu1 %vm3501_vm6, %v3300_v0 }
 0x280   :  { %v1833_v8 = vpop.permute.xlu1 %1832 }
 0x281   :  { %v1831_v9 = vpop.permute.xlu0 %1830  ;;  %2018 = vst.msk [vmem:[#allocation2 + $0x38] sm:$0xff] %vm2010_vm5, %v1833_v8 }
 0x282   :  { %2017 = vst.msk [vmem:[#allocation2 + $0x30] sm:$0xff] %vm2010_vm5, %v1831_v9  ;;  %2206 = vrot.lane.b32.xlu1 %v4216_v6, %s4675_s4  ;;  %v4344_v6 = vld [vmem:[%s7918_s0 + $0x21] sm:$0xff] }
 0x283   :  { %2204 = vrot.lane.b32.xlu0 %v4215_v7, %s4675_s4  ;;  %v4250_v9 = vld [vmem:[%s7918_s0 + $0x940] sm:$0xff] }
 0x284   :  { %v1837_v12 = vpop.permute.xlu1 %1836 }
 0x285   :  { %v1835_v13 = vpop.permute.xlu0 %1834  ;;  %2020 = vst.msk [vmem:[#allocation2 + $0x48] sm:$0xff] %vm2010_vm5, %v1837_v12 }
 0x286   :  { %2019 = vst.msk [vmem:[#allocation2 + $0x40] sm:$0xff] %vm2010_vm5, %v1835_v13  ;;  %2210 = vrot.lane.b32.xlu1 %v4218_v10, %s4675_s4  ;;  %v4249_v10 = vld [vmem:[%s7918_s0 + $0x930] sm:$0xff]  ;;  %v4313_v13 = vld [vmem:[%s7918_s0 + $0x9c0] sm:$0xff] }
 0x287   :  { %2208 = vrot.lane.b32.xlu0 %v4217_v11, %s4675_s4 }
 0x288   :  { %v1841_v16 = vpop.permute.xlu1 %1840 }
 0x289   :  { %v1839_v17 = vpop.permute.xlu0 %1838  ;;  %2022 = vst.msk [vmem:[#allocation2 + $0x58] sm:$0xff] %vm2010_vm5, %v1841_v16 }
 0x28a   :  { %2021 = vst.msk [vmem:[#allocation2 + $0x50] sm:$0xff] %vm2010_vm5, %v1839_v17  ;;  %2214 = vrot.lane.b32.xlu1 %v4220_v14, %s4675_s4  ;;  %v4281_v14 = vld [vmem:[%s7918_s0 + $0xc0] sm:$0xff]  ;;  %v4314_v17 = vld [vmem:[%s7918_s0 + $0x9d0] sm:$0xff] }
 0x28b   :  { %2212 = vrot.lane.b32.xlu0 %v4219_v15, %s4675_s4 }
 0x28c   :  { %v1845_v20 = vpop.permute.xlu1 %1844 }
 0x28d   :  { %v1843_v21 = vpop.permute.xlu0 %1842  ;;  %2024 = vst.msk [vmem:[#allocation2 + $0x68] sm:$0xff] %vm2010_vm5, %v1845_v20 }
 0x28e   :  { %2023 = vst.msk [vmem:[#allocation2 + $0x60] sm:$0xff] %vm2010_vm5, %v1843_v21  ;;  %2218 = vrot.lane.b32.xlu1 %v4222_v18, %s4675_s4  ;;  %v4282_v18 = vld [vmem:[%s7918_s0 + $0xd0] sm:$0xff] }
 0x28f   :  { %2216 = vrot.lane.b32.xlu0 %v4221_v19, %s4675_s4  ;;  %v4377_v21 = vld [vmem:[%s7918_s0 + $0x931] sm:$0xff] }
 0x290   :  { %v1849_v24 = vpop.permute.xlu1 %1848 }
 0x291   :  { %v1847_v25 = vpop.permute.xlu0 %1846  ;;  %2026 = vst.msk [vmem:[#allocation2 + $0x78] sm:$0xff] %vm2010_vm5, %v1849_v24 }
 0x292   :  { %2025 = vst.msk [vmem:[#allocation2 + $0x70] sm:$0xff] %vm2010_vm5, %v1847_v25  ;;  %2222 = vrot.lane.b32.xlu1 %v4224_v22, %s4675_s4  ;;  %v4345_v22 = vld [vmem:[%s7918_s0 + $0x31] sm:$0xff]  ;;  %v4378_v25 = vld [vmem:[%s7918_s0 + $0x941] sm:$0xff] }
 0x293   :  { %2220 = vrot.lane.b32.xlu0 %v4223_v23, %s4675_s4 }
 0x294   :  { %v1853_v28 = vpop.permute.xlu1 %1852 }
 0x295   :  { %v1851_v29 = vpop.permute.xlu0 %1850  ;;  %2028 = vst.msk [vmem:[#allocation2 + $0x88] sm:$0xff] %vm2010_vm5, %v1853_v28 }
 0x296   :  { %2027 = vst.msk [vmem:[#allocation2 + $0x80] sm:$0xff] %vm2010_vm5, %v1851_v29  ;;  %2226 = vrot.lane.b32.xlu1 %v4226_v26, %s4675_s4  ;;  %v4346_v26 = vld [vmem:[%s7918_s0 + $0x41] sm:$0xff] }
 0x297   :  { %2224 = vrot.lane.b32.xlu0 %v4225_v27, %s4675_s4  ;;  %v4252_v29 = vld [vmem:[%s7918_s0 + $0x960] sm:$0xff] }
 0x298   :  { %v1857_v32 = vpop.permute.xlu1 %1856 }
 0x299   :  { %v1855_v33 = vpop.permute.xlu0 %1854  ;;  %2030 = vst.msk [vmem:[#allocation2 + $0x98] sm:$0xff] %vm2010_vm5, %v1857_v32 }
 0x29a   :  { %2029 = vst.msk [vmem:[#allocation2 + $0x90] sm:$0xff] %vm2010_vm5, %v1855_v33  ;;  %2230 = vrot.lane.b32.xlu1 %v4228_v30, %s4675_s4  ;;  %v4251_v30 = vld [vmem:[%s7918_s0 + $0x950] sm:$0xff]  ;;  %v4315_v33 = vld [vmem:[%s7918_s0 + $0x9e0] sm:$0xff] }
 0x29b   :  { %2228 = vrot.lane.b32.xlu0 %v4227_v31, %s4675_s4 }
 0x29c   :  { %v1861_v36 = vpop.permute.xlu1 %1860 }
 0x29d   :  { %v1859_v37 = vpop.permute.xlu0 %1858  ;;  %2032 = vst.msk [vmem:[#allocation2 + $0xa8] sm:$0xff] %vm2010_vm5, %v1861_v36 }
 0x29e   :  { %2031 = vst.msk [vmem:[#allocation2 + $0xa0] sm:$0xff] %vm2010_vm5, %v1859_v37  ;;  %2234 = vrot.lane.b32.xlu1 %v4230_v34, %s4675_s4  ;;  %v4283_v34 = vld [vmem:[%s7918_s0 + $0xe0] sm:$0xff]  ;;  %v4316_v37 = vld [vmem:[%s7918_s0 + $0x9f0] sm:$0xff] }
 0x29f   :  { %2232 = vrot.lane.b32.xlu0 %v4229_v35, %s4675_s4 }
 0x2a0   :  { %v1865_v40 = vpop.permute.xlu1 %1864 }
 0x2a1   :  { %v1863_v41 = vpop.permute.xlu0 %1862  ;;  %2034 = vst.msk [vmem:[#allocation2 + $0xb8] sm:$0xff] %vm2010_vm5, %v1865_v40 }
 0x2a2   :  { %2033 = vst.msk [vmem:[#allocation2 + $0xb0] sm:$0xff] %vm2010_vm5, %v1863_v41  ;;  %2238 = vrot.lane.b32.xlu1 %v4232_v38, %s4675_s4  ;;  %v4284_v38 = vld [vmem:[%s7918_s0 + $0xf0] sm:$0xff] }
 0x2a3   :  { %2236 = vrot.lane.b32.xlu0 %v4231_v39, %s4675_s4  ;;  %v4379_v41 = vld [vmem:[%s7918_s0 + $0x951] sm:$0xff] }
 0x2a4   :  { %v1869_v44 = vpop.permute.xlu1 %1868 }
 0x2a5   :  { %v1867_v45 = vpop.permute.xlu0 %1866  ;;  %2036 = vst.msk [vmem:[#allocation2 + $0xc8] sm:$0xff] %vm2010_vm5, %v1869_v44 }
 0x2a6   :  { %2035 = vst.msk [vmem:[#allocation2 + $0xc0] sm:$0xff] %vm2010_vm5, %v1867_v45  ;;  %2242 = vrot.lane.b32.xlu1 %v4234_v42, %s4675_s4  ;;  %v4347_v42 = vld [vmem:[%s7918_s0 + $0x51] sm:$0xff]  ;;  %v4380_v45 = vld [vmem:[%s7918_s0 + $0x961] sm:$0xff] }
 0x2a7   :  { %2240 = vrot.lane.b32.xlu0 %v4233_v43, %s4675_s4 }
 0x2a8   :  { %v1873_v48 = vpop.permute.xlu1 %1872 }
 0x2a9   :  { %v1871_v49 = vpop.permute.xlu0 %1870  ;;  %2038 = vst.msk [vmem:[#allocation2 + $0xd8] sm:$0xff] %vm2010_vm5, %v1873_v48 }
 0x2aa   :  { %2037 = vst.msk [vmem:[#allocation2 + $0xd0] sm:$0xff] %vm2010_vm5, %v1871_v49  ;;  %2270 = vrot.lane.b32.xlu1 %v4248_v46, %s4675_s4  ;;  %v4348_v46 = vld [vmem:[%s7918_s0 + $0x61] sm:$0xff] }
 0x2ab   :  { %2268 = vrot.lane.b32.xlu0 %v4247_v47, %s4675_s4  ;;  %v4254_v49 = vld [vmem:[%s7918_s0 + $0x980] sm:$0xff] }
 0x2ac   :  { %v1877_v55 = vpop.permute.xlu1 %1876 }
 0x2ad   :  { %v1875_v56 = vpop.permute.xlu0 %1874  ;;  %2040 = vst.msk [vmem:[#allocation2 + $0xe8] sm:$0xff] %vm2010_vm5, %v1877_v55 }
 0x2ae   :  { %2039 = vst.msk [vmem:[#allocation2 + $0xe0] sm:$0xff] %vm2010_vm5, %v1875_v56  ;;  %2654 = vrot.lane.b32.xlu1 %v4311_v53, %s4676_s6  ;;  %v4317_v53 = vld [vmem:[%s7918_s0 + $0xa00] sm:$0xff] }
 0x2af   :  { %2590 = vrot.lane.b32.xlu0 %v4279_v54, %s4676_s6  ;;  %v4285_v54 = vld [vmem:[%s7918_s0 + $0x100] sm:$0xff] }
 0x2b0   :  { %v1881_v62 = vpop.permute.xlu1 %1880 }
 0x2b1   :  { %v1879_v63 = vpop.permute.xlu0 %1878  ;;  %2042 = vst.msk [vmem:[#allocation2 + $0xf8] sm:$0xff] %vm2010_vm5, %v1881_v62  ;;  %v4349_v62 = vld [vmem:[%s7918_s0 + $0x71] sm:$0xff] }
 0x2b2   :  { %2041 = vst.msk [vmem:[#allocation2 + $0xf0] sm:$0xff] %vm2010_vm5, %v1879_v63  ;;  %2656 = vrot.lane.b32.xlu1 %v4312_v60, %s4676_s6 }
 0x2b3   :  { %2592 = vrot.lane.b32.xlu0 %v4280_v61, %s4676_s6  ;;  %v4381_v61 = vld [vmem:[%s7918_s0 + $0x971] sm:$0xff] }
 0x2b4   :  { %v1885_v3 = vpop.permute.xlu1 %1884 }
 0x2b5   :  { %v1883_v4 = vpop.permute.xlu0 %1882  ;;  %2044 = vst.msk [vmem:[#allocation2 + $0x108] sm:$0xff] %vm2010_vm5, %v1885_v3 }
 0x2b6   :  { %2043 = vst.msk [vmem:[#allocation2 + $0x100] sm:$0xff] %vm2010_vm5, %v1883_v4  ;;  %3039 = vrot.lane.b32.xlu1 %v4375_v1, %s4677_s1  ;;  %v4382_v1 = vld [vmem:[%s7918_s0 + $0x981] sm:$0xff] }
 0x2b7   :  { %2975 = vrot.lane.b32.xlu0 %v4343_v2, %s4677_s1  ;;  %v4350_v2 = vld [vmem:[%s7918_s0 + $0x81] sm:$0xff] }
 0x2b8   :  { %v1889_v7 = vpop.permute.xlu1 %1888 }
 0x2b9   :  { %v1887_v8 = vpop.permute.xlu0 %1886  ;;  %2046 = vst.msk [vmem:[#allocation2 + $0x118] sm:$0xff] %vm2010_vm5, %v1889_v7 }
 0x2ba   :  { %2045 = vst.msk [vmem:[#allocation2 + $0x110] sm:$0xff] %vm2010_vm5, %v1887_v8  ;;  %3041 = vrot.lane.b32.xlu1 %v4376_v5, %s4677_s1  ;;  %v4256_v5 = vld [vmem:[%s7918_s0 + $0xb60] sm:$0xff] }
 0x2bb   :  { %2977 = vrot.lane.b32.xlu0 %v4344_v6, %s4677_s1  ;;  %v4255_v6 = vld [vmem:[%s7918_s0 + $0xb50] sm:$0xff] }
 0x2bc   :  { %v1893_v11 = vpop.permute.xlu1 %1892 }
 0x2bd   :  { %v1891_v12 = vpop.permute.xlu0 %1890  ;;  %2048 = vst.msk [vmem:[#allocation2 + $0x128] sm:$0xff] %vm2010_vm5, %v1893_v11 }
 0x2be   :  { %2047 = vst.msk [vmem:[#allocation2 + $0x120] sm:$0xff] %vm2010_vm5, %v1891_v12  ;;  %2274 = vrot.lane.b32.xlu1 %v4250_v9, %s4675_s4  ;;  %v4319_v9 = vld [vmem:[%s7918_s0 + $0xbe0] sm:$0xff] }
 0x2bf   :  { %2272 = vrot.lane.b32.xlu0 %v4249_v10, %s4675_s4  ;;  %v4287_v10 = vld [vmem:[%s7918_s0 + $0x2e0] sm:$0xff] }
 0x2c0   :  { %v1897_v15 = vpop.permute.xlu1 %1896 }
 0x2c1   :  { %v1895_v16 = vpop.permute.xlu0 %1894  ;;  %2050 = vst.msk [vmem:[#allocation2 + $0x138] sm:$0xff] %vm2010_vm5, %v1897_v15 }
 0x2c2   :  { %2049 = vst.msk [vmem:[#allocation2 + $0x130] sm:$0xff] %vm2010_vm5, %v1895_v16  ;;  %2658 = vrot.lane.b32.xlu1 %v4313_v13, %s4676_s6  ;;  %v4320_v13 = vld [vmem:[%s7918_s0 + $0xbf0] sm:$0xff] }
 0x2c3   :  { %2594 = vrot.lane.b32.xlu0 %v4281_v14, %s4676_s6  ;;  %v4288_v14 = vld [vmem:[%s7918_s0 + $0x2f0] sm:$0xff] }
 0x2c4   :  { %v1901_v19 = vpop.permute.xlu1 %1900 }
 0x2c5   :  { %v1899_v20 = vpop.permute.xlu0 %1898  ;;  %2052 = vst.msk [vmem:[#allocation2 + $0x148] sm:$0xff] %vm2010_vm5, %v1901_v19 }
 0x2c6   :  { %2051 = vst.msk [vmem:[#allocation2 + $0x140] sm:$0xff] %vm2010_vm5, %v1899_v20  ;;  %2660 = vrot.lane.b32.xlu1 %v4314_v17, %s4676_s6  ;;  %v4383_v17 = vld [vmem:[%s7918_s0 + $0xb51] sm:$0xff] }
 0x2c7   :  { %2596 = vrot.lane.b32.xlu0 %v4282_v18, %s4676_s6  ;;  %v4351_v18 = vld [vmem:[%s7918_s0 + $0x251] sm:$0xff] }
 0x2c8   :  { %v1905_v23 = vpop.permute.xlu1 %1904 }
 0x2c9   :  { %v1903_v24 = vpop.permute.xlu0 %1902  ;;  %2054 = vst.msk [vmem:[#allocation2 + $0x158] sm:$0xff] %vm2010_vm5, %v1905_v23 }
 0x2ca   :  { %2053 = vst.msk [vmem:[#allocation2 + $0x150] sm:$0xff] %vm2010_vm5, %v1903_v24  ;;  %3043 = vrot.lane.b32.xlu1 %v4377_v21, %s4677_s1  ;;  %v4384_v21 = vld [vmem:[%s7918_s0 + $0xb61] sm:$0xff] }
 0x2cb   :  { %2979 = vrot.lane.b32.xlu0 %v4345_v22, %s4677_s1  ;;  %v4352_v22 = vld [vmem:[%s7918_s0 + $0x261] sm:$0xff] }
 0x2cc   :  { %v1909_v27 = vpop.permute.xlu1 %1908 }
 0x2cd   :  { %v1907_v28 = vpop.permute.xlu0 %1906  ;;  %2056 = vst.msk [vmem:[#allocation2 + $0x168] sm:$0xff] %vm2010_vm5, %v1909_v27 }
 0x2ce   :  { %2055 = vst.msk [vmem:[#allocation2 + $0x160] sm:$0xff] %vm2010_vm5, %v1907_v28  ;;  %3045 = vrot.lane.b32.xlu1 %v4378_v25, %s4677_s1  ;;  %v4258_v25 = vld [vmem:[%s7918_s0 + $0xb80] sm:$0xff] }
 0x2cf   :  { %2981 = vrot.lane.b32.xlu0 %v4346_v26, %s4677_s1  ;;  %v4257_v26 = vld [vmem:[%s7918_s0 + $0xb70] sm:$0xff] }
 0x2d0   :  { %v1913_v31 = vpop.permute.xlu1 %1912 }
 0x2d1   :  { %v1911_v32 = vpop.permute.xlu0 %1910  ;;  %2058 = vst.msk [vmem:[#allocation2 + $0x178] sm:$0xff] %vm2010_vm5, %v1913_v31 }
 0x2d2   :  { %2057 = vst.msk [vmem:[#allocation2 + $0x170] sm:$0xff] %vm2010_vm5, %v1911_v32  ;;  %2278 = vrot.lane.b32.xlu1 %v4252_v29, %s4675_s4  ;;  %v4321_v29 = vld [vmem:[%s7918_s0 + $0xc00] sm:$0xff] }
 0x2d3   :  { %2276 = vrot.lane.b32.xlu0 %v4251_v30, %s4675_s4  ;;  %v4289_v30 = vld [vmem:[%s7918_s0 + $0x300] sm:$0xff] }
 0x2d4   :  { %v1917_v35 = vpop.permute.xlu1 %1916 }
 0x2d5   :  { %v1915_v36 = vpop.permute.xlu0 %1914  ;;  %2060 = vst.msk [vmem:[#allocation2 + $0x188] sm:$0xff] %vm2010_vm5, %v1917_v35 }
 0x2d6   :  { %2059 = vst.msk [vmem:[#allocation2 + $0x180] sm:$0xff] %vm2010_vm5, %v1915_v36  ;;  %2662 = vrot.lane.b32.xlu1 %v4315_v33, %s4676_s6  ;;  %v4322_v33 = vld [vmem:[%s7918_s0 + $0xc10] sm:$0xff] }
 0x2d7   :  { %2598 = vrot.lane.b32.xlu0 %v4283_v34, %s4676_s6  ;;  %v4290_v34 = vld [vmem:[%s7918_s0 + $0x310] sm:$0xff] }
 0x2d8   :  { %v1921_v39 = vpop.permute.xlu1 %1920 }
 0x2d9   :  { %v1919_v40 = vpop.permute.xlu0 %1918  ;;  %2062 = vst.msk [vmem:[#allocation2 + $0x198] sm:$0xff] %vm2010_vm5, %v1921_v39 }
 0x2da   :  { %2061 = vst.msk [vmem:[#allocation2 + $0x190] sm:$0xff] %vm2010_vm5, %v1919_v40  ;;  %2664 = vrot.lane.b32.xlu1 %v4316_v37, %s4676_s6  ;;  %v4385_v37 = vld [vmem:[%s7918_s0 + $0xb71] sm:$0xff] }
 0x2db   :  { %2600 = vrot.lane.b32.xlu0 %v4284_v38, %s4676_s6  ;;  %v4353_v38 = vld [vmem:[%s7918_s0 + $0x271] sm:$0xff] }
 0x2dc   :  { %v1925_v43 = vpop.permute.xlu1 %1924 }
 0x2dd   :  { %v1923_v44 = vpop.permute.xlu0 %1922  ;;  %2064 = vst.msk [vmem:[#allocation2 + $0x1a8] sm:$0xff] %vm2010_vm5, %v1925_v43 }
 0x2de   :  { %2063 = vst.msk [vmem:[#allocation2 + $0x1a0] sm:$0xff] %vm2010_vm5, %v1923_v44  ;;  %3047 = vrot.lane.b32.xlu1 %v4379_v41, %s4677_s1  ;;  %v4386_v41 = vld [vmem:[%s7918_s0 + $0xb81] sm:$0xff] }
 0x2df   :  { %2983 = vrot.lane.b32.xlu0 %v4347_v42, %s4677_s1  ;;  %v4354_v42 = vld [vmem:[%s7918_s0 + $0x281] sm:$0xff] }
 0x2e0   :  { %v1929_v47 = vpop.permute.xlu1 %1928 }
 0x2e1   :  { %v1927_v48 = vpop.permute.xlu0 %1926  ;;  %2066 = vst.msk [vmem:[#allocation2 + $0x1b8] sm:$0xff] %vm2010_vm5, %v1929_v47 }
 0x2e2   :  { %2065 = vst.msk [vmem:[#allocation2 + $0x1b0] sm:$0xff] %vm2010_vm5, %v1927_v48  ;;  %3049 = vrot.lane.b32.xlu1 %v4380_v45, %s4677_s1  ;;  %v4260_v45 = vld [vmem:[%s7918_s0 + $0xba0] sm:$0xff] }
 0x2e3   :  { %2985 = vrot.lane.b32.xlu0 %v4348_v46, %s4677_s1  ;;  %v4259_v46 = vld [vmem:[%s7918_s0 + $0xb90] sm:$0xff] }
 0x2e4   :  { %v1933_v51 = vpop.permute.xlu1 %1932 }
 0x2e5   :  { %v1931_v52 = vpop.permute.xlu0 %1930  ;;  %2068 = vst.msk [vmem:[#allocation2 + $0x1c8] sm:$0xff] %vm2010_vm5, %v1933_v51 }
 0x2e6   :  { %2067 = vst.msk [vmem:[#allocation2 + $0x1c0] sm:$0xff] %vm2010_vm5, %v1931_v52  ;;  %2282 = vrot.lane.b32.xlu1 %v4254_v49, %s4675_s4  ;;  %v4323_v49 = vld [vmem:[%s7918_s0 + $0xc20] sm:$0xff] }
 0x2e7   :  { %2280 = vrot.lane.b32.xlu0 %v4253_v50, %s4675_s4  ;;  %v4291_v50 = vld [vmem:[%s7918_s0 + $0x320] sm:$0xff] }
 0x2e8   :  { %v1937_v55 = vpop.permute.xlu1 %1936 }
 0x2e9   :  { %v1935_v56 = vpop.permute.xlu0 %1934  ;;  %2070 = vst.msk [vmem:[#allocation2 + $0x1d8] sm:$0xff] %vm2010_vm5, %v1937_v55 }
 0x2ea   :  { %2069 = vst.msk [vmem:[#allocation2 + $0x1d0] sm:$0xff] %vm2010_vm5, %v1935_v56  ;;  %2666 = vrot.lane.b32.xlu1 %v4317_v53, %s4676_s6  ;;  %v4324_v53 = vld [vmem:[%s7918_s0 + $0xc30] sm:$0xff] }
 0x2eb   :  { %2602 = vrot.lane.b32.xlu0 %v4285_v54, %s4676_s6  ;;  %v4292_v54 = vld [vmem:[%s7918_s0 + $0x330] sm:$0xff] }
 0x2ec   :  { %v1941_v59 = vpop.permute.xlu1 %1940 }
 0x2ed   :  { %v1939_v60 = vpop.permute.xlu0 %1938  ;;  %2072 = vst.msk [vmem:[#allocation2 + $0x1e8] sm:$0xff] %vm2010_vm5, %v1941_v59 }
 0x2ee   :  { %2071 = vst.msk [vmem:[#allocation2 + $0x1e0] sm:$0xff] %vm2010_vm5, %v1939_v60  ;;  %2668 = vrot.lane.b32.xlu1 %v4318_v57, %s4676_s6  ;;  %v4387_v57 = vld [vmem:[%s7918_s0 + $0xb91] sm:$0xff] }
 0x2ef   :  { %2604 = vrot.lane.b32.xlu0 %v4286_v58, %s4676_s6  ;;  %v4355_v58 = vld [vmem:[%s7918_s0 + $0x291] sm:$0xff] }
 0x2f0   :  { %v1945_v63 = vpop.permute.xlu1 %1944 }
 0x2f1   :  { %v1943_v0 = vpop.permute.xlu0 %1942  ;;  %2074 = vst.msk [vmem:[#allocation2 + $0x1f8] sm:$0xff] %vm2010_vm5, %v1945_v63 }
 0x2f2   :  { %2073 = vst.msk [vmem:[#allocation2 + $0x1f0] sm:$0xff] %vm2010_vm5, %v1943_v0  ;;  %3051 = vrot.lane.b32.xlu1 %v4381_v61, %s4677_s1  ;;  %v4388_v61 = vld [vmem:[%s7918_s0 + $0xba1] sm:$0xff] }
 0x2f3   :  { %2987 = vrot.lane.b32.xlu0 %v4349_v62, %s4677_s1  ;;  %v4356_v62 = vld [vmem:[%s7918_s0 + $0x2a1] sm:$0xff] }
 0x2f4   :  { %v2207_v3 = vpop.permute.xlu1 %2206 }
 0x2f5   :  { %v2205_v4 = vpop.permute.xlu0 %2204  ;;  %2398 = vst.msk [vmem:[#allocation2 + $0x8] sm:$0xff] %vm2396_vm7, %v2207_v3  ;;  %v4262_v3 = vld [vmem:[%s7918_s0 + $0xbc0] sm:$0xff] }
 0x2f6   :  { %2397 = vst.msk [vmem:[#allocation2] sm:$0xff] %vm2396_vm7, %v2205_v4  ;;  %3053 = vrot.lane.b32.xlu1 %v4382_v1, %s4677_s1  ;;  %v4261_v4 = vld [vmem:[%s7918_s0 + $0xbb0] sm:$0xff] }
 0x2f7   :  { %2989 = vrot.lane.b32.xlu0 %v4350_v2, %s4677_s1 }
 0x2f8   :  { %v2211_v7 = vpop.permute.xlu1 %2210 }
 0x2f9   :  { %v2209_v8 = vpop.permute.xlu0 %2208  ;;  %2400 = vst.msk [vmem:[#allocation2 + $0x18] sm:$0xff] %vm2396_vm7, %v2211_v7 }
 0x2fa   :  { %2399 = vst.msk [vmem:[#allocation2 + $0x10] sm:$0xff] %vm2396_vm7, %v2209_v8  ;;  %2286 = vrot.lane.b32.xlu1 %v4256_v5, %s4675_s4 }
 0x2fb   :  { %2284 = vrot.lane.b32.xlu0 %v4255_v6, %s4675_s4 }
 0x2fc   :  { %v2215_v11 = vpop.permute.xlu1 %2214 }
 0x2fd   :  { %v2213_v12 = vpop.permute.xlu0 %2212  ;;  %2402 = vst.msk [vmem:[#allocation2 + $0x28] sm:$0xff] %vm2396_vm7, %v2215_v11 }
 0x2fe   :  { %2401 = vst.msk [vmem:[#allocation2 + $0x20] sm:$0xff] %vm2396_vm7, %v2213_v12  ;;  %2670 = vrot.lane.b32.xlu1 %v4319_v9, %s4676_s6  ;;  %v4325_v9 = vld [vmem:[%s7918_s0 + $0xc40] sm:$0xff] }
 0x2ff   :  { %2606 = vrot.lane.b32.xlu0 %v4287_v10, %s4676_s6  ;;  %v4293_v10 = vld [vmem:[%s7918_s0 + $0x340] sm:$0xff] }
 0x300   :  { %v2219_v15 = vpop.permute.xlu1 %2218 }
 0x301   :  { %v2217_v16 = vpop.permute.xlu0 %2216  ;;  %2404 = vst.msk [vmem:[#allocation2 + $0x38] sm:$0xff] %vm2396_vm7, %v2219_v15 }
 0x302   :  { %2403 = vst.msk [vmem:[#allocation2 + $0x30] sm:$0xff] %vm2396_vm7, %v2217_v16  ;;  %2672 = vrot.lane.b32.xlu1 %v4320_v13, %s4676_s6  ;;  %v4326_v13 = vld [vmem:[%s7918_s0 + $0xc50] sm:$0xff] }
 0x303   :  { %2608 = vrot.lane.b32.xlu0 %v4288_v14, %s4676_s6  ;;  %v4294_v14 = vld [vmem:[%s7918_s0 + $0x350] sm:$0xff] }
 0x304   :  { %v2223_v19 = vpop.permute.xlu1 %2222 }
 0x305   :  { %v2221_v20 = vpop.permute.xlu0 %2220  ;;  %2406 = vst.msk [vmem:[#allocation2 + $0x48] sm:$0xff] %vm2396_vm7, %v2223_v19 }
 0x306   :  { %2405 = vst.msk [vmem:[#allocation2 + $0x40] sm:$0xff] %vm2396_vm7, %v2221_v20  ;;  %3055 = vrot.lane.b32.xlu1 %v4383_v17, %s4677_s1  ;;  %v4389_v17 = vld [vmem:[%s7918_s0 + $0xbb1] sm:$0xff] }
 0x307   :  { %2991 = vrot.lane.b32.xlu0 %v4351_v18, %s4677_s1  ;;  %v4357_v18 = vld [vmem:[%s7918_s0 + $0x2b1] sm:$0xff] }
 0x308   :  { %v2227_v23 = vpop.permute.xlu1 %2226 }
 0x309   :  { %v2225_v24 = vpop.permute.xlu0 %2224  ;;  %2408 = vst.msk [vmem:[#allocation2 + $0x58] sm:$0xff] %vm2396_vm7, %v2227_v23 }
 0x30a   :  { %2407 = vst.msk [vmem:[#allocation2 + $0x50] sm:$0xff] %vm2396_vm7, %v2225_v24  ;;  %3057 = vrot.lane.b32.xlu1 %v4384_v21, %s4677_s1  ;;  %v4390_v21 = vld [vmem:[%s7918_s0 + $0xbc1] sm:$0xff] }
 0x30b   :  { %2993 = vrot.lane.b32.xlu0 %v4352_v22, %s4677_s1  ;;  %v4358_v22 = vld [vmem:[%s7918_s0 + $0x2c1] sm:$0xff] }
 0x30c   :  { %v2231_v27 = vpop.permute.xlu1 %2230 }
 0x30d   :  { %v2229_v28 = vpop.permute.xlu0 %2228  ;;  %2410 = vst.msk [vmem:[#allocation2 + $0x68] sm:$0xff] %vm2396_vm7, %v2231_v27  ;;  %v4264_v27 = vld [vmem:[%s7918_s0 + $0xda0] sm:$0xff] }
 0x30e   :  { %2409 = vst.msk [vmem:[#allocation2 + $0x60] sm:$0xff] %vm2396_vm7, %v2229_v28  ;;  %2290 = vrot.lane.b32.xlu1 %v4258_v25, %s4675_s4  ;;  %v4263_v28 = vld [vmem:[%s7918_s0 + $0xd90] sm:$0xff] }
 0x30f   :  { %2288 = vrot.lane.b32.xlu0 %v4257_v26, %s4675_s4 }
 0x310   :  { %v2235_v31 = vpop.permute.xlu1 %2234 }
 0x311   :  { %v2233_v32 = vpop.permute.xlu0 %2232  ;;  %2412 = vst.msk [vmem:[#allocation2 + $0x78] sm:$0xff] %vm2396_vm7, %v2235_v31 }
 0x312   :  { %2411 = vst.msk [vmem:[#allocation2 + $0x70] sm:$0xff] %vm2396_vm7, %v2233_v32  ;;  %2674 = vrot.lane.b32.xlu1 %v4321_v29, %s4676_s6 }
 0x313   :  { %2610 = vrot.lane.b32.xlu0 %v4289_v30, %s4676_s6 }
 0x314   :  { %v2239_v35 = vpop.permute.xlu1 %2238 }
 0x315   :  { %v2237_v36 = vpop.permute.xlu0 %2236  ;;  %2414 = vst.msk [vmem:[#allocation2 + $0x88] sm:$0xff] %vm2396_vm7, %v2239_v35 }
 0x316   :  { %2413 = vst.msk [vmem:[#allocation2 + $0x80] sm:$0xff] %vm2396_vm7, %v2237_v36  ;;  %2676 = vrot.lane.b32.xlu1 %v4322_v33, %s4676_s6  ;;  %v4327_v33 = vld [vmem:[%s7918_s0 + $0xe20] sm:$0xff] }
 0x317   :  { %2612 = vrot.lane.b32.xlu0 %v4290_v34, %s4676_s6  ;;  %v4295_v34 = vld [vmem:[%s7918_s0 + $0x520] sm:$0xff] }
 0x318   :  { %v2243_v39 = vpop.permute.xlu1 %2242 }
 0x319   :  { %v2241_v40 = vpop.permute.xlu0 %2240  ;;  %2416 = vst.msk [vmem:[#allocation2 + $0x98] sm:$0xff] %vm2396_vm7, %v2243_v39 }
 0x31a   :  { %2415 = vst.msk [vmem:[#allocation2 + $0x90] sm:$0xff] %vm2396_vm7, %v2241_v40  ;;  %3059 = vrot.lane.b32.xlu1 %v4385_v37, %s4677_s1  ;;  %v4328_v37 = vld [vmem:[%s7918_s0 + $0xe30] sm:$0xff] }
 0x31b   :  { %2995 = vrot.lane.b32.xlu0 %v4353_v38, %s4677_s1  ;;  %v4296_v38 = vld [vmem:[%s7918_s0 + $0x530] sm:$0xff] }
 0x31c   :  { %v2271_v43 = vpop.permute.xlu1 %2270 }
 0x31d   :  { %v2269_v44 = vpop.permute.xlu0 %2268  ;;  %2430 = vst.msk [vmem:[#allocation2 + $0x108] sm:$0xff] %vm2396_vm7, %v2271_v43 }
 0x31e   :  { %2429 = vst.msk [vmem:[#allocation2 + $0x100] sm:$0xff] %vm2396_vm7, %v2269_v44  ;;  %3061 = vrot.lane.b32.xlu1 %v4386_v41, %s4677_s1  ;;  %v4391_v41 = vld [vmem:[%s7918_s0 + $0xd91] sm:$0xff] }
 0x31f   :  { %2997 = vrot.lane.b32.xlu0 %v4354_v42, %s4677_s1  ;;  %v4359_v42 = vld [vmem:[%s7918_s0 + $0x491] sm:$0xff] }
 0x320   :  { %v2655_v47 = vpop.permute.xlu1 %2654 }
 0x321   :  { %v2591_v48 = vpop.permute.xlu0 %2590  ;;  %2815 = vst.msk [vmem:[#allocation2 + $0x100] sm:$0xff] %vm2782_vm8, %v2655_v47 }
 0x322   :  { %2783 = vst.msk [vmem:[#allocation2] sm:$0xff] %vm2782_vm8, %v2591_v48  ;;  %2294 = vrot.lane.b32.xlu1 %v4260_v45, %s4675_s4  ;;  %v4392_v45 = vld [vmem:[%s7918_s0 + $0xda1] sm:$0xff] }
 0x323   :  { %2292 = vrot.lane.b32.xlu0 %v4259_v46, %s4675_s4  ;;  %v4360_v46 = vld [vmem:[%s7918_s0 + $0x4a1] sm:$0xff] }
 0x324   :  { %v2657_v51 = vpop.permute.xlu1 %2656 }
 0x325   :  { %v2593_v52 = vpop.permute.xlu0 %2592  ;;  %2816 = vst.msk [vmem:[#allocation2 + $0x108] sm:$0xff] %vm2782_vm8, %v2657_v51  ;;  %v4266_v51 = vld [vmem:[%s7918_s0 + $0xdc0] sm:$0xff] }
 0x326   :  { %2784 = vst.msk [vmem:[#allocation2 + $0x8] sm:$0xff] %vm2782_vm8, %v2593_v52  ;;  %2678 = vrot.lane.b32.xlu1 %v4323_v49, %s4676_s6  ;;  %v4265_v52 = vld [vmem:[%s7918_s0 + $0xdb0] sm:$0xff] }
 0x327   :  { %2614 = vrot.lane.b32.xlu0 %v4291_v50, %s4676_s6 }
 0x328   :  { %v3040_v55 = vpop.permute.xlu1 %3039 }
 0x329   :  { %v2976_v56 = vpop.permute.xlu0 %2975  ;;  %3200 = vst.msk [vmem:[#allocation2 + $0x100] sm:$0xff] %vm3167_vm9, %v3040_v55 }
 0x32a   :  { %3168 = vst.msk [vmem:[#allocation2] sm:$0xff] %vm3167_vm9, %v2976_v56  ;;  %2680 = vrot.lane.b32.xlu1 %v4324_v53, %s4676_s6 }
 0x32b   :  { %2616 = vrot.lane.b32.xlu0 %v4292_v54, %s4676_s6 }
 0x32c   :  { %v3042_v59 = vpop.permute.xlu1 %3041 }
 0x32d   :  { %v2978_v60 = vpop.permute.xlu0 %2977  ;;  %3201 = vst.msk [vmem:[#allocation2 + $0x108] sm:$0xff] %vm3167_vm9, %v3042_v59 }
 0x32e   :  { %3169 = vst.msk [vmem:[#allocation2 + $0x8] sm:$0xff] %vm3167_vm9, %v2978_v60  ;;  %3063 = vrot.lane.b32.xlu1 %v4387_v57, %s4677_s1  ;;  %v4329_v57 = vld [vmem:[%s7918_s0 + $0xe40] sm:$0xff] }
 0x32f   :  { %2999 = vrot.lane.b32.xlu0 %v4355_v58, %s4677_s1  ;;  %v4297_v58 = vld [vmem:[%s7918_s0 + $0x540] sm:$0xff] }
 0x330   :  { %v2275_v63 = vpop.permute.xlu1 %2274  ;;  %v3264_v2 = vld [vmem:[#allocation2 + $0x100] sm:$0xff] }
 0x331   :  { %v2273_v0 = vpop.permute.xlu0 %2272  ;;  %v3232_v1 = vld [vmem:[#allocation2] sm:$0xff]  ;;  %2432 = vst.msk [vmem:[#allocation2 + $0x118] sm:$0xff] %vm2396_vm7, %v2275_v63  ;;  %4600 = vmatprep.mubr.msk.f32.mxu1 %vm3308_vm10, %v3264_v2  ;;  %v4361_v2 = vld [vmem:[%s7918_s0 + $0x4b1] sm:$0xff] }
 0x332   :  { %2431 = vst.msk [vmem:[#allocation2 + $0x110] sm:$0xff] %vm2396_vm7, %v2273_v0  ;;  %4552 = vmatprep.mubr.msk.f32.mxu0 %vm3308_vm10, %v3232_v1  ;;  %3065 = vrot.lane.b32.xlu1 %v4388_v61, %s4677_s1  ;;  %v4330_v61 = vld [vmem:[%s7918_s0 + $0xe50] sm:$0xff] }
 0x333   :  { %3001 = vrot.lane.b32.xlu0 %v4356_v62, %s4677_s1  ;;  %v4298_v62 = vld [vmem:[%s7918_s0 + $0x550] sm:$0xff] }
 0x334   :  { %v2659_v5 = vpop.permute.xlu1 %2658  ;;  %v3265_v8 = vld [vmem:[#allocation2 + $0x108] sm:$0xff]  ;;  %v4393_v1 = vld [vmem:[%s7918_s0 + $0xdb1] sm:$0xff] }
 0x335   :  { %v2595_v6 = vpop.permute.xlu0 %2594  ;;  %v3233_v7 = vld [vmem:[#allocation2 + $0x8] sm:$0xff]  ;;  %2817 = vst.msk [vmem:[#allocation2 + $0x110] sm:$0xff] %vm2782_vm8, %v2659_v5  ;;  %4601 = vmatmul.mubr.msk.f32.vlgmr.msra.gmra.mrb[0].mxu1 %vm3308_vm10, %v3265_v8 }
 0x336   :  { %2785 = vst.msk [vmem:[#allocation2 + $0x10] sm:$0xff] %vm2782_vm8, %v2595_v6  ;;  %4553 = vmatmul.mubr.msk.f32.vlgmr.msra.gmra.mrb[0].mxu0 %vm3308_vm10, %v3233_v7  ;;  %2298 = vrot.lane.b32.xlu1 %v4262_v3, %s4675_s4  ;;  %v4394_v5 = vld [vmem:[%s7918_s0 + $0xdc1] sm:$0xff] }
 0x337   :  { %2296 = vrot.lane.b32.xlu0 %v4261_v4, %s4675_s4  ;;  %v4362_v6 = vld [vmem:[%s7918_s0 + $0x4c1] sm:$0xff] }
 0x338   :  { %v2661_v11 = vpop.permute.xlu1 %2660 }
 0x339   :  { %v2597_v12 = vpop.permute.xlu0 %2596  ;;  %2818 = vst.msk [vmem:[#allocation2 + $0x118] sm:$0xff] %vm2782_vm8, %v2661_v11  ;;  %v4267_v11 = vld [vmem:[%s7918_s0 + $0xdd0] sm:$0xff] }
 0x33a   :  { %2786 = vst.msk [vmem:[#allocation2 + $0x18] sm:$0xff] %vm2782_vm8, %v2597_v12  ;;  %2682 = vrot.lane.b32.xlu1 %v4325_v9, %s4676_s6  ;;  %v4235_v12 = vld [vmem:[%s7918_s0 + $0x4d0] sm:$0xff] }
 0x33b   :  { %2618 = vrot.lane.b32.xlu0 %v4293_v10, %s4676_s6 }
 0x33c   :  { %v3044_v15 = vpop.permute.xlu1 %3043 }
 0x33d   :  { %v2980_v16 = vpop.permute.xlu0 %2979  ;;  %3202 = vst.msk [vmem:[#allocation2 + $0x110] sm:$0xff] %vm3167_vm9, %v3044_v15 }
 0x33e   :  { %3170 = vst.msk [vmem:[#allocation2 + $0x10] sm:$0xff] %vm3167_vm9, %v2980_v16  ;;  %2684 = vrot.lane.b32.xlu1 %v4326_v13, %s4676_s6 }
 0x33f   :  { %2620 = vrot.lane.b32.xlu0 %v4294_v14, %s4676_s6 }
 0x340   :  { %v3046_v19 = vpop.permute.xlu1 %3045 }
 0x341   :  { %v2982_v20 = vpop.permute.xlu0 %2981  ;;  %3203 = vst.msk [vmem:[#allocation2 + $0x118] sm:$0xff] %vm3167_vm9, %v3046_v19 }
 0x342   :  { %3171 = vst.msk [vmem:[#allocation2 + $0x18] sm:$0xff] %vm3167_vm9, %v2982_v20  ;;  %3067 = vrot.lane.b32.xlu1 %v4389_v17, %s4677_s1  ;;  %v4268_v17 = vld [vmem:[%s7918_s0 + $0xde0] sm:$0xff] }
 0x343   :  { %3003 = vrot.lane.b32.xlu0 %v4357_v18, %s4677_s1  ;;  %v4236_v18 = vld [vmem:[%s7918_s0 + $0x4e0] sm:$0xff] }
 0x344   :  { %v2279_v23 = vpop.permute.xlu1 %2278  ;;  %v3266_v26 = vld [vmem:[#allocation2 + $0x110] sm:$0xff] }
 0x345   :  { %v2277_v24 = vpop.permute.xlu0 %2276  ;;  %v3234_v25 = vld [vmem:[#allocation2 + $0x10] sm:$0xff]  ;;  %2434 = vst.msk [vmem:[#allocation2 + $0x128] sm:$0xff] %vm2396_vm7, %v2279_v23  ;;  %4603 = vmatprep.mubr.msk.f32.mxu1 %vm3308_vm10, %v3266_v26 }
 0x346   :  { %2433 = vst.msk [vmem:[#allocation2 + $0x120] sm:$0xff] %vm2396_vm7, %v2277_v24  ;;  %4555 = vmatprep.mubr.msk.f32.mxu0 %vm3308_vm10, %v3234_v25  ;;  %3069 = vrot.lane.b32.xlu1 %v4390_v21, %s4677_s1  ;;  %v4331_v21 = vld [vmem:[%s7918_s0 + $0xe60] sm:$0xff]  ;;  %v4332_v25 = vld [vmem:[%s7918_s0 + $0xe70] sm:$0xff] }
 0x347   :  { %3005 = vrot.lane.b32.xlu0 %v4358_v22, %s4677_s1  ;;  %v4299_v22 = vld [vmem:[%s7918_s0 + $0x560] sm:$0xff]  ;;  %v4300_v26 = vld [vmem:[%s7918_s0 + $0x570] sm:$0xff] }
 0x348   :  { %v2663_v29 = vpop.permute.xlu1 %2662  ;;  %v3267_v32 = vld [vmem:[#allocation2 + $0x118] sm:$0xff] }
 0x349   :  { %v2599_v30 = vpop.permute.xlu0 %2598  ;;  %v3235_v31 = vld [vmem:[#allocation2 + $0x18] sm:$0xff]  ;;  %2819 = vst.msk [vmem:[#allocation2 + $0x120] sm:$0xff] %vm2782_vm8, %v2663_v29  ;;  %4604 = vmatmul.mubr.msk.f32.gmra.mrb[2].mxu1 %vm3308_vm10, %v3267_v32 }
 0x34a   :  { %2787 = vst.msk [vmem:[#allocation2 + $0x20] sm:$0xff] %vm2782_vm8, %v2599_v30  ;;  %4556 = vmatmul.mubr.msk.f32.gmra.mrb[2].mxu0 %vm3308_vm10, %v3235_v31  ;;  %2302 = vrot.lane.b32.xlu1 %v4264_v27, %s4675_s4  ;;  %v4395_v29 = vld [vmem:[%s7918_s0 + $0xdd1] sm:$0xff] }
 0x34b   :  { %2300 = vrot.lane.b32.xlu0 %v4263_v28, %s4675_s4  ;;  %v4363_v30 = vld [vmem:[%s7918_s0 + $0x4d1] sm:$0xff] }
 0x34c   :  { %v2665_v35 = vpop.permute.xlu1 %2664 }
 0x34d   :  { %v2601_v36 = vpop.permute.xlu0 %2600  ;;  %2820 = vst.msk [vmem:[#allocation2 + $0x128] sm:$0xff] %vm2782_vm8, %v2665_v35  ;;  %v4396_v35 = vld [vmem:[%s7918_s0 + $0xde1] sm:$0xff] }
 0x34e   :  { %2788 = vst.msk [vmem:[#allocation2 + $0x28] sm:$0xff] %vm2782_vm8, %v2601_v36  ;;  %2686 = vrot.lane.b32.xlu1 %v4327_v33, %s4676_s6  ;;  %v4364_v36 = vld [vmem:[%s7918_s0 + $0x4e1] sm:$0xff] }
 0x34f   :  { %2622 = vrot.lane.b32.xlu0 %v4295_v34, %s4676_s6 }
 0x350   :  { %v3048_v39 = vpop.permute.xlu1 %3047 }
 0x351   :  { %v2984_v40 = vpop.permute.xlu0 %2983  ;;  %3204 = vst.msk [vmem:[#allocation2 + $0x120] sm:$0xff] %vm3167_vm9, %v3048_v39 }
 0x352   :  { %3172 = vst.msk [vmem:[#allocation2 + $0x20] sm:$0xff] %vm3167_vm9, %v2984_v40  ;;  %2688 = vrot.lane.b32.xlu1 %v4328_v37, %s4676_s6 }
 0x353   :  { %2624 = vrot.lane.b32.xlu0 %v4296_v38, %s4676_s6 }
 0x354   :  { %v3050_v43 = vpop.permute.xlu1 %3049 }
 0x355   :  { %v2986_v44 = vpop.permute.xlu0 %2985  ;;  %3205 = vst.msk [vmem:[#allocation2 + $0x128] sm:$0xff] %vm3167_vm9, %v3050_v43 }
 0x356   :  { %3173 = vst.msk [vmem:[#allocation2 + $0x28] sm:$0xff] %vm3167_vm9, %v2986_v44  ;;  %3071 = vrot.lane.b32.xlu1 %v4391_v41, %s4677_s1  ;;  %v4269_v41 = vld [vmem:[%s7918_s0 + $0xdf0] sm:$0xff] }
 0x357   :  { %3007 = vrot.lane.b32.xlu0 %v4359_v42, %s4677_s1  ;;  %v4237_v42 = vld [vmem:[%s7918_s0 + $0x4f0] sm:$0xff] }
 0x358   :  { %v2283_v47 = vpop.permute.xlu1 %2282  ;;  %v3268_v50 = vld [vmem:[#allocation2 + $0x120] sm:$0xff] }
 0x359   :  { %v2281_v48 = vpop.permute.xlu0 %2280  ;;  %v3236_v49 = vld [vmem:[#allocation2 + $0x20] sm:$0xff]  ;;  %2436 = vst.msk [vmem:[#allocation2 + $0x138] sm:$0xff] %vm2396_vm7, %v2283_v47  ;;  %4606 = vmatprep.mubr.msk.f32.mxu1 %vm3308_vm10, %v3268_v50 }
 0x35a   :  { %2435 = vst.msk [vmem:[#allocation2 + $0x130] sm:$0xff] %vm2396_vm7, %v2281_v48  ;;  %4558 = vmatprep.mubr.msk.f32.mxu0 %vm3308_vm10, %v3236_v49  ;;  %3073 = vrot.lane.b32.xlu1 %v4392_v45, %s4677_s1  ;;  %v4270_v45 = vld [vmem:[%s7918_s0 + $0xe00] sm:$0xff] }
 0x35b   :  { %3009 = vrot.lane.b32.xlu0 %v4360_v46, %s4677_s1  ;;  %v4238_v46 = vld [vmem:[%s7918_s0 + $0x500] sm:$0xff] }
 0x35c   :  { %v2667_v53 = vpop.permute.xlu1 %2666  ;;  %v3269_v56 = vld [vmem:[#allocation2 + $0x128] sm:$0xff]  ;;  %v4333_v49 = vld [vmem:[%s7918_s0 + $0xe80] sm:$0xff] }
 0x35d   :  { %v2603_v54 = vpop.permute.xlu0 %2602  ;;  %v3237_v55 = vld [vmem:[#allocation2 + $0x28] sm:$0xff]  ;;  %2821 = vst.msk [vmem:[#allocation2 + $0x130] sm:$0xff] %vm2782_vm8, %v2667_v53  ;;  %4607 = vmatmul.mubr.msk.f32.gmra.mrb[4].mxu1 %vm3308_vm10, %v3269_v56  ;;  %v4301_v50 = vld [vmem:[%s7918_s0 + $0x580] sm:$0xff]  ;;  %v4334_v53 = vld [vmem:[%s7918_s0 + $0xe90] sm:$0xff] }
 0x35e   :  { %2789 = vst.msk [vmem:[#allocation2 + $0x30] sm:$0xff] %vm2782_vm8, %v2603_v54  ;;  %4559 = vmatmul.mubr.msk.f32.gmra.mrb[4].mxu0 %vm3308_vm10, %v3237_v55  ;;  %2306 = vrot.lane.b32.xlu1 %v4266_v51, %s4675_s4  ;;  %v4302_v54 = vld [vmem:[%s7918_s0 + $0x590] sm:$0xff] }
 0x35f   :  { %2304 = vrot.lane.b32.xlu0 %v4265_v52, %s4675_s4 }
 0x360   :  { %v2669_v59 = vpop.permute.xlu1 %2668 }
 0x361   :  { %v2605_v60 = vpop.permute.xlu0 %2604  ;;  %2822 = vst.msk [vmem:[#allocation2 + $0x138] sm:$0xff] %vm2782_vm8, %v2669_v59  ;;  %v4397_v59 = vld [vmem:[%s7918_s0 + $0xdf1] sm:$0xff] }
 0x362   :  { %2790 = vst.msk [vmem:[#allocation2 + $0x38] sm:$0xff] %vm2782_vm8, %v2605_v60  ;;  %2690 = vrot.lane.b32.xlu1 %v4329_v57, %s4676_s6  ;;  %v4365_v60 = vld [vmem:[%s7918_s0 + $0x4f1] sm:$0xff] }
 0x363   :  { %2626 = vrot.lane.b32.xlu0 %v4297_v58, %s4676_s6 }
 0x364   :  { %v3052_v63 = vpop.permute.xlu1 %3051 }
 0x365   :  { %v2988_v0 = vpop.permute.xlu0 %2987  ;;  %3206 = vst.msk [vmem:[#allocation2 + $0x130] sm:$0xff] %vm3167_vm9, %v3052_v63 }
 0x366   :  { %3174 = vst.msk [vmem:[#allocation2 + $0x30] sm:$0xff] %vm3167_vm9, %v2988_v0  ;;  %2692 = vrot.lane.b32.xlu1 %v4330_v61, %s4676_s6 }
 0x367   :  { %2628 = vrot.lane.b32.xlu0 %v4298_v62, %s4676_s6 }
 0x368   :  { %v3054_v3 = vpop.permute.xlu1 %3053 }
 0x369   :  { %v2990_v4 = vpop.permute.xlu0 %2989  ;;  %3207 = vst.msk [vmem:[#allocation2 + $0x138] sm:$0xff] %vm3167_vm9, %v3054_v3 }
 0x36a   :  { %3175 = vst.msk [vmem:[#allocation2 + $0x38] sm:$0xff] %vm3167_vm9, %v2990_v4  ;;  %3075 = vrot.lane.b32.xlu1 %v4393_v1, %s4677_s1  ;;  %v4398_v1 = vld [vmem:[%s7918_s0 + $0xe01] sm:$0xff] }
 0x36b   :  { %3011 = vrot.lane.b32.xlu0 %v4361_v2, %s4677_s1  ;;  %v4366_v2 = vld [vmem:[%s7918_s0 + $0x501] sm:$0xff] }
 0x36c   :  { %v2287_v7 = vpop.permute.xlu1 %2286  ;;  %v3270_v10 = vld [vmem:[#allocation2 + $0x130] sm:$0xff] }
 0x36d   :  { %v2285_v8 = vpop.permute.xlu0 %2284  ;;  %v3238_v9 = vld [vmem:[#allocation2 + $0x30] sm:$0xff]  ;;  %2438 = vst.msk [vmem:[#allocation2 + $0x148] sm:$0xff] %vm2396_vm7, %v2287_v7  ;;  %4609 = vmatprep.mubr.msk.f32.mxu1 %vm3308_vm10, %v3270_v10  ;;  %v4240_v10 = vld [vmem:[%s7918_s0 + $0x6e0] sm:$0xff] }
 0x36e   :  { %2437 = vst.msk [vmem:[#allocation2 + $0x140] sm:$0xff] %vm2396_vm7, %v2285_v8  ;;  %4561 = vmatprep.mubr.msk.f32.mxu0 %vm3308_vm10, %v3238_v9  ;;  %3077 = vrot.lane.b32.xlu1 %v4394_v5, %s4677_s1  ;;  %v4271_v5 = vld [vmem:[%s7918_s0 + $0xfd0] sm:$0xff]  ;;  %v4272_v9 = vld [vmem:[%s7918_s0 + $0xfe0] sm:$0xff] }
 0x36f   :  { %3013 = vrot.lane.b32.xlu0 %v4362_v6, %s4677_s1  ;;  %v4239_v6 = vld [vmem:[%s7918_s0 + $0x6d0] sm:$0xff] }
 0x370   :  { %v2671_v13 = vpop.permute.xlu1 %2670  ;;  %v3271_v16 = vld [vmem:[#allocation2 + $0x138] sm:$0xff] }
 0x371   :  { %v2607_v14 = vpop.permute.xlu0 %2606  ;;  %v3239_v15 = vld [vmem:[#allocation2 + $0x38] sm:$0xff]  ;;  %2823 = vst.msk [vmem:[#allocation2 + $0x140] sm:$0xff] %vm2782_vm8, %v2671_v13  ;;  %4610 = vmatmul.mubr.msk.f32.gmra.mrb[6].mxu1 %vm3308_vm10, %v3271_v16  ;;  %v4335_v13 = vld [vmem:[%s7918_s0 + $0x1060] sm:$0xff] }
 0x372   :  { %2791 = vst.msk [vmem:[#allocation2 + $0x40] sm:$0xff] %vm2782_vm8, %v2607_v14  ;;  %4562 = vmatmul.mubr.msk.f32.gmra.mrb[6].mxu0 %vm3308_vm10, %v3239_v15  ;;  %2308 = vrot.lane.b32.xlu1 %v4267_v11, %s4675_s4  ;;  %v4303_v14 = vld [vmem:[%s7918_s0 + $0x760] sm:$0xff] }
 0x373   :  { %2244 = vrot.lane.b32.xlu0 %v4235_v12, %s4675_s4 }
 0x374   :  { %v2673_v19 = vpop.permute.xlu1 %2672 }
 0x375   :  { %v2609_v20 = vpop.permute.xlu0 %2608  ;;  %2824 = vst.msk [vmem:[#allocation2 + $0x148] sm:$0xff] %vm2782_vm8, %v2673_v19  ;;  %v4336_v19 = vld [vmem:[%s7918_s0 + $0x1070] sm:$0xff] }
 0x376   :  { %2792 = vst.msk [vmem:[#allocation2 + $0x48] sm:$0xff] %vm2782_vm8, %v2609_v20  ;;  %2310 = vrot.lane.b32.xlu1 %v4268_v17, %s4675_s4  ;;  %v4304_v20 = vld [vmem:[%s7918_s0 + $0x770] sm:$0xff] }
 0x377   :  { %2246 = vrot.lane.b32.xlu0 %v4236_v18, %s4675_s4 }
 0x378   :  { %v3056_v23 = vpop.permute.xlu1 %3055 }
 0x379   :  { %v2992_v24 = vpop.permute.xlu0 %2991  ;;  %3208 = vst.msk [vmem:[#allocation2 + $0x140] sm:$0xff] %vm3167_vm9, %v3056_v23 }
 0x37a   :  { %3176 = vst.msk [vmem:[#allocation2 + $0x40] sm:$0xff] %vm3167_vm9, %v2992_v24  ;;  %2694 = vrot.lane.b32.xlu1 %v4331_v21, %s4676_s6 }
 0x37b   :  { %2630 = vrot.lane.b32.xlu0 %v4299_v22, %s4676_s6 }
 0x37c   :  { %v3058_v27 = vpop.permute.xlu1 %3057 }
 0x37d   :  { %v2994_v28 = vpop.permute.xlu0 %2993  ;;  %3209 = vst.msk [vmem:[#allocation2 + $0x148] sm:$0xff] %vm3167_vm9, %v3058_v27 }
 0x37e   :  { %3177 = vst.msk [vmem:[#allocation2 + $0x48] sm:$0xff] %vm3167_vm9, %v2994_v28  ;;  %2696 = vrot.lane.b32.xlu1 %v4332_v25, %s4676_s6  ;;  %v4399_v25 = vld [vmem:[%s7918_s0 + $0xfd1] sm:$0xff] }
 0x37f   :  { %2632 = vrot.lane.b32.xlu0 %v4300_v26, %s4676_s6  ;;  %v4367_v26 = vld [vmem:[%s7918_s0 + $0x6d1] sm:$0xff] }
 0x380   :  { %v2291_v31 = vpop.permute.xlu1 %2290  ;;  %v3272_v34 = vld [vmem:[#allocation2 + $0x140] sm:$0xff] }
 0x381   :  { %v2289_v32 = vpop.permute.xlu0 %2288  ;;  %v3240_v33 = vld [vmem:[#allocation2 + $0x40] sm:$0xff]  ;;  %2440 = vst.msk [vmem:[#allocation2 + $0x158] sm:$0xff] %vm2396_vm7, %v2291_v31  ;;  %4612 = vmatprep.mubr.msk.f32.mxu1 %vm3308_vm10, %v3272_v34  ;;  %v4241_v34 = vld [vmem:[%s7918_s0 + $0x6f0] sm:$0xff] }
 0x382   :  { %2439 = vst.msk [vmem:[#allocation2 + $0x150] sm:$0xff] %vm2396_vm7, %v2289_v32  ;;  %4564 = vmatprep.mubr.msk.f32.mxu0 %vm3308_vm10, %v3240_v33  ;;  %3079 = vrot.lane.b32.xlu1 %v4395_v29, %s4677_s1  ;;  %v4400_v29 = vld [vmem:[%s7918_s0 + $0xfe1] sm:$0xff]  ;;  %v4273_v33 = vld [vmem:[%s7918_s0 + $0xff0] sm:$0xff] }
 0x383   :  { %3015 = vrot.lane.b32.xlu0 %v4363_v30, %s4677_s1  ;;  %v4368_v30 = vld [vmem:[%s7918_s0 + $0x6e1] sm:$0xff] }
 0x384   :  { %v2675_v37 = vpop.permute.xlu1 %2674  ;;  %v3273_v40 = vld [vmem:[#allocation2 + $0x148] sm:$0xff] }
 0x385   :  { %v2611_v38 = vpop.permute.xlu0 %2610  ;;  %v3241_v39 = vld [vmem:[#allocation2 + $0x48] sm:$0xff]  ;;  %2825 = vst.msk [vmem:[#allocation2 + $0x150] sm:$0xff] %vm2782_vm8, %v2675_v37  ;;  %4613 = vmatmul.mubr.msk.f32.gmra.mrb[8].mxu1 %vm3308_vm10, %v3273_v40  ;;  %v4274_v37 = vld [vmem:[%s7918_s0 + $0x1000] sm:$0xff] }
 0x386   :  { %2793 = vst.msk [vmem:[#allocation2 + $0x50] sm:$0xff] %vm2782_vm8, %v2611_v38  ;;  %4565 = vmatmul.mubr.msk.f32.gmra.mrb[8].mxu0 %vm3308_vm10, %v3241_v39  ;;  %3081 = vrot.lane.b32.xlu1 %v4396_v35, %s4677_s1  ;;  %v4242_v38 = vld [vmem:[%s7918_s0 + $0x700] sm:$0xff] }
 0x387   :  { %3017 = vrot.lane.b32.xlu0 %v4364_v36, %s4677_s1 }
 0x388   :  { %v2677_v43 = vpop.permute.xlu1 %2676 }
 0x389   :  { %v2613_v44 = vpop.permute.xlu0 %2612  ;;  %2826 = vst.msk [vmem:[#allocation2 + $0x158] sm:$0xff] %vm2782_vm8, %v2677_v43  ;;  %v4337_v43 = vld [vmem:[%s7918_s0 + $0x1080] sm:$0xff] }
 0x38a   :  { %2794 = vst.msk [vmem:[#allocation2 + $0x58] sm:$0xff] %vm2782_vm8, %v2613_v44  ;;  %2312 = vrot.lane.b32.xlu1 %v4269_v41, %s4675_s4  ;;  %v4305_v44 = vld [vmem:[%s7918_s0 + $0x780] sm:$0xff] }
 0x38b   :  { %2248 = vrot.lane.b32.xlu0 %v4237_v42, %s4675_s4 }
 0x38c   :  { %v3060_v47 = vpop.permute.xlu1 %3059 }
 0x38d   :  { %v2996_v48 = vpop.permute.xlu0 %2995  ;;  %3210 = vst.msk [vmem:[#allocation2 + $0x150] sm:$0xff] %vm3167_vm9, %v3060_v47 }
 0x38e   :  { %3178 = vst.msk [vmem:[#allocation2 + $0x50] sm:$0xff] %vm3167_vm9, %v2996_v48  ;;  %2314 = vrot.lane.b32.xlu1 %v4270_v45, %s4675_s4 }
 0x38f   :  { %2250 = vrot.lane.b32.xlu0 %v4238_v46, %s4675_s4 }
 0x390   :  { %v3062_v51 = vpop.permute.xlu1 %3061 }
 0x391   :  { %v2998_v52 = vpop.permute.xlu0 %2997  ;;  %3211 = vst.msk [vmem:[#allocation2 + $0x158] sm:$0xff] %vm3167_vm9, %v3062_v51 }
 0x392   :  { %3179 = vst.msk [vmem:[#allocation2 + $0x58] sm:$0xff] %vm3167_vm9, %v2998_v52  ;;  %2698 = vrot.lane.b32.xlu1 %v4333_v49, %s4676_s6  ;;  %v4338_v49 = vld [vmem:[%s7918_s0 + $0x1090] sm:$0xff] }
 0x393   :  { %2634 = vrot.lane.b32.xlu0 %v4301_v50, %s4676_s6  ;;  %v4306_v50 = vld [vmem:[%s7918_s0 + $0x790] sm:$0xff] }
 0x394   :  { %v2295_v55 = vpop.permute.xlu1 %2294  ;;  %v3274_v58 = vld [vmem:[#allocation2 + $0x150] sm:$0xff] }
 0x395   :  { %v2293_v56 = vpop.permute.xlu0 %2292  ;;  %v3242_v57 = vld [vmem:[#allocation2 + $0x50] sm:$0xff]  ;;  %2442 = vst.msk [vmem:[#allocation2 + $0x168] sm:$0xff] %vm2396_vm7, %v2295_v55  ;;  %4615 = vmatprep.mubr.msk.f32.mxu1 %vm3308_vm10, %v3274_v58  ;;  %v4370_v58 = vld [vmem:[%s7918_s0 + $0x701] sm:$0xff] }
 0x396   :  { %2441 = vst.msk [vmem:[#allocation2 + $0x160] sm:$0xff] %vm2396_vm7, %v2293_v56  ;;  %4567 = vmatprep.mubr.msk.f32.mxu0 %vm3308_vm10, %v3242_v57  ;;  %2700 = vrot.lane.b32.xlu1 %v4334_v53, %s4676_s6  ;;  %v4401_v53 = vld [vmem:[%s7918_s0 + $0xff1] sm:$0xff]  ;;  %v4402_v57 = vld [vmem:[%s7918_s0 + $0x1001] sm:$0xff] }
 0x397   :  { %2636 = vrot.lane.b32.xlu0 %v4302_v54, %s4676_s6  ;;  %v4369_v54 = vld [vmem:[%s7918_s0 + $0x6f1] sm:$0xff] }
 0x398   :  { %v2679_v61 = vpop.permute.xlu1 %2678  ;;  %v3275_v0 = vld [vmem:[#allocation2 + $0x158] sm:$0xff] }
 0x399   :  { %v2615_v62 = vpop.permute.xlu0 %2614  ;;  %v3243_v63 = vld [vmem:[#allocation2 + $0x58] sm:$0xff]  ;;  %2827 = vst.msk [vmem:[#allocation2 + $0x160] sm:$0xff] %vm2782_vm8, %v2679_v61  ;;  %4616 = vmatmul.mubr.msk.f32.gmra.mrb[10].mxu1 %vm3308_vm10, %v3275_v0  ;;  %v4275_v61 = vld [vmem:[%s7918_s0 + $0x1010] sm:$0xff] }
 0x39a   :  { %2795 = vst.msk [vmem:[#allocation2 + $0x60] sm:$0xff] %vm2782_vm8, %v2615_v62  ;;  %4568 = vmatmul.mubr.msk.f32.gmra.mrb[10].mxu0 %vm3308_vm10, %v3243_v63  ;;  %3083 = vrot.lane.b32.xlu1 %v4397_v59, %s4677_s1  ;;  %v4243_v62 = vld [vmem:[%s7918_s0 + $0x710] sm:$0xff] }
 0x39b   :  { %3019 = vrot.lane.b32.xlu0 %v4365_v60, %s4677_s1 }
 0x39c   :  { %v2681_v3 = vpop.permute.xlu1 %2680 }
 0x39d   :  { %v2617_v4 = vpop.permute.xlu0 %2616  ;;  %2828 = vst.msk [vmem:[#allocation2 + $0x168] sm:$0xff] %vm2782_vm8, %v2681_v3  ;;  %v4276_v3 = vld [vmem:[%s7918_s0 + $0x1020] sm:$0xff] }
 0x39e   :  { %2796 = vst.msk [vmem:[#allocation2 + $0x68] sm:$0xff] %vm2782_vm8, %v2617_v4  ;;  %3085 = vrot.lane.b32.xlu1 %v4398_v1, %s4677_s1  ;;  %v4244_v4 = vld [vmem:[%s7918_s0 + $0x720] sm:$0xff] }
 0x39f   :  { %3021 = vrot.lane.b32.xlu0 %v4366_v2, %s4677_s1 }
 0x3a0   :  { %v3064_v7 = vpop.permute.xlu1 %3063 }
 0x3a1   :  { %v3000_v8 = vpop.permute.xlu0 %2999  ;;  %3212 = vst.msk [vmem:[#allocation2 + $0x160] sm:$0xff] %vm3167_vm9, %v3064_v7 }
 0x3a2   :  { %3180 = vst.msk [vmem:[#allocation2 + $0x60] sm:$0xff] %vm3167_vm9, %v3000_v8  ;;  %2316 = vrot.lane.b32.xlu1 %v4271_v5, %s4675_s4 }
 0x3a3   :  { %2252 = vrot.lane.b32.xlu0 %v4239_v6, %s4675_s4 }
 0x3a4   :  { %v3066_v11 = vpop.permute.xlu1 %3065 }
 0x3a5   :  { %v3002_v12 = vpop.permute.xlu0 %3001  ;;  %3213 = vst.msk [vmem:[#allocation2 + $0x168] sm:$0xff] %vm3167_vm9, %v3066_v11 }
 0x3a6   :  { %3181 = vst.msk [vmem:[#allocation2 + $0x68] sm:$0xff] %vm3167_vm9, %v3002_v12  ;;  %2318 = vrot.lane.b32.xlu1 %v4272_v9, %s4675_s4  ;;  %v4339_v9 = vld [vmem:[%s7918_s0 + $0x10a0] sm:$0xff] }
 0x3a7   :  { %2254 = vrot.lane.b32.xlu0 %v4240_v10, %s4675_s4  ;;  %v4307_v10 = vld [vmem:[%s7918_s0 + $0x7a0] sm:$0xff] }
 0x3a8   :  { %v2299_v15 = vpop.permute.xlu1 %2298  ;;  %v3276_v18 = vld [vmem:[#allocation2 + $0x160] sm:$0xff] }
 0x3a9   :  { %v2297_v16 = vpop.permute.xlu0 %2296  ;;  %v3244_v17 = vld [vmem:[#allocation2 + $0x60] sm:$0xff]  ;;  %2444 = vst.msk [vmem:[#allocation2 + $0x178] sm:$0xff] %vm2396_vm7, %v2299_v15  ;;  %4618 = vmatprep.mubr.msk.f32.mxu1 %vm3308_vm10, %v3276_v18  ;;  %v4371_v18 = vld [vmem:[%s7918_s0 + $0x711] sm:$0xff] }
 0x3aa   :  { %2443 = vst.msk [vmem:[#allocation2 + $0x170] sm:$0xff] %vm2396_vm7, %v2297_v16  ;;  %4570 = vmatprep.mubr.msk.f32.mxu0 %vm3308_vm10, %v3244_v17  ;;  %2702 = vrot.lane.b32.xlu1 %v4335_v13, %s4676_s6  ;;  %v4340_v13 = vld [vmem:[%s7918_s0 + $0x10b0] sm:$0xff] }
 0x3ab   :  { %2638 = vrot.lane.b32.xlu0 %v4303_v14, %s4676_s6  ;;  %v4308_v14 = vld [vmem:[%s7918_s0 + $0x7b0] sm:$0xff] }
 0x3ac   :  { %v2683_v21 = vpop.permute.xlu1 %2682  ;;  %v3277_v24 = vld [vmem:[#allocation2 + $0x168] sm:$0xff]  ;;  %v4403_v17 = vld [vmem:[%s7918_s0 + $0x1011] sm:$0xff] }
 0x3ad   :  { %v2619_v22 = vpop.permute.xlu0 %2618  ;;  %v3245_v23 = vld [vmem:[#allocation2 + $0x68] sm:$0xff]  ;;  %2829 = vst.msk [vmem:[#allocation2 + $0x170] sm:$0xff] %vm2782_vm8, %v2683_v21  ;;  %4619 = vmatmul.mubr.msk.f32.gmra.mrb[12].mxu1 %vm3308_vm10, %v3277_v24 }
 0x3ae   :  { %2797 = vst.msk [vmem:[#allocation2 + $0x70] sm:$0xff] %vm2782_vm8, %v2619_v22  ;;  %4571 = vmatmul.mubr.msk.f32.gmra.mrb[12].mxu0 %vm3308_vm10, %v3245_v23  ;;  %2704 = vrot.lane.b32.xlu1 %v4336_v19, %s4676_s6  ;;  %v4404_v21 = vld [vmem:[%s7918_s0 + $0x1021] sm:$0xff] }
 0x3af   :  { %2640 = vrot.lane.b32.xlu0 %v4304_v20, %s4676_s6  ;;  %v4372_v22 = vld [vmem:[%s7918_s0 + $0x721] sm:$0xff] }
 0x3b0   :  { %v2685_v27 = vpop.permute.xlu1 %2684 }
 0x3b1   :  { %v2621_v28 = vpop.permute.xlu0 %2620  ;;  %2830 = vst.msk [vmem:[#allocation2 + $0x178] sm:$0xff] %vm2782_vm8, %v2685_v27  ;;  %v4277_v27 = vld [vmem:[%s7918_s0 + $0x1030] sm:$0xff] }
 0x3b2   :  { %2798 = vst.msk [vmem:[#allocation2 + $0x78] sm:$0xff] %vm2782_vm8, %v2621_v28  ;;  %3087 = vrot.lane.b32.xlu1 %v4399_v25, %s4677_s1  ;;  %v4245_v28 = vld [vmem:[%s7918_s0 + $0x730] sm:$0xff] }
 0x3b3   :  { %3023 = vrot.lane.b32.xlu0 %v4367_v26, %s4677_s1 }
 0x3b4   :  { %v3068_v31 = vpop.permute.xlu1 %3067 }
 0x3b5   :  { %v3004_v32 = vpop.permute.xlu0 %3003  ;;  %3214 = vst.msk [vmem:[#allocation2 + $0x170] sm:$0xff] %vm3167_vm9, %v3068_v31 }
 0x3b6   :  { %3182 = vst.msk [vmem:[#allocation2 + $0x70] sm:$0xff] %vm3167_vm9, %v3004_v32  ;;  %3089 = vrot.lane.b32.xlu1 %v4400_v29, %s4677_s1 }
 0x3b7   :  { %3025 = vrot.lane.b32.xlu0 %v4368_v30, %s4677_s1 }
 0x3b8   :  { %v3070_v35 = vpop.permute.xlu1 %3069 }
 0x3b9   :  { %v3006_v36 = vpop.permute.xlu0 %3005  ;;  %3215 = vst.msk [vmem:[#allocation2 + $0x178] sm:$0xff] %vm3167_vm9, %v3070_v35 }
 0x3ba   :  { %3183 = vst.msk [vmem:[#allocation2 + $0x78] sm:$0xff] %vm3167_vm9, %v3006_v36  ;;  %2320 = vrot.lane.b32.xlu1 %v4273_v33, %s4675_s4  ;;  %v4278_v33 = vld [vmem:[%s7918_s0 + $0x1040] sm:$0xff] }
 0x3bb   :  { %2256 = vrot.lane.b32.xlu0 %v4241_v34, %s4675_s4  ;;  %v4246_v34 = vld [vmem:[%s7918_s0 + $0x740] sm:$0xff] }
 0x3bc   :  { %v2303_v39 = vpop.permute.xlu1 %2302  ;;  %v3278_v42 = vld [vmem:[#allocation2 + $0x170] sm:$0xff] }
 0x3bd   :  { %v2301_v40 = vpop.permute.xlu0 %2300  ;;  %v3246_v41 = vld [vmem:[#allocation2 + $0x70] sm:$0xff]  ;;  %2446 = vst.msk [vmem:[#allocation2 + $0x188] sm:$0xff] %vm2396_vm7, %v2303_v39  ;;  %4621 = vmatprep.mubr.msk.f32.mxu1 %vm3308_vm10, %v3278_v42 }
 0x3be   :  { %2445 = vst.msk [vmem:[#allocation2 + $0x180] sm:$0xff] %vm2396_vm7, %v2301_v40  ;;  %4573 = vmatprep.mubr.msk.f32.mxu0 %vm3308_vm10, %v3246_v41  ;;  %2322 = vrot.lane.b32.xlu1 %v4274_v37, %s4675_s4  ;;  %v4341_v37 = vld [vmem:[%s7918_s0 + $0x10c0] sm:$0xff]  ;;  %v4342_v41 = vld [vmem:[%s7918_s0 + $0x10d0] sm:$0xff] }
 0x3bf   :  { %2258 = vrot.lane.b32.xlu0 %v4242_v38, %s4675_s4  ;;  %v4309_v38 = vld [vmem:[%s7918_s0 + $0x7c0] sm:$0xff]  ;;  %v4310_v42 = vld [vmem:[%s7918_s0 + $0x7d0] sm:$0xff] }
 0x3c0   :  { %v2687_v45 = vpop.permute.xlu1 %2686  ;;  %v3279_v48 = vld [vmem:[#allocation2 + $0x178] sm:$0xff] }
 0x3c1   :  { %v2623_v46 = vpop.permute.xlu0 %2622  ;;  %v3247_v47 = vld [vmem:[#allocation2 + $0x78] sm:$0xff]  ;;  %2831 = vst.msk [vmem:[#allocation2 + $0x180] sm:$0xff] %vm2782_vm8, %v2687_v45  ;;  %4622 = vmatmul.mubr.msk.f32.gmra.mrb[14].mxu1 %vm3308_vm10, %v3279_v48 }
 0x3c2   :  { %2799 = vst.msk [vmem:[#allocation2 + $0x80] sm:$0xff] %vm2782_vm8, %v2623_v46  ;;  %4574 = vmatmul.mubr.msk.f32.gmra.mrb[14].mxu0 %vm3308_vm10, %v3247_v47  ;;  %2706 = vrot.lane.b32.xlu1 %v4337_v43, %s4676_s6  ;;  %v4405_v45 = vld [vmem:[%s7918_s0 + $0x1031] sm:$0xff] }
 0x3c3   :  { %2642 = vrot.lane.b32.xlu0 %v4305_v44, %s4676_s6  ;;  %v4373_v46 = vld [vmem:[%s7918_s0 + $0x731] sm:$0xff] }
 0x3c4   :  { %v2689_v51 = vpop.permute.xlu1 %2688 }
 0x3c5   :  { %v2625_v52 = vpop.permute.xlu0 %2624  ;;  %2832 = vst.msk [vmem:[#allocation2 + $0x188] sm:$0xff] %vm2782_vm8, %v2689_v51 }
 0x3c6   :  { %2800 = vst.msk [vmem:[#allocation2 + $0x88] sm:$0xff] %vm2782_vm8, %v2625_v52  ;;  %2708 = vrot.lane.b32.xlu1 %v4338_v49, %s4676_s6  ;;  %v4406_v49 = vld [vmem:[%s7918_s0 + $0x1041] sm:$0xff] }
 0x3c7   :  { %2644 = vrot.lane.b32.xlu0 %v4306_v50, %s4676_s6  ;;  %v4374_v50 = vld [vmem:[%s7918_s0 + $0x741] sm:$0xff] }
 0x3c8   :  { %v3072_v55 = vpop.permute.xlu1 %3071 }
 0x3c9   :  { %v3008_v56 = vpop.permute.xlu0 %3007  ;;  %3216 = vst.msk [vmem:[#allocation2 + $0x180] sm:$0xff] %vm3167_vm9, %v3072_v55 }
 0x3ca   :  { %3184 = vst.msk [vmem:[#allocation2 + $0x80] sm:$0xff] %vm3167_vm9, %v3008_v56  ;;  %3091 = vrot.lane.b32.xlu1 %v4401_v53, %s4677_s1 }
 0x3cb   :  { %3027 = vrot.lane.b32.xlu0 %v4369_v54, %s4677_s1 }
 0x3cc   :  { %v3074_v59 = vpop.permute.xlu1 %3073 }
 0x3cd   :  { %v3010_v60 = vpop.permute.xlu0 %3009  ;;  %3217 = vst.msk [vmem:[#allocation2 + $0x188] sm:$0xff] %vm3167_vm9, %v3074_v59 }
 0x3ce   :  { %3185 = vst.msk [vmem:[#allocation2 + $0x88] sm:$0xff] %vm3167_vm9, %v3010_v60  ;;  %3093 = vrot.lane.b32.xlu1 %v4402_v57, %s4677_s1 }
 0x3cf   :  { %3029 = vrot.lane.b32.xlu0 %v4370_v58, %s4677_s1 }
 0x3d0   :  { %v2307_v63 = vpop.permute.xlu1 %2306  ;;  %v3280_v2 = vld [vmem:[#allocation2 + $0x180] sm:$0xff] }
 0x3d1   :  { %v2305_v0 = vpop.permute.xlu0 %2304  ;;  %v3248_v1 = vld [vmem:[#allocation2 + $0x80] sm:$0xff]  ;;  %2448 = vst.msk [vmem:[#allocation2 + $0x198] sm:$0xff] %vm2396_vm7, %v2307_v63  ;;  %4624 = vmatprep.mubr.msk.f32.mxu1 %vm3308_vm10, %v3280_v2 }
 0x3d2   :  { %2447 = vst.msk [vmem:[#allocation2 + $0x190] sm:$0xff] %vm2396_vm7, %v2305_v0  ;;  %4576 = vmatprep.mubr.msk.f32.mxu0 %vm3308_vm10, %v3248_v1  ;;  %2324 = vrot.lane.b32.xlu1 %v4275_v61, %s4675_s4  ;;  %v7522_v61 = vld [vmem:[%s7920_s2] ss:$0 sm:$0xff] }
 0x3d3   :  { %2260 = vrot.lane.b32.xlu0 %v4243_v62, %s4675_s4 }
 0x3d4   :  { %v2691_v5 = vpop.permute.xlu1 %2690  ;;  %v3281_v8 = vld [vmem:[#allocation2 + $0x188] sm:$0xff] }
 0x3d5   :  { %v2627_v6 = vpop.permute.xlu0 %2626  ;;  %v3249_v7 = vld [vmem:[#allocation2 + $0x88] sm:$0xff]  ;;  %2833 = vst.msk [vmem:[#allocation2 + $0x190] sm:$0xff] %vm2782_vm8, %v2691_v5  ;;  %4625 = vmatmul.mubr.msk.f32.gmra.mrb[16].mxu1 %vm3308_vm10, %v3281_v8 }
 0x3d6   :  { %2801 = vst.msk [vmem:[#allocation2 + $0x90] sm:$0xff] %vm2782_vm8, %v2627_v6  ;;  %4577 = vmatmul.mubr.msk.f32.gmra.mrb[16].mxu0 %vm3308_vm10, %v3249_v7  ;;  %2326 = vrot.lane.b32.xlu1 %v4276_v3, %s4675_s4 }
 0x3d7   :  { %2262 = vrot.lane.b32.xlu0 %v4244_v4, %s4675_s4 }
 0x3d8   :  { %v2693_v11 = vpop.permute.xlu1 %2692 }
 0x3d9   :  { %v2629_v12 = vpop.permute.xlu0 %2628  ;;  %2834 = vst.msk [vmem:[#allocation2 + $0x198] sm:$0xff] %vm2782_vm8, %v2693_v11 }
 0x3da   :  { %2802 = vst.msk [vmem:[#allocation2 + $0x98] sm:$0xff] %vm2782_vm8, %v2629_v12  ;;  %2710 = vrot.lane.b32.xlu1 %v4339_v9, %s4676_s6 }
 0x3db   :  { %2646 = vrot.lane.b32.xlu0 %v4307_v10, %s4676_s6 }
 0x3dc   :  { %v3076_v15 = vpop.permute.xlu1 %3075 }
 0x3dd   :  { %v3012_v16 = vpop.permute.xlu0 %3011  ;;  %3218 = vst.msk [vmem:[#allocation2 + $0x190] sm:$0xff] %vm3167_vm9, %v3076_v15 }
 0x3de   :  { %3186 = vst.msk [vmem:[#allocation2 + $0x90] sm:$0xff] %vm3167_vm9, %v3012_v16  ;;  %2712 = vrot.lane.b32.xlu1 %v4340_v13, %s4676_s6 }
 0x3df   :  { %2648 = vrot.lane.b32.xlu0 %v4308_v14, %s4676_s6 }
 0x3e0   :  { %v3078_v19 = vpop.permute.xlu1 %3077 }
 0x3e1   :  { %v3014_v20 = vpop.permute.xlu0 %3013  ;;  %3219 = vst.msk [vmem:[#allocation2 + $0x198] sm:$0xff] %vm3167_vm9, %v3078_v19 }
 0x3e2   :  { %3187 = vst.msk [vmem:[#allocation2 + $0x98] sm:$0xff] %vm3167_vm9, %v3014_v20  ;;  %3095 = vrot.lane.b32.xlu1 %v4403_v17, %s4677_s1 }
 0x3e3   :  { %3031 = vrot.lane.b32.xlu0 %v4371_v18, %s4677_s1 }
 0x3e4   :  { %v2309_v23 = vpop.permute.xlu1 %2308  ;;  %v3282_v26 = vld [vmem:[#allocation2 + $0x190] sm:$0xff] }
 0x3e5   :  { %v2245_v24 = vpop.permute.xlu0 %2244  ;;  %v3250_v25 = vld [vmem:[#allocation2 + $0x90] sm:$0xff]  ;;  %2449 = vst.msk [vmem:[#allocation2 + $0x1a0] sm:$0xff] %vm2396_vm7, %v2309_v23  ;;  %4627 = vmatprep.mubr.msk.f32.mxu1 %vm3308_vm10, %v3282_v26 }
 0x3e6   :  { %2417 = vst.msk [vmem:[#allocation2 + $0xa0] sm:$0xff] %vm2396_vm7, %v2245_v24  ;;  %4579 = vmatprep.mubr.msk.f32.mxu0 %vm3308_vm10, %v3250_v25  ;;  %3097 = vrot.lane.b32.xlu1 %v4404_v21, %s4677_s1 }
 0x3e7   :  { %3033 = vrot.lane.b32.xlu0 %v4372_v22, %s4677_s1 }
 0x3e8   :  { %v2311_v29 = vpop.permute.xlu1 %2310  ;;  %v3283_v32 = vld [vmem:[#allocation2 + $0x198] sm:$0xff] }
 0x3e9   :  { %v2247_v30 = vpop.permute.xlu0 %2246  ;;  %v3251_v31 = vld [vmem:[#allocation2 + $0x98] sm:$0xff]  ;;  %2450 = vst.msk [vmem:[#allocation2 + $0x1a8] sm:$0xff] %vm2396_vm7, %v2311_v29  ;;  %4628 = vmatmul.mubr.msk.f32.gmra.mrb[18].mxu1 %vm3308_vm10, %v3283_v32 }
 0x3ea   :  { %2418 = vst.msk [vmem:[#allocation2 + $0xa8] sm:$0xff] %vm2396_vm7, %v2247_v30  ;;  %4580 = vmatmul.mubr.msk.f32.gmra.mrb[18].mxu0 %vm3308_vm10, %v3251_v31  ;;  %2328 = vrot.lane.b32.xlu1 %v4277_v27, %s4675_s4 }
 0x3eb   :  { %2264 = vrot.lane.b32.xlu0 %v4245_v28, %s4675_s4 }
 0x3ec   :  { %v2695_v35 = vpop.permute.xlu1 %2694 }
 0x3ed   :  { %v2631_v36 = vpop.permute.xlu0 %2630  ;;  %2835 = vst.msk [vmem:[#allocation2 + $0x1a0] sm:$0xff] %vm2782_vm8, %v2695_v35 }
 0x3ee   :  { %2803 = vst.msk [vmem:[#allocation2 + $0xa0] sm:$0xff] %vm2782_vm8, %v2631_v36  ;;  %2330 = vrot.lane.b32.xlu1 %v4278_v33, %s4675_s4 }
 0x3ef   :  { %2266 = vrot.lane.b32.xlu0 %v4246_v34, %s4675_s4 }
 0x3f0   :  { %v2697_v39 = vpop.permute.xlu1 %2696 }
 0x3f1   :  { %v2633_v40 = vpop.permute.xlu0 %2632  ;;  %2836 = vst.msk [vmem:[#allocation2 + $0x1a8] sm:$0xff] %vm2782_vm8, %v2697_v39 }
 0x3f2   :  { %2804 = vst.msk [vmem:[#allocation2 + $0xa8] sm:$0xff] %vm2782_vm8, %v2633_v40  ;;  %2714 = vrot.lane.b32.xlu1 %v4341_v37, %s4676_s6 }
 0x3f3   :  { %2650 = vrot.lane.b32.xlu0 %v4309_v38, %s4676_s6 }
 0x3f4   :  { %v3080_v43 = vpop.permute.xlu1 %3079 }
 0x3f5   :  { %v3016_v44 = vpop.permute.xlu0 %3015  ;;  %3220 = vst.msk [vmem:[#allocation2 + $0x1a0] sm:$0xff] %vm3167_vm9, %v3080_v43 }
 0x3f6   :  { %3188 = vst.msk [vmem:[#allocation2 + $0xa0] sm:$0xff] %vm3167_vm9, %v3016_v44  ;;  %2716 = vrot.lane.b32.xlu1 %v4342_v41, %s4676_s6 }
 0x3f7   :  { %2652 = vrot.lane.b32.xlu0 %v4310_v42, %s4676_s6 }
 0x3f8   :  { %v3082_v47 = vpop.permute.xlu1 %3081 }
 0x3f9   :  { %v3018_v48 = vpop.permute.xlu0 %3017  ;;  %3221 = vst.msk [vmem:[#allocation2 + $0x1a8] sm:$0xff] %vm3167_vm9, %v3082_v47 }
 0x3fa   :  { %3189 = vst.msk [vmem:[#allocation2 + $0xa8] sm:$0xff] %vm3167_vm9, %v3018_v48  ;;  %3099 = vrot.lane.b32.xlu1 %v4405_v45, %s4677_s1 }
 0x3fb   :  { %3035 = vrot.lane.b32.xlu0 %v4373_v46, %s4677_s1 }
 0x3fc   :  { %v2313_v51 = vpop.permute.xlu1 %2312  ;;  %v3284_v54 = vld [vmem:[#allocation2 + $0x1a0] sm:$0xff] }
 0x3fd   :  { %v2249_v52 = vpop.permute.xlu0 %2248  ;;  %v3252_v53 = vld [vmem:[#allocation2 + $0xa0] sm:$0xff]  ;;  %2451 = vst.msk [vmem:[#allocation2 + $0x1b0] sm:$0xff] %vm2396_vm7, %v2313_v51  ;;  %4630 = vmatprep.mubr.msk.f32.mxu1 %vm3308_vm10, %v3284_v54 }
 0x3fe   :  { %2419 = vst.msk [vmem:[#allocation2 + $0xb0] sm:$0xff] %vm2396_vm7, %v2249_v52  ;;  %4582 = vmatprep.mubr.msk.f32.mxu0 %vm3308_vm10, %v3252_v53  ;;  %3101 = vrot.lane.b32.xlu1 %v4406_v49, %s4677_s1 }
 0x3ff   :  { %3037 = vrot.lane.b32.xlu0 %v4374_v50, %s4677_s1 }
 0x400   :  { %v2315_v55 = vpop.permute.xlu1 %2314  ;;  %v3285_v58 = vld [vmem:[#allocation2 + $0x1a8] sm:$0xff] }
 0x401   :  { %v2251_v56 = vpop.permute.xlu0 %2250  ;;  %v3253_v57 = vld [vmem:[#allocation2 + $0xa8] sm:$0xff]  ;;  %2452 = vst.msk [vmem:[#allocation2 + $0x1b8] sm:$0xff] %vm2396_vm7, %v2315_v55  ;;  %4631 = vmatmul.mubr.msk.f32.gmra.mrb[20].mxu1 %vm3308_vm10, %v3285_v58 }
 0x402   :  { %2420 = vst.msk [vmem:[#allocation2 + $0xb8] sm:$0xff] %vm2396_vm7, %v2251_v56  ;;  %4583 = vmatmul.mubr.msk.f32.gmra.mrb[20].mxu0 %vm3308_vm10, %v3253_v57 }
 0x404   :  { %v2699_v59 = vpop.permute.xlu1 %2698 }
 0x405   :  { %v2635_v60 = vpop.permute.xlu0 %2634  ;;  %2837 = vst.msk [vmem:[#allocation2 + $0x1b0] sm:$0xff] %vm2782_vm8, %v2699_v59 }
 0x406   :  { %2805 = vst.msk [vmem:[#allocation2 + $0xb0] sm:$0xff] %vm2782_vm8, %v2635_v60 }
 0x408   :  { %v2701_v62 = vpop.permute.xlu1 %2700  ;;  %v4602_v1 = vpop.f32.mrb[0].mxu1 }
 0x409   :  { %v2637_v63 = vpop.permute.xlu0 %2636  ;;  %2838 = vst.msk [vmem:[#allocation2 + $0x1b8] sm:$0xff] %vm2782_vm8, %v2701_v62  ;;  %v4554_v0 = vpop.f32.mrb[0].mxu0  ;;  %v3737_v3 = vadd.f32 %v4602_v1, %v7522_v61 }
 0x40a   :  { %2806 = vst.msk [vmem:[#allocation2 + $0xb8] sm:$0xff] %vm2782_vm8, %v2637_v63  ;;  %v3577_v2 = vadd.f32 %v4554_v0, %v7522_v61  ;;  %v3571_v4 = vpop.f32.mrb[1].mxu0  ;;  %v3731_v5 = vpop.f32.mrb[1].mxu1 }
 0x40b   :  { %v3572_v6 = vadd.f32 %v7522_v61, %v3571_v4  ;;  %v3732_v7 = vadd.f32 %v7522_v61, %v3731_v5  ;;  %3924 = vst.msk [vmem:[%s7921_s3 + $0x108] sm:$0xff] %vm82_vm0, %v3737_v3 }
 0x40c   :  { %3892 = vst.msk [vmem:[%s7921_s3 + $0x8] sm:$0xff] %vm82_vm0, %v3577_v2  ;;  %v3084_v8 = vpop.permute.xlu1 %3083 }
 0x40d   :  { %v3020_v9 = vpop.permute.xlu0 %3019  ;;  %3891 = vst.msk [vmem:[%s7921_s3] sm:$0xff] %vm82_vm0, %v3572_v6  ;;  %3923 = vst.msk [vmem:[%s7921_s3 + $0x100] sm:$0xff] %vm82_vm0, %v3732_v7 }
 0x40e   :  { %3222 = vst.msk [vmem:[#allocation2 + $0x1b0] sm:$0xff] %vm3167_vm9, %v3084_v8  ;;  %3190 = vst.msk [vmem:[#allocation2 + $0xb0] sm:$0xff] %vm3167_vm9, %v3020_v9 }
 0x410   :  { %v3086_v10 = vpop.permute.xlu1 %3085 }
 0x411   :  { %v3022_v11 = vpop.permute.xlu0 %3021  ;;  %3223 = vst.msk [vmem:[#allocation2 + $0x1b8] sm:$0xff] %vm3167_vm9, %v3086_v10 }
 0x412   :  { %3191 = vst.msk [vmem:[#allocation2 + $0xb8] sm:$0xff] %vm3167_vm9, %v3022_v11 }
 0x414   :  { %v2317_v12 = vpop.permute.xlu1 %2316 }
 0x415   :  { %v2253_v13 = vpop.permute.xlu0 %2252  ;;  %v3254_v14 = vld [vmem:[#allocation2 + $0xb0] sm:$0xff]  ;;  %2453 = vst.msk [vmem:[#allocation2 + $0x1c0] sm:$0xff] %vm2396_vm7, %v2317_v12 }
 0x416   :  { %v3286_v15 = vld [vmem:[#allocation2 + $0x1b0] sm:$0xff]  ;;  %2421 = vst.msk [vmem:[#allocation2 + $0xc0] sm:$0xff] %vm2396_vm7, %v2253_v13  ;;  %4585 = vmatprep.mubr.msk.f32.mxu0 %vm3308_vm10, %v3254_v14 }
 0x417   :  { %4633 = vmatprep.mubr.msk.f32.mxu1 %vm3308_vm10, %v3286_v15 }
 0x418   :  { %v2319_v16 = vpop.permute.xlu1 %2318  ;;  %v3287_v19 = vld [vmem:[#allocation2 + $0x1b8] sm:$0xff] }
 0x419   :  { %v2255_v17 = vpop.permute.xlu0 %2254  ;;  %v3255_v18 = vld [vmem:[#allocation2 + $0xb8] sm:$0xff]  ;;  %2454 = vst.msk [vmem:[#allocation2 + $0x1c8] sm:$0xff] %vm2396_vm7, %v2319_v16  ;;  %4634 = vmatmul.mubr.msk.f32.gmra.mrb[22].mxu1 %vm3308_vm10, %v3287_v19 }
 0x41a   :  { %2422 = vst.msk [vmem:[#allocation2 + $0xc8] sm:$0xff] %vm2396_vm7, %v2255_v17  ;;  %4586 = vmatmul.mubr.msk.f32.gmra.mrb[22].mxu0 %vm3308_vm10, %v3255_v18 }
 0x41c   :  { %v2703_v20 = vpop.permute.xlu1 %2702  ;;  %v4605_v23 = vpop.f32.mrb[2].mxu1 }
 0x41d   :  { %v2639_v21 = vpop.permute.xlu0 %2638  ;;  %2839 = vst.msk [vmem:[#allocation2 + $0x1c0] sm:$0xff] %vm2782_vm8, %v2703_v20  ;;  %v4557_v22 = vpop.f32.mrb[2].mxu0  ;;  %v3747_v25 = vadd.f32 %v4605_v23, %v7522_v61 }
 0x41e   :  { %2807 = vst.msk [vmem:[#allocation2 + $0xc0] sm:$0xff] %vm2782_vm8, %v2639_v21  ;;  %v3587_v24 = vadd.f32 %v4557_v22, %v7522_v61  ;;  %v3581_v26 = vpop.f32.mrb[3].mxu0  ;;  %v3741_v27 = vpop.f32.mrb[3].mxu1 }
 0x41f   :  { %v3582_v28 = vadd.f32 %v7522_v61, %v3581_v26  ;;  %v3742_v29 = vadd.f32 %v7522_v61, %v3741_v27  ;;  %3926 = vst.msk [vmem:[%s7921_s3 + $0x118] sm:$0xff] %vm82_vm0, %v3747_v25 }
 0x420   :  { %3894 = vst.msk [vmem:[%s7921_s3 + $0x18] sm:$0xff] %vm82_vm0, %v3587_v24  ;;  %v2705_v30 = vpop.permute.xlu1 %2704 }
 0x421   :  { %v2641_v31 = vpop.permute.xlu0 %2640  ;;  %3893 = vst.msk [vmem:[%s7921_s3 + $0x10] sm:$0xff] %vm82_vm0, %v3582_v28  ;;  %3925 = vst.msk [vmem:[%s7921_s3 + $0x110] sm:$0xff] %vm82_vm0, %v3742_v29 }
 0x422   :  { %2840 = vst.msk [vmem:[#allocation2 + $0x1c8] sm:$0xff] %vm2782_vm8, %v2705_v30  ;;  %2808 = vst.msk [vmem:[#allocation2 + $0xc8] sm:$0xff] %vm2782_vm8, %v2641_v31 }
 0x424   :  { %v3088_v32 = vpop.permute.xlu1 %3087 }
 0x425   :  { %v3024_v33 = vpop.permute.xlu0 %3023  ;;  %3224 = vst.msk [vmem:[#allocation2 + $0x1c0] sm:$0xff] %vm3167_vm9, %v3088_v32 }
 0x426   :  { %3192 = vst.msk [vmem:[#allocation2 + $0xc0] sm:$0xff] %vm3167_vm9, %v3024_v33 }
 0x428   :  { %v3090_v34 = vpop.permute.xlu1 %3089 }
 0x429   :  { %v3026_v35 = vpop.permute.xlu0 %3025  ;;  %3225 = vst.msk [vmem:[#allocation2 + $0x1c8] sm:$0xff] %vm3167_vm9, %v3090_v34 }
 0x42a   :  { %3193 = vst.msk [vmem:[#allocation2 + $0xc8] sm:$0xff] %vm3167_vm9, %v3026_v35 }
 0x42c   :  { %v2321_v36 = vpop.permute.xlu1 %2320  ;;  %v3288_v39 = vld [vmem:[#allocation2 + $0x1c0] sm:$0xff] }
 0x42d   :  { %v2257_v37 = vpop.permute.xlu0 %2256  ;;  %v3256_v38 = vld [vmem:[#allocation2 + $0xc0] sm:$0xff]  ;;  %2455 = vst.msk [vmem:[#allocation2 + $0x1d0] sm:$0xff] %vm2396_vm7, %v2321_v36  ;;  %4636 = vmatprep.mubr.msk.f32.mxu1 %vm3308_vm10, %v3288_v39 }
 0x42e   :  { %2423 = vst.msk [vmem:[#allocation2 + $0xd0] sm:$0xff] %vm2396_vm7, %v2257_v37  ;;  %4588 = vmatprep.mubr.msk.f32.mxu0 %vm3308_vm10, %v3256_v38 }
 0x430   :  { %v2323_v40 = vpop.permute.xlu1 %2322  ;;  %v3289_v43 = vld [vmem:[#allocation2 + $0x1c8] sm:$0xff]  ;;  %v4608_v45 = vpop.f32.mrb[4].mxu1 }
 0x431   :  { %v2259_v41 = vpop.permute.xlu0 %2258  ;;  %v3257_v42 = vld [vmem:[#allocation2 + $0xc8] sm:$0xff]  ;;  %2456 = vst.msk [vmem:[#allocation2 + $0x1d8] sm:$0xff] %vm2396_vm7, %v2323_v40  ;;  %v4560_v44 = vpop.f32.mrb[4].mxu0  ;;  %4637 = vmatmul.mubr.msk.f32.gmra.mrb[24].mxu1 %vm3308_vm10, %v3289_v43  ;;  %v3757_v47 = vadd.f32 %v4608_v45, %v7522_v61 }
 0x432   :  { %2424 = vst.msk [vmem:[#allocation2 + $0xd8] sm:$0xff] %vm2396_vm7, %v2259_v41  ;;  %4589 = vmatmul.mubr.msk.f32.gmra.mrb[24].mxu0 %vm3308_vm10, %v3257_v42  ;;  %v3597_v46 = vadd.f32 %v4560_v44, %v7522_v61  ;;  %v3591_v48 = vpop.f32.mrb[5].mxu0  ;;  %v3751_v49 = vpop.f32.mrb[5].mxu1 }
 0x433   :  { %v3592_v50 = vadd.f32 %v7522_v61, %v3591_v48  ;;  %v3752_v51 = vadd.f32 %v7522_v61, %v3751_v49  ;;  %3928 = vst.msk [vmem:[%s7921_s3 + $0x128] sm:$0xff] %vm82_vm0, %v3757_v47 }
 0x434   :  { %3896 = vst.msk [vmem:[%s7921_s3 + $0x28] sm:$0xff] %vm82_vm0, %v3597_v46  ;;  %v2707_v52 = vpop.permute.xlu1 %2706 }
 0x435   :  { %v2643_v53 = vpop.permute.xlu0 %2642  ;;  %3895 = vst.msk [vmem:[%s7921_s3 + $0x20] sm:$0xff] %vm82_vm0, %v3592_v50  ;;  %3927 = vst.msk [vmem:[%s7921_s3 + $0x120] sm:$0xff] %vm82_vm0, %v3752_v51 }
 0x436   :  { %2841 = vst.msk [vmem:[#allocation2 + $0x1d0] sm:$0xff] %vm2782_vm8, %v2707_v52  ;;  %2809 = vst.msk [vmem:[#allocation2 + $0xd0] sm:$0xff] %vm2782_vm8, %v2643_v53 }
 0x438   :  { %v2709_v54 = vpop.permute.xlu1 %2708 }
 0x439   :  { %v2645_v55 = vpop.permute.xlu0 %2644  ;;  %2842 = vst.msk [vmem:[#allocation2 + $0x1d8] sm:$0xff] %vm2782_vm8, %v2709_v54 }
 0x43a   :  { %2810 = vst.msk [vmem:[#allocation2 + $0xd8] sm:$0xff] %vm2782_vm8, %v2645_v55 }
 0x43c   :  { %v3092_v56 = vpop.permute.xlu1 %3091 }
 0x43d   :  { %v3028_v57 = vpop.permute.xlu0 %3027  ;;  %3226 = vst.msk [vmem:[#allocation2 + $0x1d0] sm:$0xff] %vm3167_vm9, %v3092_v56 }
 0x43e   :  { %3194 = vst.msk [vmem:[#allocation2 + $0xd0] sm:$0xff] %vm3167_vm9, %v3028_v57 }
 0x440   :  { %v3094_v58 = vpop.permute.xlu1 %3093 }
 0x441   :  { %v3030_v59 = vpop.permute.xlu0 %3029  ;;  %3227 = vst.msk [vmem:[#allocation2 + $0x1d8] sm:$0xff] %vm3167_vm9, %v3094_v58 }
 0x442   :  { %3195 = vst.msk [vmem:[#allocation2 + $0xd8] sm:$0xff] %vm3167_vm9, %v3030_v59 }
 0x444   :  { %v2325_v60 = vpop.permute.xlu1 %2324  ;;  %v3290_v0 = vld [vmem:[#allocation2 + $0x1d0] sm:$0xff]  ;;  %v4611_v2 = vpop.f32.mrb[6].mxu1 }
 0x445   :  { %v2261_v62 = vpop.permute.xlu0 %2260  ;;  %v3258_v63 = vld [vmem:[#allocation2 + $0xd0] sm:$0xff]  ;;  %2457 = vst.msk [vmem:[#allocation2 + $0x1e0] sm:$0xff] %vm2396_vm7, %v2325_v60  ;;  %v4563_v1 = vpop.f32.mrb[6].mxu0  ;;  %4639 = vmatprep.mubr.msk.f32.mxu1 %vm3308_vm10, %v3290_v0  ;;  %v3767_v4 = vadd.f32 %v4611_v2, %v7522_v61 }
 0x446   :  { %2425 = vst.msk [vmem:[#allocation2 + $0xe0] sm:$0xff] %vm2396_vm7, %v2261_v62  ;;  %4591 = vmatprep.mubr.msk.f32.mxu0 %vm3308_vm10, %v3258_v63  ;;  %v3607_v3 = vadd.f32 %v4563_v1, %v7522_v61  ;;  %v3601_v5 = vpop.f32.mrb[7].mxu0  ;;  %v3761_v6 = vpop.f32.mrb[7].mxu1 }
 0x447   :  { %v3602_v7 = vadd.f32 %v7522_v61, %v3601_v5  ;;  %v3762_v8 = vadd.f32 %v7522_v61, %v3761_v6  ;;  %3930 = vst.msk [vmem:[%s7921_s3 + $0x138] sm:$0xff] %vm82_vm0, %v3767_v4 }
 0x448   :  { %3898 = vst.msk [vmem:[%s7921_s3 + $0x38] sm:$0xff] %vm82_vm0, %v3607_v3  ;;  %v2327_v9 = vpop.permute.xlu1 %2326  ;;  %v3291_v12 = vld [vmem:[#allocation2 + $0x1d8] sm:$0xff] }
 0x449   :  { %v2263_v10 = vpop.permute.xlu0 %2262  ;;  %v3259_v11 = vld [vmem:[#allocation2 + $0xd8] sm:$0xff]  ;;  %3897 = vst.msk [vmem:[%s7921_s3 + $0x30] sm:$0xff] %vm82_vm0, %v3602_v7  ;;  %3929 = vst.msk [vmem:[%s7921_s3 + $0x130] sm:$0xff] %vm82_vm0, %v3762_v8  ;;  %4640 = vmatmul.mubr.msk.f32.gmra.mrb[26].mxu1 %vm3308_vm10, %v3291_v12 }
 0x44a   :  { %2458 = vst.msk [vmem:[#allocation2 + $0x1e8] sm:$0xff] %vm2396_vm7, %v2327_v9  ;;  %2426 = vst.msk [vmem:[#allocation2 + $0xe8] sm:$0xff] %vm2396_vm7, %v2263_v10  ;;  %4592 = vmatmul.mubr.msk.f32.gmra.mrb[26].mxu0 %vm3308_vm10, %v3259_v11 }
 0x44c   :  { %v2711_v13 = vpop.permute.xlu1 %2710 }
 0x44d   :  { %v2647_v14 = vpop.permute.xlu0 %2646  ;;  %2843 = vst.msk [vmem:[#allocation2 + $0x1e0] sm:$0xff] %vm2782_vm8, %v2711_v13 }
 0x44e   :  { %2811 = vst.msk [vmem:[#allocation2 + $0xe0] sm:$0xff] %vm2782_vm8, %v2647_v14 }
 0x450   :  { %v2713_v15 = vpop.permute.xlu1 %2712 }
 0x451   :  { %v2649_v16 = vpop.permute.xlu0 %2648  ;;  %2844 = vst.msk [vmem:[#allocation2 + $0x1e8] sm:$0xff] %vm2782_vm8, %v2713_v15 }
 0x452   :  { %2812 = vst.msk [vmem:[#allocation2 + $0xe8] sm:$0xff] %vm2782_vm8, %v2649_v16 }
 0x454   :  { %v3096_v17 = vpop.permute.xlu1 %3095 }
 0x455   :  { %v3032_v18 = vpop.permute.xlu0 %3031  ;;  %3228 = vst.msk [vmem:[#allocation2 + $0x1e0] sm:$0xff] %vm3167_vm9, %v3096_v17 }
 0x456   :  { %3196 = vst.msk [vmem:[#allocation2 + $0xe0] sm:$0xff] %vm3167_vm9, %v3032_v18 }
 0x458   :  { %v3098_v19 = vpop.permute.xlu1 %3097  ;;  %v4614_v22 = vpop.f32.mrb[8].mxu1 }
 0x459   :  { %v3034_v20 = vpop.permute.xlu0 %3033  ;;  %3229 = vst.msk [vmem:[#allocation2 + $0x1e8] sm:$0xff] %vm3167_vm9, %v3098_v19  ;;  %v4566_v21 = vpop.f32.mrb[8].mxu0  ;;  %v3777_v24 = vadd.f32 %v4614_v22, %v7522_v61 }
 0x45a   :  { %3197 = vst.msk [vmem:[#allocation2 + $0xe8] sm:$0xff] %vm3167_vm9, %v3034_v20  ;;  %v3617_v23 = vadd.f32 %v4566_v21, %v7522_v61  ;;  %v3611_v25 = vpop.f32.mrb[9].mxu0  ;;  %v3771_v26 = vpop.f32.mrb[9].mxu1 }
 0x45b   :  { %v3612_v27 = vadd.f32 %v7522_v61, %v3611_v25  ;;  %v3772_v28 = vadd.f32 %v7522_v61, %v3771_v26  ;;  %3932 = vst.msk [vmem:[%s7921_s3 + $0x148] sm:$0xff] %vm82_vm0, %v3777_v24 }
 0x45c   :  { %3900 = vst.msk [vmem:[%s7921_s3 + $0x48] sm:$0xff] %vm82_vm0, %v3617_v23  ;;  %v2329_v29 = vpop.permute.xlu1 %2328  ;;  %v3292_v32 = vld [vmem:[#allocation2 + $0x1e0] sm:$0xff] }
 0x45d   :  { %v2265_v30 = vpop.permute.xlu0 %2264  ;;  %v3260_v31 = vld [vmem:[#allocation2 + $0xe0] sm:$0xff]  ;;  %3899 = vst.msk [vmem:[%s7921_s3 + $0x40] sm:$0xff] %vm82_vm0, %v3612_v27  ;;  %3931 = vst.msk [vmem:[%s7921_s3 + $0x140] sm:$0xff] %vm82_vm0, %v3772_v28  ;;  %4642 = vmatprep.mubr.msk.f32.mxu1 %vm3308_vm10, %v3292_v32 }
 0x45e   :  { %2459 = vst.msk [vmem:[#allocation2 + $0x1f0] sm:$0xff] %vm2396_vm7, %v2329_v29  ;;  %2427 = vst.msk [vmem:[#allocation2 + $0xf0] sm:$0xff] %vm2396_vm7, %v2265_v30  ;;  %4594 = vmatprep.mubr.msk.f32.mxu0 %vm3308_vm10, %v3260_v31 }
 0x460   :  { %v2331_v33 = vpop.permute.xlu1 %2330  ;;  %v3293_v36 = vld [vmem:[#allocation2 + $0x1e8] sm:$0xff] }
 0x461   :  { %v2267_v34 = vpop.permute.xlu0 %2266  ;;  %v3261_v35 = vld [vmem:[#allocation2 + $0xe8] sm:$0xff]  ;;  %2460 = vst.msk [vmem:[#allocation2 + $0x1f8] sm:$0xff] %vm2396_vm7, %v2331_v33  ;;  %4643 = vmatmul.mubr.msk.f32.gmra.mrb[28].mxu1 %vm3308_vm10, %v3293_v36 }
 0x462   :  { %2428 = vst.msk [vmem:[#allocation2 + $0xf8] sm:$0xff] %vm2396_vm7, %v2267_v34  ;;  %4595 = vmatmul.mubr.msk.f32.gmra.mrb[28].mxu0 %vm3308_vm10, %v3261_v35 }
 0x464   :  { %v2715_v37 = vpop.permute.xlu1 %2714 }
 0x465   :  { %v2651_v38 = vpop.permute.xlu0 %2650  ;;  %2845 = vst.msk [vmem:[#allocation2 + $0x1f0] sm:$0xff] %vm2782_vm8, %v2715_v37 }
 0x466   :  { %2813 = vst.msk [vmem:[#allocation2 + $0xf0] sm:$0xff] %vm2782_vm8, %v2651_v38 }
 0x468   :  { %v2717_v39 = vpop.permute.xlu1 %2716 }
 0x469   :  { %v2653_v40 = vpop.permute.xlu0 %2652  ;;  %2846 = vst.msk [vmem:[#allocation2 + $0x1f8] sm:$0xff] %vm2782_vm8, %v2717_v39 }
 0x46a   :  { %2814 = vst.msk [vmem:[#allocation2 + $0xf8] sm:$0xff] %vm2782_vm8, %v2653_v40 }
 0x46c   :  { %v3100_v41 = vpop.permute.xlu1 %3099  ;;  %v4617_v44 = vpop.f32.mrb[10].mxu1 }
 0x46d   :  { %v3036_v42 = vpop.permute.xlu0 %3035  ;;  %3230 = vst.msk [vmem:[#allocation2 + $0x1f0] sm:$0xff] %vm3167_vm9, %v3100_v41  ;;  %v4569_v43 = vpop.f32.mrb[10].mxu0  ;;  %v3787_v46 = vadd.f32 %v4617_v44, %v7522_v61 }
 0x46e   :  { %3198 = vst.msk [vmem:[#allocation2 + $0xf0] sm:$0xff] %vm3167_vm9, %v3036_v42  ;;  %v3627_v45 = vadd.f32 %v4569_v43, %v7522_v61  ;;  %v3621_v47 = vpop.f32.mrb[11].mxu0  ;;  %v3781_v48 = vpop.f32.mrb[11].mxu1 }
 0x46f   :  { %v3622_v49 = vadd.f32 %v7522_v61, %v3621_v47  ;;  %v3782_v50 = vadd.f32 %v7522_v61, %v3781_v48  ;;  %3934 = vst.msk [vmem:[%s7921_s3 + $0x158] sm:$0xff] %vm82_vm0, %v3787_v46 }
 0x470   :  { %3902 = vst.msk [vmem:[%s7921_s3 + $0x58] sm:$0xff] %vm82_vm0, %v3627_v45  ;;  %v3102_v51 = vpop.permute.xlu1 %3101 }
 0x471   :  { %v3038_v52 = vpop.permute.xlu0 %3037  ;;  %3901 = vst.msk [vmem:[%s7921_s3 + $0x50] sm:$0xff] %vm82_vm0, %v3622_v49  ;;  %3933 = vst.msk [vmem:[%s7921_s3 + $0x150] sm:$0xff] %vm82_vm0, %v3782_v50 }
 0x472   :  { %3231 = vst.msk [vmem:[#allocation2 + $0x1f8] sm:$0xff] %vm3167_vm9, %v3102_v51  ;;  %3199 = vst.msk [vmem:[#allocation2 + $0xf8] sm:$0xff] %vm3167_vm9, %v3038_v52 }
 0x474   :  { %v3294_v54 = vld [vmem:[#allocation2 + $0x1f0] sm:$0xff] }
 0x475   :  { %v3262_v53 = vld [vmem:[#allocation2 + $0xf0] sm:$0xff]  ;;  %4645 = vmatprep.mubr.msk.f32.mxu1 %vm3308_vm10, %v3294_v54 }
 0x476   :  { %4597 = vmatprep.mubr.msk.f32.mxu0 %vm3308_vm10, %v3262_v53 }
 0x479   :  { %v3263_v55 = vld [vmem:[#allocation2 + $0xf8] sm:$0xff] }
 0x47a   :  { %v3295_v56 = vld [vmem:[#allocation2 + $0x1f8] sm:$0xff]  ;;  %4598 = vmatmul.mubr.msk.f32.gmra.mrb[30].mxu0 %vm3308_vm10, %v3263_v55 }
 0x47b   :  { %4646 = vmatmul.mubr.msk.f32.gmra.mrb[30].mxu1 %vm3308_vm10, %v3295_v56 }
 0x480   :  { %v4620_v58 = vpop.f32.mrb[12].mxu1 }
 0x481   :  { %v4572_v57 = vpop.f32.mrb[12].mxu0  ;;  %v3797_v60 = vadd.f32 %v4620_v58, %v7522_v61  ;;  %v3791_v63 = vpop.f32.mrb[13].mxu1 }
 0x482   :  { %v3637_v59 = vadd.f32 %v4572_v57, %v7522_v61  ;;  %v3631_v62 = vpop.f32.mrb[13].mxu0  ;;  %v3792_v1 = vadd.f32 %v7522_v61, %v3791_v63 }
 0x483   :  { %v3632_v0 = vadd.f32 %v7522_v61, %v3631_v62  ;;  %3936 = vst.msk [vmem:[%s7921_s3 + $0x168] sm:$0xff] %vm82_vm0, %v3797_v60 }
 0x484   :  { %3904 = vst.msk [vmem:[%s7921_s3 + $0x68] sm:$0xff] %vm82_vm0, %v3637_v59  ;;  %3935 = vst.msk [vmem:[%s7921_s3 + $0x160] sm:$0xff] %vm82_vm0, %v3792_v1 }
 0x485   :  { %3903 = vst.msk [vmem:[%s7921_s3 + $0x60] sm:$0xff] %vm82_vm0, %v3632_v0 }
 0x494   :  { %v4623_v3 = vpop.f32.mrb[14].mxu1 }
 0x495   :  { %v4575_v2 = vpop.f32.mrb[14].mxu0  ;;  %v3807_v5 = vadd.f32 %v4623_v3, %v7522_v61  ;;  %v3801_v7 = vpop.f32.mrb[15].mxu1 }
 0x496   :  { %v3647_v4 = vadd.f32 %v4575_v2, %v7522_v61  ;;  %v3641_v6 = vpop.f32.mrb[15].mxu0  ;;  %v3802_v9 = vadd.f32 %v7522_v61, %v3801_v7 }
 0x497   :  { %v3642_v8 = vadd.f32 %v7522_v61, %v3641_v6  ;;  %3938 = vst.msk [vmem:[%s7921_s3 + $0x178] sm:$0xff] %vm82_vm0, %v3807_v5 }
 0x498   :  { %3906 = vst.msk [vmem:[%s7921_s3 + $0x78] sm:$0xff] %vm82_vm0, %v3647_v4  ;;  %3937 = vst.msk [vmem:[%s7921_s3 + $0x170] sm:$0xff] %vm82_vm0, %v3802_v9 }
 0x499   :  { %3905 = vst.msk [vmem:[%s7921_s3 + $0x70] sm:$0xff] %vm82_vm0, %v3642_v8 }
 0x4a8   :  { %v4626_v11 = vpop.f32.mrb[16].mxu1 }
 0x4a9   :  { %v4578_v10 = vpop.f32.mrb[16].mxu0  ;;  %v3817_v13 = vadd.f32 %v4626_v11, %v7522_v61  ;;  %v3811_v15 = vpop.f32.mrb[17].mxu1 }
 0x4aa   :  { %v3657_v12 = vadd.f32 %v4578_v10, %v7522_v61  ;;  %v3651_v14 = vpop.f32.mrb[17].mxu0  ;;  %v3812_v17 = vadd.f32 %v7522_v61, %v3811_v15 }
 0x4ab   :  { %v3652_v16 = vadd.f32 %v7522_v61, %v3651_v14  ;;  %3940 = vst.msk [vmem:[%s7921_s3 + $0x188] sm:$0xff] %vm82_vm0, %v3817_v13 }
 0x4ac   :  { %3908 = vst.msk [vmem:[%s7921_s3 + $0x88] sm:$0xff] %vm82_vm0, %v3657_v12  ;;  %3939 = vst.msk [vmem:[%s7921_s3 + $0x180] sm:$0xff] %vm82_vm0, %v3812_v17 }
 0x4ad   :  { %3907 = vst.msk [vmem:[%s7921_s3 + $0x80] sm:$0xff] %vm82_vm0, %v3652_v16 }
 0x4bc   :  { %v4629_v19 = vpop.f32.mrb[18].mxu1 }
 0x4bd   :  { %v4581_v18 = vpop.f32.mrb[18].mxu0  ;;  %v3827_v21 = vadd.f32 %v4629_v19, %v7522_v61  ;;  %v3821_v23 = vpop.f32.mrb[19].mxu1 }
 0x4be   :  { %v3667_v20 = vadd.f32 %v4581_v18, %v7522_v61  ;;  %v3661_v22 = vpop.f32.mrb[19].mxu0  ;;  %v3822_v25 = vadd.f32 %v7522_v61, %v3821_v23 }
 0x4bf   :  { %v3662_v24 = vadd.f32 %v7522_v61, %v3661_v22  ;;  %3942 = vst.msk [vmem:[%s7921_s3 + $0x198] sm:$0xff] %vm82_vm0, %v3827_v21 }
 0x4c0   :  { %3910 = vst.msk [vmem:[%s7921_s3 + $0x98] sm:$0xff] %vm82_vm0, %v3667_v20  ;;  %3941 = vst.msk [vmem:[%s7921_s3 + $0x190] sm:$0xff] %vm82_vm0, %v3822_v25 }
 0x4c1   :  { %3909 = vst.msk [vmem:[%s7921_s3 + $0x90] sm:$0xff] %vm82_vm0, %v3662_v24 }
 0x4d4   :  { %v4632_v27 = vpop.f32.mrb[20].mxu1 }
 0x4d5   :  { %v4584_v26 = vpop.f32.mrb[20].mxu0  ;;  %v3837_v29 = vadd.f32 %v4632_v27, %v7522_v61  ;;  %v3831_v31 = vpop.f32.mrb[21].mxu1 }
 0x4d6   :  { %v3677_v28 = vadd.f32 %v4584_v26, %v7522_v61  ;;  %v3671_v30 = vpop.f32.mrb[21].mxu0  ;;  %v3832_v33 = vadd.f32 %v7522_v61, %v3831_v31 }
 0x4d7   :  { %v3672_v32 = vadd.f32 %v7522_v61, %v3671_v30  ;;  %3944 = vst.msk [vmem:[%s7921_s3 + $0x1a8] sm:$0xff] %vm82_vm0, %v3837_v29 }
 0x4d8   :  { %3912 = vst.msk [vmem:[%s7921_s3 + $0xa8] sm:$0xff] %vm82_vm0, %v3677_v28  ;;  %3943 = vst.msk [vmem:[%s7921_s3 + $0x1a0] sm:$0xff] %vm82_vm0, %v3832_v33 }
 0x4d9   :  { %3911 = vst.msk [vmem:[%s7921_s3 + $0xa0] sm:$0xff] %vm82_vm0, %v3672_v32 }
 0x4ec   :  { %v4635_v35 = vpop.f32.mrb[22].mxu1 }
 0x4ed   :  { %v4587_v34 = vpop.f32.mrb[22].mxu0  ;;  %v3847_v37 = vadd.f32 %v4635_v35, %v7522_v61  ;;  %v3841_v39 = vpop.f32.mrb[23].mxu1 }
 0x4ee   :  { %v3687_v36 = vadd.f32 %v4587_v34, %v7522_v61  ;;  %v3681_v38 = vpop.f32.mrb[23].mxu0  ;;  %v3842_v41 = vadd.f32 %v7522_v61, %v3841_v39 }
 0x4ef   :  { %v3682_v40 = vadd.f32 %v7522_v61, %v3681_v38  ;;  %3946 = vst.msk [vmem:[%s7921_s3 + $0x1b8] sm:$0xff] %vm82_vm0, %v3847_v37 }
 0x4f0   :  { %3914 = vst.msk [vmem:[%s7921_s3 + $0xb8] sm:$0xff] %vm82_vm0, %v3687_v36  ;;  %3945 = vst.msk [vmem:[%s7921_s3 + $0x1b0] sm:$0xff] %vm82_vm0, %v3842_v41 }
 0x4f1   :  { %3913 = vst.msk [vmem:[%s7921_s3 + $0xb0] sm:$0xff] %vm82_vm0, %v3682_v40 }
 0x504   :  { %v4638_v43 = vpop.f32.mrb[24].mxu1 }
 0x505   :  { %v4590_v42 = vpop.f32.mrb[24].mxu0  ;;  %v3857_v45 = vadd.f32 %v4638_v43, %v7522_v61  ;;  %v3851_v47 = vpop.f32.mrb[25].mxu1 }
 0x506   :  { %v3697_v44 = vadd.f32 %v4590_v42, %v7522_v61  ;;  %v3691_v46 = vpop.f32.mrb[25].mxu0  ;;  %v3852_v49 = vadd.f32 %v7522_v61, %v3851_v47 }
 0x507   :  { %v3692_v48 = vadd.f32 %v7522_v61, %v3691_v46  ;;  %3948 = vst.msk [vmem:[%s7921_s3 + $0x1c8] sm:$0xff] %vm82_vm0, %v3857_v45 }
 0x508   :  { %3916 = vst.msk [vmem:[%s7921_s3 + $0xc8] sm:$0xff] %vm82_vm0, %v3697_v44  ;;  %3947 = vst.msk [vmem:[%s7921_s3 + $0x1c0] sm:$0xff] %vm82_vm0, %v3852_v49 }
 0x509   :  { %3915 = vst.msk [vmem:[%s7921_s3 + $0xc0] sm:$0xff] %vm82_vm0, %v3692_v48 }
 0x51c   :  { %v4641_v51 = vpop.f32.mrb[26].mxu1 }
 0x51d   :  { %v4593_v50 = vpop.f32.mrb[26].mxu0  ;;  %v3867_v53 = vadd.f32 %v4641_v51, %v7522_v61  ;;  %v3861_v55 = vpop.f32.mrb[27].mxu1 }
 0x51e   :  { %v3707_v52 = vadd.f32 %v4593_v50, %v7522_v61  ;;  %v3701_v54 = vpop.f32.mrb[27].mxu0  ;;  %v3862_v57 = vadd.f32 %v7522_v61, %v3861_v55 }
 0x51f   :  { %v3702_v56 = vadd.f32 %v7522_v61, %v3701_v54  ;;  %3950 = vst.msk [vmem:[%s7921_s3 + $0x1d8] sm:$0xff] %vm82_vm0, %v3867_v53 }
 0x520   :  { %3918 = vst.msk [vmem:[%s7921_s3 + $0xd8] sm:$0xff] %vm82_vm0, %v3707_v52  ;;  %3949 = vst.msk [vmem:[%s7921_s3 + $0x1d0] sm:$0xff] %vm82_vm0, %v3862_v57 }
 0x521   :  { %3917 = vst.msk [vmem:[%s7921_s3 + $0xd0] sm:$0xff] %vm82_vm0, %v3702_v56 }
 0x534   :  { %v4644_v59 = vpop.f32.mrb[28].mxu1 }
 0x535   :  { %v4596_v58 = vpop.f32.mrb[28].mxu0  ;;  %v3877_v62 = vadd.f32 %v4644_v59, %v7522_v61  ;;  %v3871_v0 = vpop.f32.mrb[29].mxu1 }
 0x536   :  { %v3717_v60 = vadd.f32 %v4596_v58, %v7522_v61  ;;  %v3711_v63 = vpop.f32.mrb[29].mxu0  ;;  %v3872_v2 = vadd.f32 %v7522_v61, %v3871_v0 }
 0x537   :  { %v3712_v1 = vadd.f32 %v7522_v61, %v3711_v63  ;;  %3952 = vst.msk [vmem:[%s7921_s3 + $0x1e8] sm:$0xff] %vm82_vm0, %v3877_v62 }
 0x538   :  { %3920 = vst.msk [vmem:[%s7921_s3 + $0xe8] sm:$0xff] %vm82_vm0, %v3717_v60  ;;  %3951 = vst.msk [vmem:[%s7921_s3 + $0x1e0] sm:$0xff] %vm82_vm0, %v3872_v2 }
 0x539   :  { %3919 = vst.msk [vmem:[%s7921_s3 + $0xe0] sm:$0xff] %vm82_vm0, %v3712_v1 }
 0x54d   :  { %v4599_v3 = vpop.f32.mrb[30].mxu0 }
 0x54e   :  { %v4647_v4 = vpop.f32.mrb[30].mxu1  ;;  %v3727_v5 = vadd.f32 %v4599_v3, %v7522_v61  ;;  %v3721_v7 = vpop.f32.mrb[31].mxu0 }
 0x54f   :  { %v3887_v6 = vadd.f32 %v4647_v4, %v7522_v61  ;;  %v3881_v8 = vpop.f32.mrb[31].mxu1  ;;  %v3722_v9 = vadd.f32 %v7522_v61, %v3721_v7 }
 0x550   :  { %v3882_v10 = vadd.f32 %v7522_v61, %v3881_v8  ;;  %3922 = vst.msk [vmem:[%s7921_s3 + $0xf8] sm:$0xff] %vm82_vm0, %v3727_v5 }
 0x551   :  { %3954 = vst.msk [vmem:[%s7921_s3 + $0x1f8] sm:$0xff] %vm82_vm0, %v3887_v6  ;;  %3921 = vst.msk [vmem:[%s7921_s3 + $0xf0] sm:$0xff] %vm82_vm0, %v3722_v9 }
 0x552   :  { %3953 = vst.msk [vmem:[%s7921_s3 + $0x1f0] sm:$0xff] %vm82_vm0, %v3882_v10 }

</bundles_post_ra>
